<compile_context>
chip_gen: v7x
topology: tpu7x:2x2x1
jax: 0.10.0
libtpu: 0.0.40
codegen_flags: <defaults>
</compile_context>

<pallas_src>
import functools

import jax
import jax.numpy as jnp
from jax.experimental import pallas as pl
from jax.experimental.pallas import tpu as pltpu

EPS = 1e-8


def tcn_kernel(dil_ref,                      # SMEM (L,) int32 dilation-branch ids
               x_ref, bnw_ref, bnvec_ref, w1_ref, hvec_ref,
               wps_ref, bps_ref, wm_ref, bm_ref,
               o_ref, out_acc, skip_acc,
               *, unique_dils, ksize, seg_len, n_seg, n_layers):
    f32 = jnp.float32
    bf16 = jnp.bfloat16

    l = pl.program_id(1)
    T = seg_len
    BbT = n_seg * T
    BN = out_acc.shape[0]

    # ---- within-segment time index along the lane axis, (1, BbT) ----
    t_seg = jax.lax.broadcasted_iota(jnp.int32, (1, T), 1)
    t_in = jnp.tile(t_seg, (1, n_seg)) if n_seg > 1 else t_seg
    t_in_f = t_in.astype(f32)

    # ---- per-segment reduce / broadcast operators for gLN (n_seg > 1) ----
    if n_seg > 1:
        jj = jax.lax.broadcasted_iota(jnp.int32, (BbT, n_seg), 0)
        bb = jax.lax.broadcasted_iota(jnp.int32, (BbT, n_seg), 1) * T
        seg_R = jnp.logical_and(jj >= bb, jj < bb + T).astype(f32)       # (BbT, Bb)
        jj2 = jax.lax.broadcasted_iota(jnp.int32, (n_seg, BbT), 1)
        bb2 = jax.lax.broadcasted_iota(jnp.int32, (n_seg, BbT), 0) * T
        seg_B = jnp.logical_and(jj2 >= bb2, jj2 < bb2 + T).astype(f32)   # (Bb, BbT)

    def gln_norm(v):
        """(v - mean) / std over (C, T) per batch segment; affine folded elsewhere."""
        C = v.shape[0]
        s1 = jnp.sum(v, axis=0, keepdims=True)
        s2 = jnp.sum(v * v, axis=0, keepdims=True)
        packed = jnp.concatenate([s1, s2], axis=0)                       # (2, BbT)
        if n_seg > 1:
            tot = jnp.dot(packed, seg_R, preferred_element_type=f32)     # (2, Bb)
            full = jnp.dot(tot, seg_B, preferred_element_type=f32)       # (2, BbT)
        else:
            full = jnp.sum(packed, axis=1, keepdims=True)                # (2, 1)
        inv_n = 1.0 / (C * T)
        mean = full[0:1] * inv_n
        ex2 = full[1:2] * inv_n
        rstd = jax.lax.rsqrt(ex2 - mean * mean + EPS)
        return (v - mean) * rstd

    def prelu(v, a):
        return jnp.where(v >= 0.0, v, a * v)

    # ---- first layer step: cLN + bottleneck 1x1 conv, init accumulators ----
    @pl.when(l == 0)
    def _():
        x = x_ref[...]                                                   # (C_in, BbT)
        c_in = x.shape[0]
        ssum = jnp.sum(x, axis=0, keepdims=True)
        spow = jnp.sum(x * x, axis=0, keepdims=True)
        stats = jnp.concatenate([ssum, spow], axis=0)                    # (2, BbT)
        n = 1
        while n < T:          # segmented Hillis-Steele cumulative scan (XLU rolls)
            rolled = pltpu.roll(stats, shift=n, axis=1)
            stats = stats + jnp.where(t_in >= n, rolled, 0.0)
            n *= 2
        inv_cnt = pl.reciprocal((t_in_f + 1.0) * c_in, approx=True)      # EUP
        cum_sum = stats[0:1]
        cum_pow = stats[1:2]
        cum_mean = cum_sum * inv_cnt
        cum_var = (cum_pow - 2.0 * cum_mean * cum_sum) * inv_cnt + cum_mean * cum_mean
        xn = (x - cum_mean) * jax.lax.rsqrt(cum_var + EPS)   # cg/cb folded into bnw/bnvec
        out_acc[...] = jnp.dot(bnw_ref[...], xn.astype(bf16),
                               preferred_element_type=f32) + bnvec_ref[:, 0:1]
        skip_acc[...] = jnp.zeros_like(skip_acc)

    # ---- one separable-conv block per grid step along the layer axis ----
    hv = hvec_ref[...]                                                   # (H, 6 + K)
    b1, bd, g1, be1, a1, a2 = (hv[:, i:i + 1] for i in range(6))

    out = out_acc[...]                                                   # (BN, BbT)
    h = jnp.dot(w1_ref[...], out.astype(bf16),
                preferred_element_type=f32) + b1                         # (H, BbT)
    h = prelu(h, a1)
    h = gln_norm(h) * g1 + be1

    # depthwise dilated conv (zero padded per segment), static shifts per branch
    def make_depthwise(d):
        pad = (ksize - 1) * d // 2

        def branch(hn):
            acc_dw = jnp.zeros_like(hn)
            for k in range(ksize):
                s = k * d - pad
                wk = hv[:, 6 + k:7 + k]                                  # (H, 1)
                if s == 0:
                    tap = hn
                else:
                    mask = jnp.logical_and(t_in + s >= 0, t_in + s < T).astype(f32)
                    tap = pltpu.roll(hn, shift=(-s) % BbT, axis=1) * mask
                acc_dw = acc_dw + wk * tap
            return acc_dw
        return branch

    if len(unique_dils) == 1:
        acc = make_depthwise(unique_dils[0])(h)
    else:
        acc = jax.lax.switch(dil_ref[l],
                             [make_depthwise(d) for d in unique_dils], h)
    acc = acc + bd
    acc = prelu(acc, a2)
    acc = gln_norm(acc)                                  # g2/be2 folded into wps/bps

    # fused residual + skip pointwise convs: one (2*BN, H) matmul
    rs = jnp.dot(wps_ref[...], acc.astype(bf16),
                 preferred_element_type=f32) + bps_ref[...]              # (2BN, BbT)
    out_acc[...] = out + rs[:BN]
    skip_acc[...] = skip_acc[...] + rs[BN:]

    # ---- last layer step: PReLU -> mask 1x1 conv -> sigmoid ----
    @pl.when(l == n_layers - 1)
    def _():
        pa = bnvec_ref[:, 1:2]                                           # (BN, 1)
        y = prelu(skip_acc[...], pa)
        y = jnp.dot(wm_ref[...], y.astype(bf16),
                    preferred_element_type=f32) + bm_ref[...]
        o_ref[...] = jax.nn.sigmoid(y)


# ---------------------------------------------------------------------------
# Wrapper: host-side packing, generation-aware tiling, pallas_call.
# ---------------------------------------------------------------------------
def _tpu_vmem_capacity():
    try:
        return int(pltpu.get_tpu_info().vmem_capacity_bytes)
    except Exception:
        return 64 * 2 ** 20          # conservative fallback (v7x per-TC VMEM)


def _is_multi_tensorcore():
    try:
        kind = jax.devices()[0].device_kind.lower()
        return ("v7" in kind) or ("tpu7" in kind) or ("7x" in kind)
    except Exception:
        return False


def _block_vmem_bytes(shape, dtype):
    """Approximate padded VMEM bytes of one block ((sublane, lane) tiling)."""
    item = jnp.dtype(dtype).itemsize
    dims = list(shape)
    if len(dims) == 1:
        dims = [1] + dims
    sub = 8 if item >= 4 else (16 if item == 2 else 32)
    lead = 1
    for d in dims[:-2]:
        lead *= d
    sec = -(-dims[-2] // sub) * sub
    last = -(-dims[-1] // 128) * 128
    return lead * sec * last * item


def _choose_batch_block(B, T, footprint_fn, vmem_budget, prefer_even_grid,
                        lane_cap=8192):
    divisors = [d for d in range(1, B + 1) if B % d == 0]
    fitting = [d for d in divisors
               if d * T <= lane_cap and footprint_fn(d) <= vmem_budget]
    if not fitting:
        return 1
    if prefer_even_grid:
        even = [d for d in fitting if (B // d) % 2 == 0]
        if even:
            return max(even)
    return max(fitting)


def tcn_pallas(x, params, dilations, ksize, batch_block=None):
    B, C_in, T = x.shape
    assert T % 128 == 0, "time axis must be a multiple of 128 (pad at call site)"
    L = len(dilations)
    K = ksize
    BN = params["bnw"].shape[0]
    H = params["w1"].shape[1]
    C_out = params["wm"].shape[0]
    f32, bf16 = jnp.float32, jnp.bfloat16

    # ---- pack / cast / fold parameters (host-side, once) ----
    cg = params["cg"].astype(f32)
    cb = params["cb"].astype(f32)
    bnw_f = params["bnw"].astype(f32)
    bnw = (bnw_f * cg[:, 0][None, :]).astype(bf16)                    # cg folded
    bnb_fold = params["bnb"].astype(f32) + bnw_f @ cb                 # cb folded
    pa_col = jnp.broadcast_to(params["pa"].astype(f32).reshape(1, 1), (BN, 1))
    bnvec = jnp.concatenate([bnb_fold, pa_col], axis=1)               # (BN, 2)

    hvec = jnp.concatenate([
        params["b1"], params["bd"], params["g1"], params["be1"],
        jnp.broadcast_to(params["a1"], (L, H, 1)),
        jnp.broadcast_to(params["a2"], (L, H, 1)),
        params["wd"],
    ], axis=-1).astype(f32)                                           # (L, H, 6+K)

    wps_f = jnp.concatenate([params["wp"], params["ws"]], axis=1).astype(f32)
    bps_f = jnp.concatenate([params["bp"], params["bs"]], axis=1).astype(f32)
    g2 = params["g2"].astype(f32)
    be2 = params["be2"].astype(f32)
    wps = (wps_f * jnp.swapaxes(g2, 1, 2)).astype(bf16)               # g2 folded
    bps = bps_f + jnp.einsum("lnh,lhk->lnk", wps_f, be2)              # be2 folded

    w1 = params["w1"].astype(bf16)
    wm = params["wm"].astype(bf16)
    bm = params["bm"].astype(f32)

    unique_dils = tuple(sorted(set(int(d) for d in dilations)))
    dil_idx = jnp.asarray([unique_dils.index(int(d)) for d in dilations],
                          dtype=jnp.int32)

    # ---- VMEM footprint model drives batch-block choice and vmem limit ----
    def footprint(bb):
        bbt = bb * T
        fp = 2 * _block_vmem_bytes((C_in, bbt), f32)                  # x (double buf)
        fp += 2 * _block_vmem_bytes((C_out, bbt), f32)                # out
        fp += 2 * (_block_vmem_bytes((BN, C_in), bf16)
                   + _block_vmem_bytes((BN, 2), f32)
                   + _block_vmem_bytes((C_out, BN), bf16)
                   + _block_vmem_bytes((C_out, 1), f32))              # constant weights
        fp += 2 * (_block_vmem_bytes((H, BN), bf16)
                   + _block_vmem_bytes((H, 6 + K), f32)
                   + _block_vmem_bytes((2 * BN, H), bf16)
                   + _block_vmem_bytes((2 * BN, 1), f32))             # per-layer weights
        fp += 2 * BN * bbt * 4                                        # out/skip scratch
        fp += (4 * BN + 3 * H) * bbt * 4                              # peak intermediates
        fp += 8 * bbt * 4                                             # iotas / masks / stats
        return fp

    cap = _tpu_vmem_capacity()
    budget = int(0.6 * cap)
    if batch_block is None:
        batch_block = _choose_batch_block(B, T, footprint, budget,
                                          prefer_even_grid=_is_multi_tensorcore())
    assert B % batch_block == 0
    G = B // batch_block
    BbT = batch_block * T
    vmem_limit = int(min(cap - (2 << 20),
                         max(32 << 20, int(1.4 * footprint(batch_block)))))

    # lane-dense activation layout: fold batch into the time/lane axis
    x2 = jnp.transpose(x, (1, 0, 2)).reshape(C_in, B * T).astype(f32)

    grid_spec = pltpu.PrefetchScalarGridSpec(
        num_scalar_prefetch=1,
        grid=(G, L),
        in_specs=[
            pl.BlockSpec((C_in, BbT), lambda g, l, *_: (0, g)),
            pl.BlockSpec((BN, C_in), lambda g, l, *_: (0, 0)),
            pl.BlockSpec((BN, 2), lambda g, l, *_: (0, 0)),
            pl.BlockSpec((None, H, BN), lambda g, l, *_: (l, 0, 0)),
            pl.BlockSpec((None, H, 6 + K), lambda g, l, *_: (l, 0, 0)),
            pl.BlockSpec((None, 2 * BN, H), lambda g, l, *_: (l, 0, 0)),
            pl.BlockSpec((None, 2 * BN, 1), lambda g, l, *_: (l, 0, 0)),
            pl.BlockSpec((C_out, BN), lambda g, l, *_: (0, 0)),
            pl.BlockSpec((C_out, 1), lambda g, l, *_: (0, 0)),
        ],
        out_specs=pl.BlockSpec((C_out, BbT), lambda g, l, *_: (0, g)),
        scratch_shapes=[pltpu.VMEM((BN, BbT), f32),       # out accumulator
                        pltpu.VMEM((BN, BbT), f32)])      # skip accumulator

    kernel = functools.partial(tcn_kernel, unique_dils=unique_dils, ksize=K,
                               seg_len=T, n_seg=batch_block, n_layers=L)

    per_t_macs = BN * C_in + C_out * BN + L * (H * BN + 2 * BN * H + H * K)
    weight_arrays = (bnw, bnvec, w1, hvec, wps, bps, wm, bm)
    ce = pl.CostEstimate(
        flops=int(2 * per_t_macs * B * T),
        transcendentals=int(B * T * (C_out + 2 * L + 2)),
        bytes_accessed=int(x2.size * 4 + C_out * B * T * 4
                           + sum(int(w.size) * w.dtype.itemsize
                                 for w in weight_arrays)))

    out2 = pl.pallas_call(
        kernel,
        out_shape=jax.ShapeDtypeStruct((C_out, B * T), f32),
        grid_spec=grid_spec,
        compiler_params=pltpu.CompilerParams(
            dimension_semantics=("parallel", "arbitrary"),
            vmem_limit_bytes=vmem_limit),
        cost_estimate=ce,
    )(dil_idx, x2, bnw, bnvec, w1, hvec, wps, bps, wm, bm)

    return out2.reshape(C_out, B, T).transpose(1, 0, 2)


# ---------------------------------------------------------------------------
# Pure-JAX reference (same math incl. bf16 MXU inputs) for validation.
# ---------------------------------------------------------------------------
def tcn_reference(x, p, dilations, ksize):
    f32, bf16 = jnp.float32, jnp.bfloat16
    B, C, T = x.shape

    step_sum = x.sum(1)
    step_pow = (x * x).sum(1)
    cum_sum = jnp.cumsum(step_sum, axis=1)
    cum_pow = jnp.cumsum(step_pow, axis=1)
    cnt = (jnp.arange(T, dtype=f32) + 1.0) * C
    cum_mean = cum_sum / cnt
    cum_var = (cum_pow - 2.0 * cum_mean * cum_sum) / cnt + cum_mean ** 2
    xn = (x - cum_mean[:, None, :]) * jax.lax.rsqrt(cum_var + EPS)[:, None, :]
    xn = xn * p["cg"][None] + p["cb"][None]

    def mm(w, a):
        return jnp.einsum("oc,bct->bot", w.astype(bf16), a.astype(bf16),
                          preferred_element_type=f32)

    def gln(v, g, b):
        mean = v.mean(axis=(1, 2), keepdims=True)
        ex2 = (v * v).mean(axis=(1, 2), keepdims=True)
        rstd = jax.lax.rsqrt(ex2 - mean * mean + EPS)
        return (v - mean) * rstd * g[None] + b[None]

    out = mm(p["bnw"], xn) + p["bnb"][None]
    skip = jnp.zeros_like(out)

    for l, d in enumerate(dilations):
        pad = (ksize - 1) * d // 2
        h = mm(p["w1"][l], out) + p["b1"][l][None]
        h = jnp.where(h >= 0, h, p["a1"][l][None] * h)
        h = gln(h, p["g1"][l], p["be1"][l])

        hp = jnp.pad(h, ((0, 0), (0, 0), (pad, pad)))
        acc = jnp.zeros_like(h)
        for k in range(ksize):
            acc = acc + p["wd"][l][:, k:k + 1][None] * hp[:, :, k * d:k * d + T]
        acc = acc + p["bd"][l][None]
        acc = jnp.where(acc >= 0, acc, p["a2"][l][None] * acc)
        acc = gln(acc, p["g2"][l], p["be2"][l])

        res = mm(p["wp"][l], acc) + p["bp"][l][None]
        sk = mm(p["ws"][l], acc) + p["bs"][l][None]
        out = out + res
        skip = skip + sk

    y = jnp.where(skip >= 0, skip, p["pa"][None] * skip)
    y = mm(p["wm"], y) + p["bm"][None]
    return jax.nn.sigmoid(y)


def init_params(key, C_in, BN, H, K, C_out, L):
    ks = jax.random.split(key, 18)

    def nrm(k, shape, scale=0.1):
        return jax.random.normal(k, shape, jnp.float32) * scale

    return {
        "cg": 1.0 + nrm(ks[12], (C_in, 1)),
        "cb": nrm(ks[13], (C_in, 1)),
        "bnw": nrm(ks[0], (BN, C_in)),
        "bnb": nrm(ks[1], (BN, 1)),
        "w1": nrm(ks[2], (L, H, BN)),
        "b1": nrm(ks[3], (L, H, 1)),
        "g1": 1.0 + nrm(ks[14], (L, H, 1)),
        "be1": nrm(ks[15], (L, H, 1)),
        "wd": nrm(ks[4], (L, H, K)),
        "bd": nrm(ks[5], (L, H, 1)),
        "g2": 1.0 + nrm(ks[16], (L, H, 1)),
        "be2": nrm(ks[17], (L, H, 1)),
        "wp": nrm(ks[6], (L, BN, H)),
        "bp": nrm(ks[7], (L, BN, 1)),
        "ws": nrm(ks[8], (L, BN, H)),
        "bs": nrm(ks[9], (L, BN, 1)),
        "a1": jnp.full((L, 1, 1), 0.25, jnp.float32),     # PReLU init
        "a2": jnp.full((L, 1, 1), 0.25, jnp.float32),
        "pa": jnp.full((1, 1), 0.25, jnp.float32),
        "wm": nrm(ks[10], (C_out, BN)),
        "bm": nrm(ks[11], (C_out, 1)),
    }


if __name__ == "__main__":
    # Tcn hyperparameters (small, consistent with the module).
    B, C_in, BN, H, K, C_out = 4, 6, 8, 16, 3, 6
    block, layers = 2, 2
    T = 128
    L = block * layers
    dilations = [2 ** (i % layers) for i in range(L)]     # [1, 2, 1, 2]

    key = jax.random.PRNGKey(0)
    kx, kp = jax.random.split(key)
    x = jax.random.normal(kx, (B, C_in, T), jnp.float32)
    params = init_params(kp, C_in, BN, H, K, C_out, L)

    out = tcn_pallas(x, params, dilations, K)
    out = jax.block_until_ready(out)

    ref = tcn_reference(x, params, dilations, K)
    assert out.shape == (B, C_out, T)
    err = float(jnp.max(jnp.abs(out - ref)))
    assert err < 2e-2, f"Pallas vs reference mismatch: {err}"
    print("KERNEL_OK")
</pallas_src>

<mosaic_0001>
module attributes {stable_mosaic.version = 11 : i64} {
  func.func @tcn_kernel(%arg0: i32, %arg1: i32, %arg2: memref<4xi32, #tpu.memory_space<smem>>, %arg3: memref<6x512xf32, #tpu.memory_space<vmem>>, %arg4: memref<8x6xbf16, #tpu.memory_space<vmem>>, %arg5: memref<8x2xf32, #tpu.memory_space<vmem>>, %arg6: memref<1x16x8xbf16, #tpu.memory_space<vmem>>, %arg7: memref<1x16x9xf32, #tpu.memory_space<vmem>>, %arg8: memref<1x16x16xbf16, #tpu.memory_space<vmem>>, %arg9: memref<1x16x1xf32, #tpu.memory_space<vmem>>, %arg10: memref<6x8xbf16, #tpu.memory_space<vmem>>, %arg11: memref<6x1xf32, #tpu.memory_space<vmem>>, %arg12: memref<6x512xf32, #tpu.memory_space<vmem>>, %arg13: memref<8x512xf32, #tpu.memory_space<vmem>>, %arg14: memref<8x512xf32, #tpu.memory_space<vmem>>) attributes {dimension_semantics = [#tpu.dimension_semantics<parallel>, #tpu.dimension_semantics<arbitrary>], iteration_bounds = array<i64: 1, 4>, scalar_prefetch = 1 : i64, scratch_operands = 2 : i64, tpu.core_type = #tpu.core_type<tc>, window_params = [{transform_indices = @transform_0, window_bounds = array<i64: 6, 512>}, {pipeline_mode = #tpu.pipeline_mode<synchronous>, transform_indices = @transform_1, window_bounds = array<i64: 8, 6>}, {pipeline_mode = #tpu.pipeline_mode<synchronous>, transform_indices = @transform_2, window_bounds = array<i64: 8, 2>}, {transform_indices = @transform_3, window_bounds = array<i64: 1, 16, 8>}, {transform_indices = @transform_4, window_bounds = array<i64: 1, 16, 9>}, {transform_indices = @transform_5, window_bounds = array<i64: 1, 16, 16>}, {transform_indices = @transform_6, window_bounds = array<i64: 1, 16, 1>}, {pipeline_mode = #tpu.pipeline_mode<synchronous>, transform_indices = @transform_7, window_bounds = array<i64: 6, 8>}, {pipeline_mode = #tpu.pipeline_mode<synchronous>, transform_indices = @transform_8, window_bounds = array<i64: 6, 1>}, {transform_indices = @transform_9, window_bounds = array<i64: 6, 512>}]} {
    %0 = tpu.iota {dimensions = array<i32: 1>} : vector<1x128xi32>
    %1 = tpu.concatenate %0, %0, %0, %0 in 1 : vector<1x128xi32>, vector<1x128xi32>, vector<1x128xi32>, vector<1x128xi32> -> vector<1x512xi32>
    %2 = arith.sitofp %1 : vector<1x512xi32> to vector<1x512xf32>
    %3 = tpu.iota {dimensions = array<i32: 0>} : vector<512x4xi32>
    %4 = tpu.iota {dimensions = array<i32: 1>} : vector<512x4xi32>
    %c128_i32 = arith.constant 128 : i32
    %5 = vector.broadcast %c128_i32 : i32 to vector<512x4xi32>
    %6 = arith.muli %4, %5 : vector<512x4xi32>
    %7 = arith.cmpi sge, %3, %6 : vector<512x4xi32>
    %c128_i32_0 = arith.constant 128 : i32
    %8 = vector.broadcast %c128_i32_0 : i32 to vector<512x4xi32>
    %9 = arith.addi %6, %8 : vector<512x4xi32>
    %10 = arith.cmpi slt, %3, %9 : vector<512x4xi32>
    %11 = arith.andi %7, %10 : vector<512x4xi1>
    %12 = arith.extui %11 : vector<512x4xi1> to vector<512x4xi32>
    %13 = arith.sitofp %12 : vector<512x4xi32> to vector<512x4xf32>
    %14 = tpu.iota {dimensions = array<i32: 1>} : vector<4x512xi32>
    %15 = tpu.iota {dimensions = array<i32: 0>} : vector<4x512xi32>
    %c128_i32_1 = arith.constant 128 : i32
    %16 = vector.broadcast %c128_i32_1 : i32 to vector<4x512xi32>
    %17 = arith.muli %15, %16 : vector<4x512xi32>
    %18 = arith.cmpi sge, %14, %17 : vector<4x512xi32>
    %c128_i32_2 = arith.constant 128 : i32
    %19 = vector.broadcast %c128_i32_2 : i32 to vector<4x512xi32>
    %20 = arith.addi %17, %19 : vector<4x512xi32>
    %21 = arith.cmpi slt, %14, %20 : vector<4x512xi32>
    %22 = arith.andi %18, %21 : vector<4x512xi1>
    %23 = arith.extui %22 : vector<4x512xi1> to vector<4x512xi32>
    %24 = arith.sitofp %23 : vector<4x512xi32> to vector<4x512xf32>
    %c0_i32 = arith.constant 0 : i32
    %25 = arith.cmpi eq, %arg1, %c0_i32 : i32
    %26 = arith.extui %25 : i1 to i32
    %c0_i32_3 = arith.constant 0 : i32
    %27 = arith.cmpi ne, %26, %c0_i32_3 : i32
    scf.if %27 {
      %c0_43 = arith.constant 0 : index
      %c0_44 = arith.constant 0 : index
      %129 = vector.load %arg3[%c0_43, %c0_44] : memref<6x512xf32, #tpu.memory_space<vmem>>, vector<6x512xf32>
      %cst_45 = arith.constant dense<0.000000e+00> : vector<512xf32>
      %130 = vector.multi_reduction <add>, %129, %cst_45 [0] : vector<6x512xf32> to vector<512xf32>
      %131 = vector.shape_cast %130 : vector<512xf32> to vector<1x512xf32>
      %132 = arith.mulf %129, %129 : vector<6x512xf32>
      %cst_46 = arith.constant dense<0.000000e+00> : vector<512xf32>
      %133 = vector.multi_reduction <add>, %132, %cst_46 [0] : vector<6x512xf32> to vector<512xf32>
      %134 = vector.shape_cast %133 : vector<512xf32> to vector<1x512xf32>
      %135 = tpu.concatenate %131, %134 in 0 : vector<1x512xf32>, vector<1x512xf32> -> vector<2x512xf32>
      %c1_i32_47 = arith.constant 1 : i32
      %136 = tpu.dynamic_rotate %135 by %c1_i32_47 dim 1 : vector<2x512xf32>, i32 -> vector<2x512xf32>
      %c1_i32_48 = arith.constant 1 : i32
      %137 = vector.broadcast %c1_i32_48 : i32 to vector<1x512xi32>
      %138 = arith.cmpi sge, %1, %137 : vector<1x512xi32>
      %cst_49 = arith.constant 0.000000e+00 : f32
      %139 = vector.shape_cast %138 : vector<1x512xi1> to vector<1x512xi1>
      %140 = vector.broadcast %139 : vector<1x512xi1> to vector<2x512xi1>
      %141 = vector.broadcast %cst_49 : f32 to vector<2x512xf32>
      %142 = arith.select %140, %136, %141 : vector<2x512xi1>, vector<2x512xf32>
      %143 = arith.addf %135, %142 : vector<2x512xf32>
      %c2_i32 = arith.constant 2 : i32
      %144 = tpu.dynamic_rotate %143 by %c2_i32 dim 1 : vector<2x512xf32>, i32 -> vector<2x512xf32>
      %c2_i32_50 = arith.constant 2 : i32
      %145 = vector.broadcast %c2_i32_50 : i32 to vector<1x512xi32>
      %146 = arith.cmpi sge, %1, %145 : vector<1x512xi32>
      %cst_51 = arith.constant 0.000000e+00 : f32
      %147 = vector.shape_cast %146 : vector<1x512xi1> to vector<1x512xi1>
      %148 = vector.broadcast %147 : vector<1x512xi1> to vector<2x512xi1>
      %149 = vector.broadcast %cst_51 : f32 to vector<2x512xf32>
      %150 = arith.select %148, %144, %149 : vector<2x512xi1>, vector<2x512xf32>
      %151 = arith.addf %143, %150 : vector<2x512xf32>
      %c4_i32 = arith.constant 4 : i32
      %152 = tpu.dynamic_rotate %151 by %c4_i32 dim 1 : vector<2x512xf32>, i32 -> vector<2x512xf32>
      %c4_i32_52 = arith.constant 4 : i32
      %153 = vector.broadcast %c4_i32_52 : i32 to vector<1x512xi32>
      %154 = arith.cmpi sge, %1, %153 : vector<1x512xi32>
      %cst_53 = arith.constant 0.000000e+00 : f32
      %155 = vector.shape_cast %154 : vector<1x512xi1> to vector<1x512xi1>
      %156 = vector.broadcast %155 : vector<1x512xi1> to vector<2x512xi1>
      %157 = vector.broadcast %cst_53 : f32 to vector<2x512xf32>
      %158 = arith.select %156, %152, %157 : vector<2x512xi1>, vector<2x512xf32>
      %159 = arith.addf %151, %158 : vector<2x512xf32>
      %c8_i32 = arith.constant 8 : i32
      %160 = tpu.dynamic_rotate %159 by %c8_i32 dim 1 : vector<2x512xf32>, i32 -> vector<2x512xf32>
      %c8_i32_54 = arith.constant 8 : i32
      %161 = vector.broadcast %c8_i32_54 : i32 to vector<1x512xi32>
      %162 = arith.cmpi sge, %1, %161 : vector<1x512xi32>
      %cst_55 = arith.constant 0.000000e+00 : f32
      %163 = vector.shape_cast %162 : vector<1x512xi1> to vector<1x512xi1>
      %164 = vector.broadcast %163 : vector<1x512xi1> to vector<2x512xi1>
      %165 = vector.broadcast %cst_55 : f32 to vector<2x512xf32>
      %166 = arith.select %164, %160, %165 : vector<2x512xi1>, vector<2x512xf32>
      %167 = arith.addf %159, %166 : vector<2x512xf32>
      %c16_i32 = arith.constant 16 : i32
      %168 = tpu.dynamic_rotate %167 by %c16_i32 dim 1 : vector<2x512xf32>, i32 -> vector<2x512xf32>
      %c16_i32_56 = arith.constant 16 : i32
      %169 = vector.broadcast %c16_i32_56 : i32 to vector<1x512xi32>
      %170 = arith.cmpi sge, %1, %169 : vector<1x512xi32>
      %cst_57 = arith.constant 0.000000e+00 : f32
      %171 = vector.shape_cast %170 : vector<1x512xi1> to vector<1x512xi1>
      %172 = vector.broadcast %171 : vector<1x512xi1> to vector<2x512xi1>
      %173 = vector.broadcast %cst_57 : f32 to vector<2x512xf32>
      %174 = arith.select %172, %168, %173 : vector<2x512xi1>, vector<2x512xf32>
      %175 = arith.addf %167, %174 : vector<2x512xf32>
      %c32_i32 = arith.constant 32 : i32
      %176 = tpu.dynamic_rotate %175 by %c32_i32 dim 1 : vector<2x512xf32>, i32 -> vector<2x512xf32>
      %c32_i32_58 = arith.constant 32 : i32
      %177 = vector.broadcast %c32_i32_58 : i32 to vector<1x512xi32>
      %178 = arith.cmpi sge, %1, %177 : vector<1x512xi32>
      %cst_59 = arith.constant 0.000000e+00 : f32
      %179 = vector.shape_cast %178 : vector<1x512xi1> to vector<1x512xi1>
      %180 = vector.broadcast %179 : vector<1x512xi1> to vector<2x512xi1>
      %181 = vector.broadcast %cst_59 : f32 to vector<2x512xf32>
      %182 = arith.select %180, %176, %181 : vector<2x512xi1>, vector<2x512xf32>
      %183 = arith.addf %175, %182 : vector<2x512xf32>
      %c64_i32 = arith.constant 64 : i32
      %184 = tpu.dynamic_rotate %183 by %c64_i32 dim 1 : vector<2x512xf32>, i32 -> vector<2x512xf32>
      %c64_i32_60 = arith.constant 64 : i32
      %185 = vector.broadcast %c64_i32_60 : i32 to vector<1x512xi32>
      %186 = arith.cmpi sge, %1, %185 : vector<1x512xi32>
      %cst_61 = arith.constant 0.000000e+00 : f32
      %187 = vector.shape_cast %186 : vector<1x512xi1> to vector<1x512xi1>
      %188 = vector.broadcast %187 : vector<1x512xi1> to vector<2x512xi1>
      %189 = vector.broadcast %cst_61 : f32 to vector<2x512xf32>
      %190 = arith.select %188, %184, %189 : vector<2x512xi1>, vector<2x512xf32>
      %191 = arith.addf %183, %190 : vector<2x512xf32>
      %cst_62 = arith.constant 1.000000e+00 : f32
      %192 = vector.broadcast %cst_62 : f32 to vector<1x512xf32>
      %193 = arith.addf %2, %192 : vector<1x512xf32>
      %cst_63 = arith.constant 6.000000e+00 : f32
      %194 = vector.broadcast %cst_63 : f32 to vector<1x512xf32>
      %195 = arith.mulf %193, %194 : vector<1x512xf32>
      %196 = tpu.reciprocal %195 {approx = true} : vector<1x512xf32> -> vector<1x512xf32>
      %197 = vector.extract_strided_slice %191 {offsets = [0, 0], sizes = [1, 512], strides = [1, 1]} : vector<2x512xf32> to vector<1x512xf32>
      %198 = vector.extract_strided_slice %191 {offsets = [1, 0], sizes = [1, 512], strides = [1, 1]} : vector<2x512xf32> to vector<1x512xf32>
      %199 = arith.mulf %197, %196 : vector<1x512xf32>
      %cst_64 = arith.constant 2.000000e+00 : f32
      %200 = vector.broadcast %cst_64 : f32 to vector<1x512xf32>
      %201 = arith.mulf %200, %199 : vector<1x512xf32>
      %202 = arith.mulf %201, %197 : vector<1x512xf32>
      %203 = arith.subf %198, %202 : vector<1x512xf32>
      %204 = arith.mulf %203, %196 : vector<1x512xf32>
      %205 = arith.mulf %199, %199 : vector<1x512xf32>
      %206 = arith.addf %204, %205 : vector<1x512xf32>
      %207 = vector.broadcast %199 : vector<1x512xf32> to vector<6x512xf32>
      %208 = arith.subf %129, %207 : vector<6x512xf32>
      %cst_65 = arith.constant 9.99999993E-9 : f32
      %209 = vector.broadcast %cst_65 : f32 to vector<1x512xf32>
      %210 = arith.addf %206, %209 : vector<1x512xf32>
      %211 = math.rsqrt %210 : vector<1x512xf32>
      %212 = vector.broadcast %211 : vector<1x512xf32> to vector<6x512xf32>
      %213 = arith.mulf %208, %212 : vector<6x512xf32>
      %c0_66 = arith.constant 0 : index
      %c0_67 = arith.constant 0 : index
      %214 = vector.load %arg4[%c0_66, %c0_67] : memref<8x6xbf16, #tpu.memory_space<vmem>>, vector<8x6xbf16>
      %215 = arith.truncf %213 : vector<6x512xf32> to vector<6x512xbf16>
      %cst_68 = arith.constant dense<0.000000e+00> : vector<8x512xf32>
      %216 = tpu.matmul %214, %215, %cst_68 {dimension_numbers = #tpu.dot_dimension_numbers<[1], [0], [0], [1], [0, 0, 1, 1], [], []>} : vector<8x6xbf16>, vector<6x512xbf16>, vector<8x512xf32> -> vector<8x512xf32>
      %c0_69 = arith.constant 0 : index
      %c0_70 = arith.constant 0 : index
      %217 = vector.load %arg5[%c0_69, %c0_70] : memref<8x2xf32, #tpu.memory_space<vmem>>, vector<8x1xf32>
      %218 = vector.broadcast %217 : vector<8x1xf32> to vector<8x512xf32>
      %219 = arith.addf %216, %218 : vector<8x512xf32>
      %c0_71 = arith.constant 0 : index
      %c0_72 = arith.constant 0 : index
      %220 = vector.load %arg13[%c0_71, %c0_72] : memref<8x512xf32, #tpu.memory_space<vmem>>, vector<8x512xf32>
      tpu.vector_store %arg13[%c0_71, %c0_72], %219 {strides = array<i32>} : memref<8x512xf32, #tpu.memory_space<vmem>>, vector<8x512xf32>,
      %cst_73 = arith.constant 0.000000e+00 : f32
      %221 = vector.broadcast %cst_73 : f32 to vector<8x512xf32>
      %c0_74 = arith.constant 0 : index
      %c0_75 = arith.constant 0 : index
      %222 = vector.load %arg14[%c0_74, %c0_75] : memref<8x512xf32, #tpu.memory_space<vmem>>, vector<8x512xf32>
      tpu.vector_store %arg14[%c0_74, %c0_75], %221 {strides = array<i32>} : memref<8x512xf32, #tpu.memory_space<vmem>>, vector<8x512xf32>,
    } else {
    }
    %c0 = arith.constant 0 : index
    %c0_4 = arith.constant 0 : index
    %c0_5 = arith.constant 0 : index
    %28 = vector.load %arg7[%c0, %c0_4, %c0_5] : memref<1x16x9xf32, #tpu.memory_space<vmem>>, vector<1x16x9xf32>
    %29 = vector.shape_cast %28 : vector<1x16x9xf32> to vector<16x9xf32>
    %30 = vector.extract_strided_slice %29 {offsets = [0, 0], sizes = [16, 1], strides = [1, 1]} : vector<16x9xf32> to vector<16x1xf32>
    %31 = vector.extract_strided_slice %29 {offsets = [0, 1], sizes = [16, 1], strides = [1, 1]} : vector<16x9xf32> to vector<16x1xf32>
    %32 = vector.extract_strided_slice %29 {offsets = [0, 2], sizes = [16, 1], strides = [1, 1]} : vector<16x9xf32> to vector<16x1xf32>
    %33 = vector.extract_strided_slice %29 {offsets = [0, 3], sizes = [16, 1], strides = [1, 1]} : vector<16x9xf32> to vector<16x1xf32>
    %34 = vector.extract_strided_slice %29 {offsets = [0, 4], sizes = [16, 1], strides = [1, 1]} : vector<16x9xf32> to vector<16x1xf32>
    %35 = vector.extract_strided_slice %29 {offsets = [0, 5], sizes = [16, 1], strides = [1, 1]} : vector<16x9xf32> to vector<16x1xf32>
    %c0_6 = arith.constant 0 : index
    %c0_7 = arith.constant 0 : index
    %36 = vector.load %arg13[%c0_6, %c0_7] : memref<8x512xf32, #tpu.memory_space<vmem>>, vector<8x512xf32>
    %c0_8 = arith.constant 0 : index
    %c0_9 = arith.constant 0 : index
    %c0_10 = arith.constant 0 : index
    %37 = vector.load %arg6[%c0_8, %c0_9, %c0_10] : memref<1x16x8xbf16, #tpu.memory_space<vmem>>, vector<1x16x8xbf16>
    %38 = vector.shape_cast %37 : vector<1x16x8xbf16> to vector<16x8xbf16>
    %39 = arith.truncf %36 : vector<8x512xf32> to vector<8x512xbf16>
    %cst = arith.constant dense<0.000000e+00> : vector<16x512xf32>
    %40 = tpu.matmul %38, %39, %cst {dimension_numbers = #tpu.dot_dimension_numbers<[1], [0], [0], [1], [0, 0, 1, 1], [], []>} : vector<16x8xbf16>, vector<8x512xbf16>, vector<16x512xf32> -> vector<16x512xf32>
    %41 = vector.broadcast %30 : vector<16x1xf32> to vector<16x512xf32>
    %42 = arith.addf %40, %41 : vector<16x512xf32>
    %cst_11 = arith.constant 0.000000e+00 : f32
    %43 = vector.broadcast %cst_11 : f32 to vector<16x512xf32>
    %44 = arith.cmpf oge, %42, %43 : vector<16x512xf32>
    %45 = vector.broadcast %34 : vector<16x1xf32> to vector<16x512xf32>
    %46 = arith.mulf %45, %42 : vector<16x512xf32>
    %47 = arith.select %44, %42, %46 : vector<16x512xi1>, vector<16x512xf32>
    %cst_12 = arith.constant dense<0.000000e+00> : vector<512xf32>
    %48 = vector.multi_reduction <add>, %47, %cst_12 [0] : vector<16x512xf32> to vector<512xf32>
    %49 = vector.shape_cast %48 : vector<512xf32> to vector<1x512xf32>
    %50 = arith.mulf %47, %47 : vector<16x512xf32>
    %cst_13 = arith.constant dense<0.000000e+00> : vector<512xf32>
    %51 = vector.multi_reduction <add>, %50, %cst_13 [0] : vector<16x512xf32> to vector<512xf32>
    %52 = vector.shape_cast %51 : vector<512xf32> to vector<1x512xf32>
    %53 = tpu.concatenate %49, %52 in 0 : vector<1x512xf32>, vector<1x512xf32> -> vector<2x512xf32>
    %cst_14 = arith.constant dense<0.000000e+00> : vector<2x4xf32>
    %54 = tpu.matmul %53, %13, %cst_14 {dimension_numbers = #tpu.dot_dimension_numbers<[1], [0], [0], [1], [0, 0, 1, 1], [], []>} : vector<2x512xf32>, vector<512x4xf32>, vector<2x4xf32> -> vector<2x4xf32>
    %cst_15 = arith.constant dense<0.000000e+00> : vector<2x512xf32>
    %55 = tpu.matmul %54, %24, %cst_15 {dimension_numbers = #tpu.dot_dimension_numbers<[1], [0], [0], [1], [0, 0, 1, 1], [], []>} : vector<2x4xf32>, vector<4x512xf32>, vector<2x512xf32> -> vector<2x512xf32>
    %56 = vector.extract_strided_slice %55 {offsets = [0, 0], sizes = [1, 512], strides = [1, 1]} : vector<2x512xf32> to vector<1x512xf32>
    %cst_16 = arith.constant 4.8828125E-4 : f32
    %57 = vector.broadcast %cst_16 : f32 to vector<1x512xf32>
    %58 = arith.mulf %56, %57 : vector<1x512xf32>
    %59 = vector.extract_strided_slice %55 {offsets = [1, 0], sizes = [1, 512], strides = [1, 1]} : vector<2x512xf32> to vector<1x512xf32>
    %cst_17 = arith.constant 4.8828125E-4 : f32
    %60 = vector.broadcast %cst_17 : f32 to vector<1x512xf32>
    %61 = arith.mulf %59, %60 : vector<1x512xf32>
    %62 = arith.mulf %58, %58 : vector<1x512xf32>
    %63 = arith.subf %61, %62 : vector<1x512xf32>
    %cst_18 = arith.constant 9.99999993E-9 : f32
    %64 = vector.broadcast %cst_18 : f32 to vector<1x512xf32>
    %65 = arith.addf %63, %64 : vector<1x512xf32>
    %66 = math.rsqrt %65 : vector<1x512xf32>
    %67 = vector.broadcast %58 : vector<1x512xf32> to vector<16x512xf32>
    %68 = arith.subf %47, %67 : vector<16x512xf32>
    %69 = vector.broadcast %66 : vector<1x512xf32> to vector<16x512xf32>
    %70 = arith.mulf %68, %69 : vector<16x512xf32>
    %71 = vector.broadcast %32 : vector<16x1xf32> to vector<16x512xf32>
    %72 = arith.mulf %70, %71 : vector<16x512xf32>
    %73 = vector.broadcast %33 : vector<16x1xf32> to vector<16x512xf32>
    %74 = arith.addf %72, %73 : vector<16x512xf32>
    %75 = arith.index_cast %arg1 : i32 to index
    %76 = memref.load %arg2[%75] : memref<4xi32, #tpu.memory_space<smem>>
    %c0_i32_19 = arith.constant 0 : i32
    %c1_i32 = arith.constant 1 : i32
    %77 = arith.maxsi %76, %c0_i32_19 : i32
    %78 = arith.minsi %77, %c1_i32 : i32
    %c0_i32_20 = arith.constant 0 : i32
    %79 = arith.cmpi ne, %78, %c0_i32_20 : i32
    %80 = scf.if %79 -> (vector<16x512xf32>) {
      %cst_43 = arith.constant 0.000000e+00 : f32
      %129 = vector.broadcast %cst_43 : f32 to vector<16x512xf32>
      %130 = vector.extract_strided_slice %29 {offsets = [0, 6], sizes = [16, 1], strides = [1, 1]} : vector<16x9xf32> to vector<16x1xf32>
      %c-2_i32 = arith.constant -2 : i32
      %131 = vector.broadcast %c-2_i32 : i32 to vector<1x512xi32>
      %132 = arith.addi %1, %131 : vector<1x512xi32>
      %c0_i32_44 = arith.constant 0 : i32
      %133 = vector.broadcast %c0_i32_44 : i32 to vector<1x512xi32>
      %134 = arith.cmpi sge, %132, %133 : vector<1x512xi32>
      %c-2_i32_45 = arith.constant -2 : i32
      %135 = vector.broadcast %c-2_i32_45 : i32 to vector<1x512xi32>
      %136 = arith.addi %1, %135 : vector<1x512xi32>
      %c128_i32_46 = arith.constant 128 : i32
      %137 = vector.broadcast %c128_i32_46 : i32 to vector<1x512xi32>
      %138 = arith.cmpi slt, %136, %137 : vector<1x512xi32>
      %139 = arith.andi %134, %138 : vector<1x512xi1>
      %140 = arith.extui %139 : vector<1x512xi1> to vector<1x512xi32>
      %141 = arith.sitofp %140 : vector<1x512xi32> to vector<1x512xf32>
      %c2_i32 = arith.constant 2 : i32
      %142 = tpu.dynamic_rotate %74 by %c2_i32 dim 1 : vector<16x512xf32>, i32 -> vector<16x512xf32>
      %143 = vector.broadcast %141 : vector<1x512xf32> to vector<16x512xf32>
      %144 = arith.mulf %142, %143 : vector<16x512xf32>
      %145 = vector.broadcast %130 : vector<16x1xf32> to vector<16x512xf32>
      %146 = arith.mulf %145, %144 : vector<16x512xf32>
      %147 = arith.addf %129, %146 : vector<16x512xf32>
      %148 = vector.extract_strided_slice %29 {offsets = [0, 7], sizes = [16, 1], strides = [1, 1]} : vector<16x9xf32> to vector<16x1xf32>
      %149 = vector.broadcast %148 : vector<16x1xf32> to vector<16x512xf32>
      %150 = arith.mulf %149, %74 : vector<16x512xf32>
      %151 = arith.addf %147, %150 : vector<16x512xf32>
      %152 = vector.extract_strided_slice %29 {offsets = [0, 8], sizes = [16, 1], strides = [1, 1]} : vector<16x9xf32> to vector<16x1xf32>
      %c2_i32_47 = arith.constant 2 : i32
      %153 = vector.broadcast %c2_i32_47 : i32 to vector<1x512xi32>
      %154 = arith.addi %1, %153 : vector<1x512xi32>
      %c0_i32_48 = arith.constant 0 : i32
      %155 = vector.broadcast %c0_i32_48 : i32 to vector<1x512xi32>
      %156 = arith.cmpi sge, %154, %155 : vector<1x512xi32>
      %c2_i32_49 = arith.constant 2 : i32
      %157 = vector.broadcast %c2_i32_49 : i32 to vector<1x512xi32>
      %158 = arith.addi %1, %157 : vector<1x512xi32>
      %c128_i32_50 = arith.constant 128 : i32
      %159 = vector.broadcast %c128_i32_50 : i32 to vector<1x512xi32>
      %160 = arith.cmpi slt, %158, %159 : vector<1x512xi32>
      %161 = arith.andi %156, %160 : vector<1x512xi1>
      %162 = arith.extui %161 : vector<1x512xi1> to vector<1x512xi32>
      %163 = arith.sitofp %162 : vector<1x512xi32> to vector<1x512xf32>
      %c510_i32 = arith.constant 510 : i32
      %164 = tpu.dynamic_rotate %74 by %c510_i32 dim 1 : vector<16x512xf32>, i32 -> vector<16x512xf32>
      %165 = vector.broadcast %163 : vector<1x512xf32> to vector<16x512xf32>
      %166 = arith.mulf %164, %165 : vector<16x512xf32>
      %167 = vector.broadcast %152 : vector<16x1xf32> to vector<16x512xf32>
      %168 = arith.mulf %167, %166 : vector<16x512xf32>
      %169 = arith.addf %151, %168 : vector<16x512xf32>
      scf.yield %169 : vector<16x512xf32>
    } else {
      %cst_43 = arith.constant 0.000000e+00 : f32
      %129 = vector.broadcast %cst_43 : f32 to vector<16x512xf32>
      %130 = vector.extract_strided_slice %29 {offsets = [0, 6], sizes = [16, 1], strides = [1, 1]} : vector<16x9xf32> to vector<16x1xf32>
      %c-1_i32 = arith.constant -1 : i32
      %131 = vector.broadcast %c-1_i32 : i32 to vector<1x512xi32>
      %132 = arith.addi %1, %131 : vector<1x512xi32>
      %c0_i32_44 = arith.constant 0 : i32
      %133 = vector.broadcast %c0_i32_44 : i32 to vector<1x512xi32>
      %134 = arith.cmpi sge, %132, %133 : vector<1x512xi32>
      %c-1_i32_45 = arith.constant -1 : i32
      %135 = vector.broadcast %c-1_i32_45 : i32 to vector<1x512xi32>
      %136 = arith.addi %1, %135 : vector<1x512xi32>
      %c128_i32_46 = arith.constant 128 : i32
      %137 = vector.broadcast %c128_i32_46 : i32 to vector<1x512xi32>
      %138 = arith.cmpi slt, %136, %137 : vector<1x512xi32>
      %139 = arith.andi %134, %138 : vector<1x512xi1>
      %140 = arith.extui %139 : vector<1x512xi1> to vector<1x512xi32>
      %141 = arith.sitofp %140 : vector<1x512xi32> to vector<1x512xf32>
      %c1_i32_47 = arith.constant 1 : i32
      %142 = tpu.dynamic_rotate %74 by %c1_i32_47 dim 1 : vector<16x512xf32>, i32 -> vector<16x512xf32>
      %143 = vector.broadcast %141 : vector<1x512xf32> to vector<16x512xf32>
      %144 = arith.mulf %142, %143 : vector<16x512xf32>
      %145 = vector.broadcast %130 : vector<16x1xf32> to vector<16x512xf32>
      %146 = arith.mulf %145, %144 : vector<16x512xf32>
      %147 = arith.addf %129, %146 : vector<16x512xf32>
      %148 = vector.extract_strided_slice %29 {offsets = [0, 7], sizes = [16, 1], strides = [1, 1]} : vector<16x9xf32> to vector<16x1xf32>
      %149 = vector.broadcast %148 : vector<16x1xf32> to vector<16x512xf32>
      %150 = arith.mulf %149, %74 : vector<16x512xf32>
      %151 = arith.addf %147, %150 : vector<16x512xf32>
      %152 = vector.extract_strided_slice %29 {offsets = [0, 8], sizes = [16, 1], strides = [1, 1]} : vector<16x9xf32> to vector<16x1xf32>
      %c1_i32_48 = arith.constant 1 : i32
      %153 = vector.broadcast %c1_i32_48 : i32 to vector<1x512xi32>
      %154 = arith.addi %1, %153 : vector<1x512xi32>
      %c0_i32_49 = arith.constant 0 : i32
      %155 = vector.broadcast %c0_i32_49 : i32 to vector<1x512xi32>
      %156 = arith.cmpi sge, %154, %155 : vector<1x512xi32>
      %c1_i32_50 = arith.constant 1 : i32
      %157 = vector.broadcast %c1_i32_50 : i32 to vector<1x512xi32>
      %158 = arith.addi %1, %157 : vector<1x512xi32>
      %c128_i32_51 = arith.constant 128 : i32
      %159 = vector.broadcast %c128_i32_51 : i32 to vector<1x512xi32>
      %160 = arith.cmpi slt, %158, %159 : vector<1x512xi32>
      %161 = arith.andi %156, %160 : vector<1x512xi1>
      %162 = arith.extui %161 : vector<1x512xi1> to vector<1x512xi32>
      %163 = arith.sitofp %162 : vector<1x512xi32> to vector<1x512xf32>
      %c511_i32 = arith.constant 511 : i32
      %164 = tpu.dynamic_rotate %74 by %c511_i32 dim 1 : vector<16x512xf32>, i32 -> vector<16x512xf32>
      %165 = vector.broadcast %163 : vector<1x512xf32> to vector<16x512xf32>
      %166 = arith.mulf %164, %165 : vector<16x512xf32>
      %167 = vector.broadcast %152 : vector<16x1xf32> to vector<16x512xf32>
      %168 = arith.mulf %167, %166 : vector<16x512xf32>
      %169 = arith.addf %151, %168 : vector<16x512xf32>
      scf.yield %169 : vector<16x512xf32>
    }
    %81 = vector.broadcast %31 : vector<16x1xf32> to vector<16x512xf32>
    %82 = arith.addf %80, %81 : vector<16x512xf32>
    %cst_21 = arith.constant 0.000000e+00 : f32
    %83 = vector.broadcast %cst_21 : f32 to vector<16x512xf32>
    %84 = arith.cmpf oge, %82, %83 : vector<16x512xf32>
    %85 = vector.broadcast %35 : vector<16x1xf32> to vector<16x512xf32>
    %86 = arith.mulf %85, %82 : vector<16x512xf32>
    %87 = arith.select %84, %82, %86 : vector<16x512xi1>, vector<16x512xf32>
    %cst_22 = arith.constant dense<0.000000e+00> : vector<512xf32>
    %88 = vector.multi_reduction <add>, %87, %cst_22 [0] : vector<16x512xf32> to vector<512xf32>
    %89 = vector.shape_cast %88 : vector<512xf32> to vector<1x512xf32>
    %90 = arith.mulf %87, %87 : vector<16x512xf32>
    %cst_23 = arith.constant dense<0.000000e+00> : vector<512xf32>
    %91 = vector.multi_reduction <add>, %90, %cst_23 [0] : vector<16x512xf32> to vector<512xf32>
    %92 = vector.shape_cast %91 : vector<512xf32> to vector<1x512xf32>
    %93 = tpu.concatenate %89, %92 in 0 : vector<1x512xf32>, vector<1x512xf32> -> vector<2x512xf32>
    %cst_24 = arith.constant dense<0.000000e+00> : vector<2x4xf32>
    %94 = tpu.matmul %93, %13, %cst_24 {dimension_numbers = #tpu.dot_dimension_numbers<[1], [0], [0], [1], [0, 0, 1, 1], [], []>} : vector<2x512xf32>, vector<512x4xf32>, vector<2x4xf32> -> vector<2x4xf32>
    %cst_25 = arith.constant dense<0.000000e+00> : vector<2x512xf32>
    %95 = tpu.matmul %94, %24, %cst_25 {dimension_numbers = #tpu.dot_dimension_numbers<[1], [0], [0], [1], [0, 0, 1, 1], [], []>} : vector<2x4xf32>, vector<4x512xf32>, vector<2x512xf32> -> vector<2x512xf32>
    %96 = vector.extract_strided_slice %95 {offsets = [0, 0], sizes = [1, 512], strides = [1, 1]} : vector<2x512xf32> to vector<1x512xf32>
    %cst_26 = arith.constant 4.8828125E-4 : f32
    %97 = vector.broadcast %cst_26 : f32 to vector<1x512xf32>
    %98 = arith.mulf %96, %97 : vector<1x512xf32>
    %99 = vector.extract_strided_slice %95 {offsets = [1, 0], sizes = [1, 512], strides = [1, 1]} : vector<2x512xf32> to vector<1x512xf32>
    %cst_27 = arith.constant 4.8828125E-4 : f32
    %100 = vector.broadcast %cst_27 : f32 to vector<1x512xf32>
    %101 = arith.mulf %99, %100 : vector<1x512xf32>
    %102 = arith.mulf %98, %98 : vector<1x512xf32>
    %103 = arith.subf %101, %102 : vector<1x512xf32>
    %cst_28 = arith.constant 9.99999993E-9 : f32
    %104 = vector.broadcast %cst_28 : f32 to vector<1x512xf32>
    %105 = arith.addf %103, %104 : vector<1x512xf32>
    %106 = math.rsqrt %105 : vector<1x512xf32>
    %107 = vector.broadcast %98 : vector<1x512xf32> to vector<16x512xf32>
    %108 = arith.subf %87, %107 : vector<16x512xf32>
    %109 = vector.broadcast %106 : vector<1x512xf32> to vector<16x512xf32>
    %110 = arith.mulf %108, %109 : vector<16x512xf32>
    %c0_29 = arith.constant 0 : index
    %c0_30 = arith.constant 0 : index
    %c0_31 = arith.constant 0 : index
    %111 = vector.load %arg8[%c0_29, %c0_30, %c0_31] : memref<1x16x16xbf16, #tpu.memory_space<vmem>>, vector<1x16x16xbf16>
    %112 = vector.shape_cast %111 : vector<1x16x16xbf16> to vector<16x16xbf16>
    %113 = arith.truncf %110 : vector<16x512xf32> to vector<16x512xbf16>
    %cst_32 = arith.constant dense<0.000000e+00> : vector<16x512xf32>
    %114 = tpu.matmul %112, %113, %cst_32 {dimension_numbers = #tpu.dot_dimension_numbers<[1], [0], [0], [1], [0, 0, 1, 1], [], []>} : vector<16x16xbf16>, vector<16x512xbf16>, vector<16x512xf32> -> vector<16x512xf32>
    %c0_33 = arith.constant 0 : index
    %c0_34 = arith.constant 0 : index
    %c0_35 = arith.constant 0 : index
    %115 = vector.load %arg9[%c0_33, %c0_34, %c0_35] : memref<1x16x1xf32, #tpu.memory_space<vmem>>, vector<1x16x1xf32>
    %116 = vector.shape_cast %115 : vector<1x16x1xf32> to vector<16x1xf32>
    %117 = vector.broadcast %116 : vector<16x1xf32> to vector<16x512xf32>
    %118 = arith.addf %114, %117 : vector<16x512xf32>
    %119 = vector.extract_strided_slice %118 {offsets = [0, 0], sizes = [8, 512], strides = [1, 1]} : vector<16x512xf32> to vector<8x512xf32>
    %120 = arith.addf %36, %119 : vector<8x512xf32>
    %c0_36 = arith.constant 0 : index
    %c0_37 = arith.constant 0 : index
    %121 = vector.load %arg13[%c0_36, %c0_37] : memref<8x512xf32, #tpu.memory_space<vmem>>, vector<8x512xf32>
    tpu.vector_store %arg13[%c0_36, %c0_37], %120 {strides = array<i32>} : memref<8x512xf32, #tpu.memory_space<vmem>>, vector<8x512xf32>,
    %c0_38 = arith.constant 0 : index
    %c0_39 = arith.constant 0 : index
    %122 = vector.load %arg14[%c0_38, %c0_39] : memref<8x512xf32, #tpu.memory_space<vmem>>, vector<8x512xf32>
    %123 = vector.extract_strided_slice %118 {offsets = [8, 0], sizes = [8, 512], strides = [1, 1]} : vector<16x512xf32> to vector<8x512xf32>
    %124 = arith.addf %122, %123 : vector<8x512xf32>
    %c0_40 = arith.constant 0 : index
    %c0_41 = arith.constant 0 : index
    %125 = vector.load %arg14[%c0_40, %c0_41] : memref<8x512xf32, #tpu.memory_space<vmem>>, vector<8x512xf32>
    tpu.vector_store %arg14[%c0_40, %c0_41], %124 {strides = array<i32>} : memref<8x512xf32, #tpu.memory_space<vmem>>, vector<8x512xf32>,
    %c3_i32 = arith.constant 3 : i32
    %126 = arith.cmpi eq, %arg1, %c3_i32 : i32
    %127 = arith.extui %126 : i1 to i32
    %c0_i32_42 = arith.constant 0 : i32
    %128 = arith.cmpi ne, %127, %c0_i32_42 : i32
    scf.if %128 {
      %c0_43 = arith.constant 0 : index
      %c1 = arith.constant 1 : index
      %129 = vector.load %arg5[%c0_43, %c1] : memref<8x2xf32, #tpu.memory_space<vmem>>, vector<8x1xf32>
      %c0_44 = arith.constant 0 : index
      %c0_45 = arith.constant 0 : index
      %130 = vector.load %arg14[%c0_44, %c0_45] : memref<8x512xf32, #tpu.memory_space<vmem>>, vector<8x512xf32>
      %cst_46 = arith.constant 0.000000e+00 : f32
      %131 = vector.broadcast %cst_46 : f32 to vector<8x512xf32>
      %132 = arith.cmpf oge, %130, %131 : vector<8x512xf32>
      %133 = vector.broadcast %129 : vector<8x1xf32> to vector<8x512xf32>
      %134 = arith.mulf %133, %130 : vector<8x512xf32>
      %135 = arith.select %132, %130, %134 : vector<8x512xi1>, vector<8x512xf32>
      %c0_47 = arith.constant 0 : index
      %c0_48 = arith.constant 0 : index
      %136 = vector.load %arg10[%c0_47, %c0_48] : memref<6x8xbf16, #tpu.memory_space<vmem>>, vector<6x8xbf16>
      %137 = arith.truncf %135 : vector<8x512xf32> to vector<8x512xbf16>
      %cst_49 = arith.constant dense<0.000000e+00> : vector<6x512xf32>
      %138 = tpu.matmul %136, %137, %cst_49 {dimension_numbers = #tpu.dot_dimension_numbers<[1], [0], [0], [1], [0, 0, 1, 1], [], []>} : vector<6x8xbf16>, vector<8x512xbf16>, vector<6x512xf32> -> vector<6x512xf32>
      %c0_50 = arith.constant 0 : index
      %c0_51 = arith.constant 0 : index
      %139 = vector.load %arg11[%c0_50, %c0_51] : memref<6x1xf32, #tpu.memory_space<vmem>>, vector<6x1xf32>
      %140 = vector.broadcast %139 : vector<6x1xf32> to vector<6x512xf32>
      %141 = arith.addf %138, %140 : vector<6x512xf32>
      %142 = arith.negf %141 : vector<6x512xf32>
      %143 = math.exp %142 : vector<6x512xf32>
      %cst_52 = arith.constant 1.000000e+00 : f32
      %144 = vector.broadcast %cst_52 : f32 to vector<6x512xf32>
      %145 = arith.addf %144, %143 : vector<6x512xf32>
      %146 = arith.divf %144, %145 : vector<6x512xf32>
      %c0_53 = arith.constant 0 : index
      %c0_54 = arith.constant 0 : index
      %147 = vector.load %arg12[%c0_53, %c0_54] : memref<6x512xf32, #tpu.memory_space<vmem>>, vector<6x512xf32>
      tpu.vector_store %arg12[%c0_53, %c0_54], %146 {strides = array<i32>} : memref<6x512xf32, #tpu.memory_space<vmem>>, vector<6x512xf32>,
    } else {
    }
    return
  }
  func.func @transform_0(%arg0: i32, %arg1: i32, %arg2: memref<4xi32, #tpu.memory_space<smem>>) -> (i32, i32) {
    %c0_i32 = arith.constant 0 : i32
    %c0_i32_0 = arith.constant 0 : i32
    return %c0_i32, %arg0 : i32, i32
  }
  func.func @transform_1(%arg0: i32, %arg1: i32, %arg2: memref<4xi32, #tpu.memory_space<smem>>) -> (i32, i32) {
    %c0_i32 = arith.constant 0 : i32
    %c0_i32_0 = arith.constant 0 : i32
    %c0_i32_1 = arith.constant 0 : i32
    return %c0_i32, %c0_i32_0 : i32, i32
  }
  func.func @transform_2(%arg0: i32, %arg1: i32, %arg2: memref<4xi32, #tpu.memory_space<smem>>) -> (i32, i32) {
    %c0_i32 = arith.constant 0 : i32
    %c0_i32_0 = arith.constant 0 : i32
    %c0_i32_1 = arith.constant 0 : i32
    return %c0_i32, %c0_i32_0 : i32, i32
  }
  func.func @transform_3(%arg0: i32, %arg1: i32, %arg2: memref<4xi32, #tpu.memory_space<smem>>) -> (i32, i32, i32) {
    %c0_i32 = arith.constant 0 : i32
    %c0_i32_0 = arith.constant 0 : i32
    %c0_i32_1 = arith.constant 0 : i32
    return %arg1, %c0_i32, %c0_i32_0 : i32, i32, i32
  }
  func.func @transform_4(%arg0: i32, %arg1: i32, %arg2: memref<4xi32, #tpu.memory_space<smem>>) -> (i32, i32, i32) {
    %c0_i32 = arith.constant 0 : i32
    %c0_i32_0 = arith.constant 0 : i32
    %c0_i32_1 = arith.constant 0 : i32
    return %arg1, %c0_i32, %c0_i32_0 : i32, i32, i32
  }
  func.func @transform_5(%arg0: i32, %arg1: i32, %arg2: memref<4xi32, #tpu.memory_space<smem>>) -> (i32, i32, i32) {
    %c0_i32 = arith.constant 0 : i32
    %c0_i32_0 = arith.constant 0 : i32
    %c0_i32_1 = arith.constant 0 : i32
    return %arg1, %c0_i32, %c0_i32_0 : i32, i32, i32
  }
  func.func @transform_6(%arg0: i32, %arg1: i32, %arg2: memref<4xi32, #tpu.memory_space<smem>>) -> (i32, i32, i32) {
    %c0_i32 = arith.constant 0 : i32
    %c0_i32_0 = arith.constant 0 : i32
    %c0_i32_1 = arith.constant 0 : i32
    return %arg1, %c0_i32, %c0_i32_0 : i32, i32, i32
  }
  func.func @transform_7(%arg0: i32, %arg1: i32, %arg2: memref<4xi32, #tpu.memory_space<smem>>) -> (i32, i32) {
    %c0_i32 = arith.constant 0 : i32
    %c0_i32_0 = arith.constant 0 : i32
    %c0_i32_1 = arith.constant 0 : i32
    return %c0_i32, %c0_i32_0 : i32, i32
  }
  func.func @transform_8(%arg0: i32, %arg1: i32, %arg2: memref<4xi32, #tpu.memory_space<smem>>) -> (i32, i32) {
    %c0_i32 = arith.constant 0 : i32
    %c0_i32_0 = arith.constant 0 : i32
    %c0_i32_1 = arith.constant 0 : i32
    return %c0_i32, %c0_i32_0 : i32, i32
  }
  func.func @transform_9(%arg0: i32, %arg1: i32, %arg2: memref<4xi32, #tpu.memory_space<smem>>) -> (i32, i32) {
    %c0_i32 = arith.constant 0 : i32
    %c0_i32_0 = arith.constant 0 : i32
    return %c0_i32, %arg0 : i32, i32
  }
}

</mosaic_0001>

<bundles_post_ra>
// kernel: tpu_custom_call.1
= control target key start
LH: loop header
LB: loop body
LE: loop exit
PB: predicated region body
PF: predicated region fallthrough
CT: control target
= control target key end

     0   :  { %s6064_s0 = inlined_call_operand.vmem [shape: s32[4], index: 0, kind: input, shape index: {}]   ;;  %s6065_s1 = inlined_call_operand.vmem [shape: f32[6,512], index: 1, kind: input, shape index: {}]   ;;  %s6066_s2 = inlined_call_operand.vmem [shape: bf16[8,6], index: 2, kind: input, shape index: {}]   ;;  %s6067_s3 = inlined_call_operand.vmem [shape: f32[8,2], index: 3, kind: input, shape index: {}]   ;;  %s6068_s4 = inlined_call_operand.vmem [shape: bf16[4,16,8], index: 4, kind: input, shape index: {}]   ;;  %s6069_s5 = inlined_call_operand.vmem [shape: f32[4,16,9], index: 5, kind: input, shape index: {}]   ;;  %s6070_s6 = inlined_call_operand.vmem [shape: bf16[4,16,16], index: 6, kind: input, shape index: {}]   ;;  %s6071_s7 = inlined_call_operand.vmem [shape: f32[4,16,1], index: 7, kind: input, shape index: {}]   ;;  %s6072_s8 = inlined_call_operand.vmem [shape: bf16[6,8], index: 8, kind: input, shape index: {}]   ;;  %s6073_s9 = inlined_call_operand.vmem [shape: f32[6,1], index: 9, kind: input, shape index: {}]   ;;  %s6074_s10 = inlined_call_operand.hbm [shape: f32[6,512], index: 10, kind: output, shape index: {}]  }
   0x1   :  { %s15_s15 = sshll.u32 %s6064_s0, 4  ;;  %s16_s15 = int_to_ptr.vmem [resolvable:$true] %s15_s15 }
   0x2   :  { %s3995_s16 = scalar_lea.vmem %s16_s15, 16  ;;  %p4000_p1 = scmp.lt.s32.totalorder %s16_s15, %s16_s15 }
   0x3   :  { %p3996_p0 = scmp.ne.s32.totalorder %s16_s15, %s3995_s16  ;;  %p4001_p2 = scmp.lt.s32.totalorder %s3995_s16, %s3995_s16 }
   0x5   :  { %p4002_p3 = por %p4001_p2, %p4000_p1 }
   0x7   :  { %p4003_p4 = pnand %p4002_p3, %p3996_p0 }
   0x9   :  { %4006 = shalt.err (!%p4003_p4)  }
   0xa   :  { %s4191_s17 = smov [#allocation5]  }
   0xb   :  { %18 = dma.vmem_to_smem %s16_s15, 16, %s4191_s17, [#allocation4] }
   0xc   :  { %4109 = dma.done.wait [#allocation4], 16 }
   0xd   :  { %4110 = vsyncadd [#allocation4], 4294967280 }
   0xe   :  { %20 = sfence }
   0xf   :  { %21 = vsyncpa [#allocation7], 0  ;;  %s4282_s18 = smov 0   ;;  %s4284_s19 = smov 0  }
  0x10   :  { %s4286_s20 = smov 0  }
  0x11 LB: > { %s3208_s0 = sadd.s32 4294967295, %s4125_s20   ;;  %s36_s21 = sadd.s32 1, %s4121_s19  ;;  %s4125_s20 = sphi %s4286_s20, %s27_s20   ;;  %s4121_s19 = sphi %s4284_s19, %s6782_s19   ;;  %s4117_s18 = sphi %s4282_s18, %s6781_s18  }
  0x12   : > { %p37_p5 = scmp.ge.s32.totalorder %s36_s21, 4  ;;  %p3212_p6 = scmp.ge.s32.totalorder %s4125_s20, 1 }
  0x13   : > { %p348_p7 = scmp.lt.s32.totalorder %s4125_s20, 5 }
  0x14   : > { %s6784_s21 = smov (%p37_p5, %s36_s21), 0 }
  0x15   : > { %p349_p8 = pnand %p3212_p6, %p348_p7 }
  0x17   : > { %352 = sbr.rel (%p349_p8) target bundleno = 3438 (0xd6e), region = 56 }
  0x1e   : > { %p405_p9 = scmp.lt.s32.totalorder %s4117_s18, 3  ;;  %v427_v0 = vlaneseq  ;;  %v6279_v13 = vmov 0  ;;  %v6281_v15 = vmov 0  ;;  %v6283_v17 = vmov 0  ;;  %p3289_p10 = scmp.ne.s32.totalorder %s4117_s18, 0 }
  0x1f   : > { %v6286_v19 = vmov 0  ;;  %v6289_v21 = vmov 0  ;;  %v6292_v23 = vmov 0  ;;  %v6295_v25 = vmov 0  ;;  %s4194_s11 = smov (!%p3289_p10), 1   ;;  %s4195_s12 = smov (!%p3289_p10), 2  }
  0x20   : > { %s406_s22 = scalar_select %p405_p9, %s4117_s18, 3  ;;  %v4305_v1 = vand.u32 127, %v427_v0  ;;  %v4328_v3 = vshrl.u32 %v427_v0, 7  ;;  %v6298_v27 = vmov 0  ;;  %v6301_v29 = vmov 0 }
  0x21   : > { %v6304_v31 = vmov 0  ;;  %v6307_v33 = vmov 0  ;;  %v6310_v35 = vmov 0  ;;  %v6313_v37 = vmov 0  ;;  %s4196_s14 = smov (!%p3289_p10), 4   ;;  %s4197_s15 = smov (!%p3289_p10), 8  }
  0x22   : > { %6278 = vst [vmem:[#allocation10_spill] sm:$0xff] %v4305_v1  ;;  %s3465_s23 = sshll.u32 %s406_s22, 3  ;;  %s3466_s24 = sshll.u32 %s406_s22, 4  ;;  %v4331_v4 = vmul.u32 128, %v4305_v1  ;;  %v432_v5 = vadd.s32 8, %v4328_v3  ;;  %v433_v6 = vadd.s32 16, %v4328_v3 }
  0x23   : > { %s4311_s27 = scalar_lea.vmem %s6068_s4, %s3465_s23  ;;  %s4316_s30 = scalar_lea.vmem %s6069_s5, %s3466_s24  ;;  %v434_v7 = vadd.s32 24, %v4328_v3  ;;  %v435_v8 = vadd.s32 32, %v4328_v3  ;;  %v436_v10 = vadd.s32 40, %v4328_v3  ;;  %v437_v11 = vadd.s32 48, %v4328_v3 }
  0x24   : > { %s4321_s13 = scalar_lea.vmem %s6070_s6, %s3465_s23  ;;  %s4326_s16 = scalar_lea.vmem %s6071_s7, %s3466_s24  ;;  %vm496_vm0 = vcmp.ge.s32.totalorder %v4328_v3, %v4331_v4  ;;  %v4340_v9 = vadd.s32 128, %v4331_v4  ;;  %vm497_vm1 = vcmp.ge.s32.totalorder %v432_v5, %v4331_v4  ;;  %vm498_vm2 = vcmp.ge.s32.totalorder %v433_v6, %v4331_v4 }
  0x25   : > { %v438_v12 = vadd.s32 56, %v4328_v3  ;;  %vm499_vm6 = vcmp.ge.s32.totalorder %v434_v7, %v4331_v4  ;;  %v439_v14 = vadd.s32 64, %v4328_v3  ;;  %vm500_vm9 = vcmp.ge.s32.totalorder %v435_v8, %v4331_v4  ;;  %s4198_s17 = smov (!%p3289_p10), 16   ;;  %s4199_s22 = smov (!%p3289_p10), 32  }
  0x26   : > { %vm561_vm3 = vcmp.lt.s32.totalorder %v4328_v3, %v4340_v9  ;;  %vm562_vm4 = vcmp.lt.s32.totalorder %v432_v5, %v4340_v9  ;;  %vm563_vm5 = vcmp.lt.s32.totalorder %v433_v6, %v4340_v9  ;;  %vm564_vm7 = vcmp.lt.s32.totalorder %v434_v7, %v4340_v9  ;;  %s4200_s23 = smov (!%p3289_p10), 64  }
  0x27   : > { %vm4353_vm8 = vmand %vm496_vm0, %vm561_vm3  ;;  %vm565_vm10 = vcmp.lt.s32.totalorder %v435_v8, %v4340_v9  ;;  %v440_v16 = vadd.s32 72, %v4328_v3  ;;  %vm501_vm12 = vcmp.ge.s32.totalorder %v436_v10, %v4331_v4  ;;  %vm566_vm13 = vcmp.lt.s32.totalorder %v436_v10, %v4340_v9 }
  0x28   : > { %v6280_v13 = vsel %vm4353_vm8, 4294967295, %v6279_v13  ;;  %vm4360_vm11 = vmand %vm497_vm1, %vm562_vm4  ;;  %v441_v18 = vadd.s32 80, %v4328_v3  ;;  %vm502_vm15 = vcmp.ge.s32.totalorder %v437_v11, %v4331_v4  ;;  %vm567_vm0 = vcmp.lt.s32.totalorder %v437_v11, %v4340_v9 }
  0x29   : > { %v6282_v15 = vsel %vm4360_vm11, 4294967295, %v6281_v15  ;;  %vm4369_vm14 = vmand %vm498_vm2, %vm563_vm5  ;;  %v442_v20 = vadd.s32 88, %v4328_v3  ;;  %vm503_vm3 = vcmp.ge.s32.totalorder %v438_v12, %v4331_v4  ;;  %vm568_vm4 = vcmp.lt.s32.totalorder %v438_v12, %v4340_v9 }
  0x2a   : > { %v6284_v17 = vsel %vm4369_vm14, 4294967295, %v6283_v17  ;;  %vm4376_vm1 = vmand %vm499_vm6, %vm564_vm7  ;;  %v443_v22 = vadd.s32 96, %v4328_v3  ;;  %vm504_vm5 = vcmp.ge.s32.totalorder %v439_v14, %v4331_v4  ;;  %vm569_vm14 = vcmp.lt.s32.totalorder %v439_v14, %v4340_v9 }
  0x2b   : > { %6285 = vst [vmem:[#allocation11_spill] sm:$0xff] %v6284_v17  ;;  %v6287_v19 = vsel %vm4376_vm1, 4294967295, %v6286_v19  ;;  %vm4383_vm2 = vmand %vm500_vm9, %vm565_vm10  ;;  %v444_v24 = vadd.s32 104, %v4328_v3  ;;  %vm505_vm7 = vcmp.ge.s32.totalorder %v440_v16, %v4331_v4  ;;  %vm570_vm1 = vcmp.lt.s32.totalorder %v440_v16, %v4340_v9 }
  0x2c   : > { %6288 = vst [vmem:[#allocation12_spill] sm:$0xff] %v6287_v19  ;;  %v6290_v21 = vsel %vm4383_vm2, 4294967295, %v6289_v21  ;;  %vm4390_vm6 = vmand %vm501_vm12, %vm566_vm13  ;;  %v445_v26 = vadd.s32 112, %v4328_v3  ;;  %vm506_vm10 = vcmp.ge.s32.totalorder %v441_v18, %v4331_v4  ;;  %vm571_vm2 = vcmp.lt.s32.totalorder %v441_v18, %v4340_v9 }
  0x2d   : > { %6291 = vst [vmem:[#allocation13_spill] sm:$0xff] %v6290_v21  ;;  %v6293_v23 = vsel %vm4390_vm6, 4294967295, %v6292_v23  ;;  %vm4397_vm9 = vmand %vm502_vm15, %vm567_vm0  ;;  %v446_v28 = vadd.s32 120, %v4328_v3  ;;  %vm507_vm13 = vcmp.ge.s32.totalorder %v442_v20, %v4331_v4  ;;  %vm572_vm6 = vcmp.lt.s32.totalorder %v442_v20, %v4340_v9 }
  0x2e   : > { %6294 = vst [vmem:[#allocation14_spill] sm:$0xff] %v6293_v23  ;;  %v6296_v25 = vsel %vm4397_vm9, 4294967295, %v6295_v25  ;;  %vm4404_vm12 = vmand %vm503_vm3, %vm568_vm4  ;;  %v447_v30 = vadd.s32 128, %v4328_v3  ;;  %vm508_vm0 = vcmp.ge.s32.totalorder %v443_v22, %v4331_v4  ;;  %vm573_vm9 = vcmp.lt.s32.totalorder %v443_v22, %v4340_v9 }
  0x2f   : > { %6297 = vst [vmem:[#allocation15_spill] sm:$0xff] %v6296_v25  ;;  %v6299_v27 = vsel %vm4404_vm12, 4294967295, %v6298_v27  ;;  %vm4411_vm15 = vmand %vm504_vm5, %vm569_vm14  ;;  %v448_v32 = vadd.s32 136, %v4328_v3  ;;  %vm509_vm4 = vcmp.ge.s32.totalorder %v444_v24, %v4331_v4  ;;  %vm574_vm12 = vcmp.lt.s32.totalorder %v444_v24, %v4340_v9 }
  0x30   : > { %6300 = vst [vmem:[#allocation16_spill] sm:$0xff] %v6299_v27  ;;  %v6302_v29 = vsel %vm4411_vm15, 4294967295, %v6301_v29  ;;  %vm4418_vm3 = vmand %vm505_vm7, %vm570_vm1  ;;  %v449_v34 = vadd.s32 144, %v4328_v3  ;;  %vm510_vm5 = vcmp.ge.s32.totalorder %v445_v26, %v4331_v4  ;;  %vm575_vm15 = vcmp.lt.s32.totalorder %v445_v26, %v4340_v9 }
  0x31   : > { %6303 = vst [vmem:[#allocation17_spill] sm:$0xff] %v6302_v29  ;;  %v6305_v31 = vsel %vm4418_vm3, 4294967295, %v6304_v31  ;;  %vm4425_vm14 = vmand %vm506_vm10, %vm571_vm2  ;;  %v450_v36 = vadd.s32 152, %v4328_v3  ;;  %vm511_vm7 = vcmp.ge.s32.totalorder %v446_v28, %v4331_v4  ;;  %vm576_vm3 = vcmp.lt.s32.totalorder %v446_v28, %v4340_v9 }
  0x32   : > { %6306 = vst [vmem:[#allocation18_spill] sm:$0xff] %v6305_v31  ;;  %v6308_v33 = vsel %vm4425_vm14, 4294967295, %v6307_v33  ;;  %vm4432_vm1 = vmand %vm507_vm13, %vm572_vm6  ;;  %v451_v38 = vadd.s32 160, %v4328_v3  ;;  %vm512_vm10 = vcmp.ge.s32.totalorder %v447_v30, %v4331_v4  ;;  %vm577_vm14 = vcmp.lt.s32.totalorder %v447_v30, %v4340_v9 }
  0x33   : > { %6309 = vst [vmem:[#allocation19_spill] sm:$0xff] %v6308_v33  ;;  %v6311_v35 = vsel %vm4432_vm1, 4294967295, %v6310_v35  ;;  %vm4439_vm2 = vmand %vm508_vm0, %vm573_vm9  ;;  %v6316_v39 = vmov 0  ;;  %v452_v40 = vadd.s32 168, %v4328_v3  ;;  %vm513_vm13 = vcmp.ge.s32.totalorder %v448_v32, %v4331_v4 }
  0x34   : > { %6312 = vst [vmem:[#allocation20_spill] sm:$0xff] %v6311_v35  ;;  %v6314_v37 = vsel %vm4439_vm2, 4294967295, %v6313_v37  ;;  %vm4446_vm6 = vmand %vm509_vm4, %vm574_vm12  ;;  %vm578_vm1 = vcmp.lt.s32.totalorder %v448_v32, %v4340_v9  ;;  %v6319_v41 = vmov 0  ;;  %v453_v42 = vadd.s32 176, %v4328_v3 }
  0x35   : > { %6315 = vst [vmem:[#allocation21_spill] sm:$0xff] %v6314_v37  ;;  %v6317_v39 = vsel %vm4446_vm6, 4294967295, %v6316_v39  ;;  %vm4453_vm9 = vmand %vm510_vm5, %vm575_vm15  ;;  %vm514_vm0 = vcmp.ge.s32.totalorder %v449_v34, %v4331_v4  ;;  %vm579_vm2 = vcmp.lt.s32.totalorder %v449_v34, %v4340_v9  ;;  %v6322_v43 = vmov 0 }
  0x36   : > { %6318 = vst [vmem:[#allocation22_spill] sm:$0xff] %v6317_v39  ;;  %v6320_v41 = vsel %vm4453_vm9, 4294967295, %v6319_v41  ;;  %vm4460_vm12 = vmand %vm511_vm7, %vm576_vm3  ;;  %v454_v44 = vadd.s32 184, %v4328_v3  ;;  %vm515_vm4 = vcmp.ge.s32.totalorder %v450_v36, %v4331_v4  ;;  %vm580_vm6 = vcmp.lt.s32.totalorder %v450_v36, %v4340_v9 }
  0x37   : > { %6321 = vst [vmem:[#allocation23_spill] sm:$0xff] %v6320_v41  ;;  %v6323_v43 = vsel %vm4460_vm12, 4294967295, %v6322_v43  ;;  %vm4467_vm15 = vmand %vm512_vm10, %vm577_vm14  ;;  %v6325_v45 = vmov 0  ;;  %v455_v46 = vadd.s32 192, %v4328_v3  ;;  %vm516_vm5 = vcmp.ge.s32.totalorder %v451_v38, %v4331_v4 }
  0x38   : > { %6324 = vst [vmem:[#allocation24_spill] sm:$0xff] %v6323_v43  ;;  %v6326_v45 = vsel %vm4467_vm15, 4294967295, %v6325_v45  ;;  %vm581_vm9 = vcmp.lt.s32.totalorder %v451_v38, %v4340_v9  ;;  %vm4474_vm3 = vmand %vm513_vm13, %vm578_vm1  ;;  %v6327_v47 = vmov 0  ;;  %v456_v48 = vadd.s32 200, %v4328_v3 }
  0x39   : > { %v6328_v47 = vsel %vm4474_vm3, 4294967295, %v6327_v47  ;;  %vm517_vm7 = vcmp.ge.s32.totalorder %v452_v40, %v4331_v4  ;;  %vm582_vm12 = vcmp.lt.s32.totalorder %v452_v40, %v4340_v9  ;;  %vm4481_vm14 = vmand %vm514_vm0, %vm579_vm2  ;;  %v6329_v49 = vmov 0 }
  0x3a   : > { %v6330_v49 = vsel %vm4481_vm14, 4294967295, %v6329_v49  ;;  %v457_v50 = vadd.s32 208, %v4328_v3  ;;  %vm518_vm10 = vcmp.ge.s32.totalorder %v453_v42, %v4331_v4  ;;  %vm583_vm11 = vcmp.lt.s32.totalorder %v453_v42, %v4340_v9  ;;  %vm4488_vm1 = vmand %vm515_vm4, %vm580_vm6 }
  0x3b   : > { %6331 = vst [vmem:[#allocation25_spill] sm:$0xff] %v6330_v49  ;;  %v6332_v51 = vmov 0  ;;  %v458_v52 = vadd.s32 216, %v4328_v3  ;;  %vm519_vm13 = vcmp.ge.s32.totalorder %v454_v44, %v4331_v4  ;;  %vm584_vm8 = vcmp.lt.s32.totalorder %v454_v44, %v4340_v9  ;;  %vm4495_vm2 = vmand %vm516_vm5, %vm581_vm9 }
  0x3c   : > { %v6333_v51 = vsel %vm4488_vm1, 4294967295, %v6332_v51  ;;  %v6335_v53 = vmov 0  ;;  %v459_v54 = vadd.s32 224, %v4328_v3  ;;  %vm520_vm0 = vcmp.ge.s32.totalorder %v455_v46, %v4331_v4  ;;  %vm4502_vm6 = vmand %vm517_vm7, %vm582_vm12 }
  0x3d   : > { %6334 = vst [vmem:[#allocation26_spill] sm:$0xff] %v6333_v51  ;;  %v6336_v53 = vsel %vm4495_vm2, 4294967295, %v6335_v53  ;;  %vm585_vm14 = vcmp.lt.s32.totalorder %v455_v46, %v4340_v9  ;;  %v6338_v55 = vmov 0  ;;  %v460_v56 = vadd.s32 232, %v4328_v3  ;;  %vm4509_vm9 = vmand %vm518_vm10, %vm583_vm11 }
  0x3e   : > { %6337 = vst [vmem:[#allocation27_spill] sm:$0xff] %v6336_v53  ;;  %v6339_v55 = vsel %vm4502_vm6, 4294967295, %v6338_v55  ;;  %vm521_vm4 = vcmp.ge.s32.totalorder %v456_v48, %v4331_v4  ;;  %vm586_vm1 = vcmp.lt.s32.totalorder %v456_v48, %v4340_v9  ;;  %v6341_v57 = vmov 0  ;;  %vm4516_vm12 = vmand %vm519_vm13, %vm584_vm8 }
  0x3f   : > { %6340 = vst [vmem:[#allocation28_spill] sm:$0xff] %v6339_v55  ;;  %v6342_v57 = vsel %vm4509_vm9, 4294967295, %v6341_v57  ;;  %v461_v58 = vadd.s32 240, %v4328_v3  ;;  %vm522_vm5 = vcmp.ge.s32.totalorder %v457_v50, %v4331_v4  ;;  %vm587_vm2 = vcmp.lt.s32.totalorder %v457_v50, %v4340_v9  ;;  %vm4523_vm11 = vmand %vm520_vm0, %vm585_vm14 }
  0x40   : > { %6343 = vst [vmem:[#allocation29_spill] sm:$0xff] %v6342_v57  ;;  %v6344_v59 = vmov 0  ;;  %v462_v60 = vadd.s32 248, %v4328_v3  ;;  %vm523_vm7 = vcmp.ge.s32.totalorder %v458_v52, %v4331_v4  ;;  %vm588_vm6 = vcmp.lt.s32.totalorder %v458_v52, %v4340_v9  ;;  %vm4530_vm8 = vmand %vm521_vm4, %vm586_vm1 }
  0x41   : > { %v6345_v59 = vsel %vm4516_vm12, 4294967295, %v6344_v59  ;;  %v6347_v61 = vmov 0  ;;  %v463_v62 = vadd.s32 256, %v4328_v3  ;;  %vm524_vm10 = vcmp.ge.s32.totalorder %v459_v54, %v4331_v4  ;;  %vm4537_vm14 = vmand %vm522_vm5, %vm587_vm2 }
  0x42   : > { %6346 = vst [vmem:[#allocation30_spill] sm:$0xff] %v6345_v59  ;;  %v6348_v61 = vsel %vm4523_vm11, 4294967295, %v6347_v61  ;;  %vm589_vm9 = vcmp.lt.s32.totalorder %v459_v54, %v4340_v9  ;;  %v6350_v63 = vmov 0  ;;  %v464_v0 = vadd.s32 264, %v4328_v3  ;;  %vm4544_vm1 = vmand %vm523_vm7, %vm588_vm6 }
  0x43   : > { %6349 = vst [vmem:[#allocation31_spill] sm:$0xff] %v6348_v61  ;;  %v6351_v63 = vsel %vm4530_vm8, 4294967295, %v6350_v63  ;;  %vm525_vm13 = vcmp.ge.s32.totalorder %v460_v56, %v4331_v4  ;;  %vm590_vm12 = vcmp.lt.s32.totalorder %v460_v56, %v4340_v9  ;;  %v6353_v5 = vmov 0  ;;  %vm4551_vm2 = vmand %vm524_vm10, %vm589_vm9 }
  0x44   : > { %6352 = vst [vmem:[#allocation32_spill] sm:$0xff] %v6351_v63  ;;  %v6354_v5 = vsel %vm4537_vm14, 4294967295, %v6353_v5  ;;  %v465_v6 = vadd.s32 272, %v4328_v3  ;;  %vm526_vm0 = vcmp.ge.s32.totalorder %v461_v58, %v4331_v4  ;;  %vm591_vm11 = vcmp.lt.s32.totalorder %v461_v58, %v4340_v9  ;;  %vm4558_vm6 = vmand %vm525_vm13, %vm590_vm12 }
  0x45   : > { %6355 = vst [vmem:[#allocation33_spill] sm:$0xff] %v6354_v5  ;;  %v6356_v7 = vmov 0  ;;  %v466_v8 = vadd.s32 280, %v4328_v3  ;;  %vm527_vm4 = vcmp.ge.s32.totalorder %v462_v60, %v4331_v4  ;;  %vm592_vm8 = vcmp.lt.s32.totalorder %v462_v60, %v4340_v9  ;;  %vm4565_vm9 = vmand %vm526_vm0, %vm591_vm11 }
  0x46   : > { %v6357_v7 = vsel %vm4544_vm1, 4294967295, %v6356_v7  ;;  %v6359_v10 = vmov 0  ;;  %v467_v11 = vadd.s32 288, %v4328_v3  ;;  %vm528_vm5 = vcmp.ge.s32.totalorder %v463_v62, %v4331_v4  ;;  %vm4572_vm12 = vmand %vm527_vm4, %vm592_vm8 }
  0x47   : > { %6358 = vst [vmem:[#allocation34_spill] sm:$0xff] %v6357_v7  ;;  %v6360_v10 = vsel %vm4551_vm2, 4294967295, %v6359_v10  ;;  %vm593_vm14 = vcmp.lt.s32.totalorder %v463_v62, %v4340_v9  ;;  %v6362_v12 = vmov 0  ;;  %v468_v14 = vadd.s32 296, %v4328_v3 }
  0x48   : > { %6361 = vst [vmem:[#allocation35_spill] sm:$0xff] %v6360_v10  ;;  %v6363_v12 = vsel %vm4558_vm6, 4294967295, %v6362_v12  ;;  %vm529_vm7 = vcmp.ge.s32.totalorder %v464_v0, %v4331_v4  ;;  %vm594_vm1 = vcmp.lt.s32.totalorder %v464_v0, %v4340_v9  ;;  %v6365_v16 = vmov 0  ;;  %vm4579_vm11 = vmand %vm528_vm5, %vm593_vm14  ;;  %v4843_v10 = vld [vmem:[%s6065_s1 + $0x8] sm:$0x3f] (!%p3289_p10) }
  0x49   : > { %6364 = vst [vmem:[#allocation36_spill] sm:$0xff] %v6363_v12  ;;  %v6366_v16 = vsel %vm4565_vm9, 4294967295, %v6365_v16  ;;  %v469_v18 = vadd.s32 304, %v4328_v3  ;;  %vm530_vm10 = vcmp.ge.s32.totalorder %v465_v6, %v4331_v4  ;;  %vm595_vm2 = vcmp.lt.s32.totalorder %v465_v6, %v4340_v9  ;;  %vm4586_vm8 = vmand %vm529_vm7, %vm594_vm1 }
  0x4a   : > { %6367 = vst [vmem:[#allocation37_spill] sm:$0xff] %v6366_v16  ;;  %v6368_v20 = vmov 0  ;;  %v470_v22 = vadd.s32 312, %v4328_v3  ;;  %vm531_vm13 = vcmp.ge.s32.totalorder %v466_v8, %v4331_v4  ;;  %vm596_vm6 = vcmp.lt.s32.totalorder %v466_v8, %v4340_v9  ;;  %vm4593_vm14 = vmand %vm530_vm10, %vm595_vm2 }
  0x4b   : > { %v6369_v20 = vsel %vm4572_vm12, 4294967295, %v6368_v20  ;;  %v6371_v24 = vmov 0  ;;  %v471_v26 = vadd.s32 320, %v4328_v3  ;;  %vm532_vm0 = vcmp.ge.s32.totalorder %v467_v11, %v4331_v4  ;;  %vm4600_vm1 = vmand %vm531_vm13, %vm596_vm6 }
  0x4c   : > { %6370 = vst [vmem:[#allocation38_spill] sm:$0xff] %v6369_v20  ;;  %v6372_v24 = vsel %vm4579_vm11, 4294967295, %v6371_v24  ;;  %vm597_vm9 = vcmp.lt.s32.totalorder %v467_v11, %v4340_v9  ;;  %v6373_v28 = vmov 0  ;;  %v472_v30 = vadd.s32 328, %v4328_v3 }
  0x4d   : > { %v6374_v28 = vsel %vm4586_vm8, 4294967295, %v6373_v28  ;;  %vm533_vm4 = vcmp.ge.s32.totalorder %v468_v14, %v4331_v4  ;;  %vm598_vm12 = vcmp.lt.s32.totalorder %v468_v14, %v4340_v9  ;;  %v6375_v32 = vmov 0  ;;  %vm4607_vm2 = vmand %vm532_vm0, %vm597_vm9 }
  0x4e   : > { %v6376_v32 = vsel %vm4593_vm14, 4294967295, %v6375_v32  ;;  %v473_v34 = vadd.s32 336, %v4328_v3  ;;  %vm534_vm5 = vcmp.ge.s32.totalorder %v469_v18, %v4331_v4  ;;  %vm599_vm11 = vcmp.lt.s32.totalorder %v469_v18, %v4340_v9  ;;  %vm4614_vm6 = vmand %vm533_vm4, %vm598_vm12 }
  0x4f   : > { %6377 = vst [vmem:[#allocation39_spill] sm:$0xff] %v6376_v32  ;;  %v6378_v36 = vmov 0  ;;  %v474_v38 = vadd.s32 344, %v4328_v3  ;;  %vm535_vm7 = vcmp.ge.s32.totalorder %v470_v22, %v4331_v4  ;;  %vm600_vm8 = vcmp.lt.s32.totalorder %v470_v22, %v4340_v9  ;;  %vm4621_vm9 = vmand %vm534_vm5, %vm599_vm11 }
  0x50   : > { %v6379_v36 = vsel %vm4600_vm1, 4294967295, %v6378_v36  ;;  %v6381_v40 = vmov 0  ;;  %v475_v42 = vadd.s32 352, %v4328_v3  ;;  %vm536_vm10 = vcmp.ge.s32.totalorder %v471_v26, %v4331_v4  ;;  %vm4628_vm12 = vmand %vm535_vm7, %vm600_vm8 }
  0x51   : > { %6380 = vst [vmem:[#allocation40_spill] sm:$0xff] %v6379_v36  ;;  %v6382_v40 = vsel %vm4607_vm2, 4294967295, %v6381_v40  ;;  %vm601_vm14 = vcmp.lt.s32.totalorder %v471_v26, %v4340_v9  ;;  %v6384_v44 = vmov 0  ;;  %v476_v46 = vadd.s32 360, %v4328_v3 }
  0x52   : > { %6383 = vst [vmem:[#allocation41_spill] sm:$0xff] %v6382_v40  ;;  %v6385_v44 = vsel %vm4614_vm6, 4294967295, %v6384_v44  ;;  %vm537_vm13 = vcmp.ge.s32.totalorder %v472_v30, %v4331_v4  ;;  %vm602_vm1 = vcmp.lt.s32.totalorder %v472_v30, %v4340_v9  ;;  %v6387_v48 = vmov 0  ;;  %vm4635_vm11 = vmand %vm536_vm10, %vm601_vm14 }
  0x53   : > { %6386 = vst [vmem:[#allocation42_spill] sm:$0xff] %v6385_v44  ;;  %v6388_v48 = vsel %vm4621_vm9, 4294967295, %v6387_v48  ;;  %v477_v50 = vadd.s32 368, %v4328_v3  ;;  %vm538_vm0 = vcmp.ge.s32.totalorder %v473_v34, %v4331_v4  ;;  %vm603_vm2 = vcmp.lt.s32.totalorder %v473_v34, %v4340_v9  ;;  %vm4642_vm8 = vmand %vm537_vm13, %vm602_vm1 }
  0x54   : > { %6389 = vst [vmem:[#allocation43_spill] sm:$0xff] %v6388_v48  ;;  %v6390_v52 = vmov 0  ;;  %v478_v54 = vadd.s32 376, %v4328_v3  ;;  %vm539_vm4 = vcmp.ge.s32.totalorder %v474_v38, %v4331_v4  ;;  %vm604_vm6 = vcmp.lt.s32.totalorder %v474_v38, %v4340_v9  ;;  %vm4649_vm14 = vmand %vm538_vm0, %vm603_vm2 }
  0x55   : > { %v6391_v52 = vsel %vm4628_vm12, 4294967295, %v6390_v52  ;;  %v6393_v56 = vmov 0  ;;  %v479_v58 = vadd.s32 384, %v4328_v3  ;;  %vm540_vm5 = vcmp.ge.s32.totalorder %v475_v42, %v4331_v4  ;;  %vm4656_vm1 = vmand %vm539_vm4, %vm604_vm6 }
  0x56   : > { %6392 = vst [vmem:[#allocation44_spill] sm:$0xff] %v6391_v52  ;;  %v6394_v56 = vsel %vm4635_vm11, 4294967295, %v6393_v56  ;;  %vm605_vm9 = vcmp.lt.s32.totalorder %v475_v42, %v4340_v9  ;;  %v6396_v60 = vmov 0  ;;  %v480_v62 = vadd.s32 392, %v4328_v3 }
  0x57   : > { %6395 = vst [vmem:[#allocation45_spill] sm:$0xff] %v6394_v56  ;;  %v6397_v60 = vsel %vm4642_vm8, 4294967295, %v6396_v60  ;;  %vm541_vm7 = vcmp.ge.s32.totalorder %v476_v46, %v4331_v4  ;;  %vm606_vm12 = vcmp.lt.s32.totalorder %v476_v46, %v4340_v9  ;;  %v6399_v0 = vmov 0  ;;  %vm4663_vm2 = vmand %vm540_vm5, %vm605_vm9 }
  0x58   : > { %6398 = vst [vmem:[#allocation46_spill] sm:$0xff] %v6397_v60  ;;  %v6400_v0 = vsel %vm4649_vm14, 4294967295, %v6399_v0  ;;  %v481_v6 = vadd.s32 400, %v4328_v3  ;;  %vm542_vm10 = vcmp.ge.s32.totalorder %v477_v50, %v4331_v4  ;;  %vm607_vm11 = vcmp.lt.s32.totalorder %v477_v50, %v4340_v9  ;;  %vm4670_vm6 = vmand %vm541_vm7, %vm606_vm12 }
  0x59   : > { %6401 = vst [vmem:[#allocation47_spill] sm:$0xff] %v6400_v0  ;;  %v6402_v8 = vmov 0  ;;  %v482_v11 = vadd.s32 408, %v4328_v3  ;;  %vm543_vm13 = vcmp.ge.s32.totalorder %v478_v54, %v4331_v4  ;;  %vm608_vm8 = vcmp.lt.s32.totalorder %v478_v54, %v4340_v9  ;;  %vm4677_vm9 = vmand %vm542_vm10, %vm607_vm11 }
  0x5a   : > { %v6403_v8 = vsel %vm4656_vm1, 4294967295, %v6402_v8  ;;  %v6405_v14 = vmov 0  ;;  %v483_v18 = vadd.s32 416, %v4328_v3  ;;  %vm544_vm0 = vcmp.ge.s32.totalorder %v479_v58, %v4331_v4  ;;  %vm4684_vm12 = vmand %vm543_vm13, %vm608_vm8 }
  0x5b   : > { %6404 = vst [vmem:[#allocation48_spill] sm:$0xff] %v6403_v8  ;;  %v6406_v14 = vsel %vm4663_vm2, 4294967295, %v6405_v14  ;;  %vm609_vm14 = vcmp.lt.s32.totalorder %v479_v58, %v4340_v9  ;;  %v6408_v22 = vmov 0  ;;  %v484_v26 = vadd.s32 424, %v4328_v3 }
  0x5c   : > { %6407 = vst [vmem:[#allocation49_spill] sm:$0xff] %v6406_v14  ;;  %v6409_v22 = vsel %vm4670_vm6, 4294967295, %v6408_v22  ;;  %vm545_vm4 = vcmp.ge.s32.totalorder %v480_v62, %v4331_v4  ;;  %vm610_vm1 = vcmp.lt.s32.totalorder %v480_v62, %v4340_v9  ;;  %v6411_v30 = vmov 0  ;;  %vm4691_vm11 = vmand %vm544_vm0, %vm609_vm14 }
  0x5d   : > { %6410 = vst [vmem:[#allocation50_spill] sm:$0xff] %v6409_v22  ;;  %v6412_v30 = vsel %vm4677_vm9, 4294967295, %v6411_v30  ;;  %v485_v34 = vadd.s32 432, %v4328_v3  ;;  %vm546_vm5 = vcmp.ge.s32.totalorder %v481_v6, %v4331_v4  ;;  %vm611_vm2 = vcmp.lt.s32.totalorder %v481_v6, %v4340_v9  ;;  %vm4698_vm8 = vmand %vm545_vm4, %vm610_vm1 }
  0x5e   : > { %6413 = vst [vmem:[#allocation51_spill] sm:$0xff] %v6412_v30  ;;  %v6414_v38 = vmov 0  ;;  %v486_v42 = vadd.s32 440, %v4328_v3  ;;  %vm547_vm7 = vcmp.ge.s32.totalorder %v482_v11, %v4331_v4  ;;  %vm612_vm6 = vcmp.lt.s32.totalorder %v482_v11, %v4340_v9  ;;  %vm4705_vm14 = vmand %vm546_vm5, %vm611_vm2 }
  0x5f   : > { %v6415_v38 = vsel %vm4684_vm12, 4294967295, %v6414_v38  ;;  %v6417_v46 = vmov 0  ;;  %v487_v50 = vadd.s32 448, %v4328_v3  ;;  %vm548_vm10 = vcmp.ge.s32.totalorder %v483_v18, %v4331_v4  ;;  %vm4712_vm1 = vmand %vm547_vm7, %vm612_vm6 }
  0x60   : > { %6416 = vst [vmem:[#allocation52_spill] sm:$0xff] %v6415_v38  ;;  %v6418_v46 = vsel %vm4691_vm11, 4294967295, %v6417_v46  ;;  %vm613_vm9 = vcmp.lt.s32.totalorder %v483_v18, %v4340_v9  ;;  %v6419_v54 = vmov 0  ;;  %v488_v58 = vadd.s32 456, %v4328_v3 }
  0x61   : > { %v6420_v54 = vsel %vm4698_vm8, 4294967295, %v6419_v54  ;;  %vm549_vm13 = vcmp.ge.s32.totalorder %v484_v26, %v4331_v4  ;;  %vm614_vm12 = vcmp.lt.s32.totalorder %v484_v26, %v4340_v9  ;;  %v6421_v62 = vmov 0  ;;  %vm4719_vm2 = vmand %vm548_vm10, %vm613_vm9 }
  0x62   : > { %v6422_v62 = vsel %vm4705_vm14, 4294967295, %v6421_v62  ;;  %v489_v6 = vadd.s32 464, %v4328_v3  ;;  %vm615_vm11 = vcmp.lt.s32.totalorder %v485_v34, %v4340_v9  ;;  %v6424_v11 = vmov 0  ;;  %vm4726_vm6 = vmand %vm549_vm13, %vm614_vm12 }
  0x63   : > { %6423 = vst [vmem:[#allocation53_spill] sm:$0xff] %v6422_v62  ;;  %v6425_v11 = vsel %vm4712_vm1, 4294967295, %v6424_v11  ;;  %v490_v18 = vadd.s32 472, %v4328_v3  ;;  %vm616_vm8 = vcmp.lt.s32.totalorder %v486_v42, %v4340_v9  ;;  %v6427_v26 = vmov 0 }
  0x64   : > { %6426 = vst [vmem:[#allocation54_spill] sm:$0xff] %v6425_v11  ;;  %v6428_v26 = vsel %vm4719_vm2, 4294967295, %v6427_v26  ;;  %v491_v2 = vadd.s32 480, %v4328_v3  ;;  %vm617_vm0 = vcmp.lt.s32.totalorder %v487_v50, %v4340_v9  ;;  %v6430_v38 = vmov 0 }
  0x65   : > { %6429 = vst [vmem:[#allocation55_spill] sm:$0xff] %v6428_v26  ;;  %v6431_v38 = vsel %vm4726_vm6, 4294967295, %v6430_v38  ;;  %v820_v30 = vmul.u32 128, %v4328_v3  ;;  %v492_v43 = vadd.s32 488, %v4328_v3  ;;  %vm553_vm7 = vcmp.ge.s32.totalorder %v488_v58, %v4331_v4 }
  0x66   : > { %6432 = vst [vmem:[#allocation56_spill] sm:$0xff] %v6431_v38  ;;  %vm618_vm9 = vcmp.lt.s32.totalorder %v488_v58, %v4340_v9  ;;  %vm6433_vm10 = vcmp.ge.s32.totalorder %v485_v34, %v4331_v4  ;;  %v6434_v41 = vmov 0  ;;  %v493_v20 = vadd.s32 496, %v4328_v3 }
  0x67   : > { %vm4736_vm4 = vmand %vm6433_vm10, %vm615_vm11  ;;  %vm554_vm12 = vcmp.ge.s32.totalorder %v489_v6, %v4331_v4  ;;  %vm619_vm13 = vcmp.lt.s32.totalorder %v489_v6, %v4340_v9  ;;  %vm6437_vm5 = vcmp.ge.s32.totalorder %v486_v42, %v4331_v4  ;;  %v6438_v16 = vmov 0 }
  0x68   : > { %v6435_v41 = vsel %vm4736_vm4, 4294967295, %v6434_v41  ;;  %vm4745_vm6 = vmand %vm6437_vm5, %vm616_vm8  ;;  %v494_v58 = vadd.s32 504, %v4328_v3  ;;  %vm555_vm2 = vcmp.ge.s32.totalorder %v490_v18, %v4331_v4  ;;  %vm620_vm11 = vcmp.lt.s32.totalorder %v490_v18, %v4340_v9 }
  0x69   : > { %6436 = vst [vmem:[#allocation57_spill] sm:$0xff] %v6435_v41  ;;  %v6439_v16 = vsel %vm4745_vm6, 4294967295, %v6438_v16  ;;  %vm6441_vm10 = vcmp.ge.s32.totalorder %v487_v50, %v4331_v4  ;;  %v6442_v34 = vmov 0  ;;  %vm556_vm1 = vcmp.ge.s32.totalorder %v491_v2, %v4331_v4  ;;  %vm4760_vm8 = vmand %vm553_vm7, %vm618_vm9 }
  0x6a   : > { %6440 = vst [vmem:[#allocation58_spill] sm:$0xff] %v6439_v16  ;;  %vm4754_vm4 = vmand %vm6441_vm10, %vm617_vm0  ;;  %vm621_vm14 = vcmp.lt.s32.totalorder %v491_v2, %v4340_v9  ;;  %v6445_v42 = vmov 0  ;;  %v825_v6 = vadd.s32 128, %v820_v30  ;;  %vm557_vm5 = vcmp.ge.s32.totalorder %v492_v43, %v4331_v4 }
  0x6b   : > { %v6443_v34 = vsel %vm4754_vm4, 4294967295, %v6442_v34  ;;  %v6446_v42 = vsel %vm4760_vm8, 4294967295, %v6445_v42  ;;  %vm622_vm6 = vcmp.lt.s32.totalorder %v492_v43, %v4340_v9  ;;  %vm4766_vm3 = vmand %vm554_vm12, %vm619_vm13  ;;  %v6448_v18 = vmov 0 }
  0x6c   : > { %6444 = vst [vmem:[#allocation59_spill] sm:$0xff] %v6443_v34  ;;  %6447 = vst [vmem:[#allocation60_spill] sm:$0xff] %v6446_v42  ;;  %v6449_v18 = vsel %vm4766_vm3, 4294967295, %v6448_v18  ;;  %v817_v50 = vadd.s32 128, %v4305_v1  ;;  %vm558_vm0 = vcmp.ge.s32.totalorder %v493_v20, %v4331_v4  ;;  %vm623_vm10 = vcmp.lt.s32.totalorder %v493_v20, %v4340_v9 }
  0x6d   : > { %6450 = vst [vmem:[#allocation61_spill] sm:$0xff] %v6449_v18  ;;  %vm4773_vm4 = vmand %vm555_vm2, %vm620_vm11  ;;  %v6451_v2 = vmov 0  ;;  %v818_v22 = vadd.s32 256, %v4305_v1  ;;  %vm559_vm7 = vcmp.ge.s32.totalorder %v494_v58, %v4331_v4  ;;  %vm624_vm9 = vcmp.lt.s32.totalorder %v494_v58, %v4340_v9 }
  0x6e   : > { %v6452_v2 = vsel %vm4773_vm4, 4294967295, %v6451_v2  ;;  %vm4780_vm12 = vmand %vm556_vm1, %vm621_vm14  ;;  %v6454_v43 = vmov 0  ;;  %v819_v14 = vadd.s32 384, %v4305_v1  ;;  %v6457_v39 = vmov 0 }
  0x6f   : > { %6453 = vst [vmem:[#allocation62_spill] sm:$0xff] %v6452_v2  ;;  %v6455_v43 = vsel %vm4780_vm12, 4294967295, %v6454_v43  ;;  %vm4785_vm13 = vmand %vm557_vm5, %vm622_vm6  ;;  %vm821_vm2 = vcmp.ge.s32.totalorder %v4305_v1, %v820_v30  ;;  %vm826_vm11 = vcmp.lt.s32.totalorder %v4305_v1, %v825_v6  ;;  %v6460_v20 = vmov 0 }
  0x70   : > { %6456 = vst [vmem:[#allocation63_spill] sm:$0xff] %v6455_v43  ;;  %v6458_v39 = vsel %vm4785_vm13, 4294967295, %v6457_v39  ;;  %vm4791_vm4 = vmand %vm558_vm0, %vm623_vm10  ;;  %vm822_vm3 = vcmp.ge.s32.totalorder %v817_v50, %v820_v30  ;;  %vm827_vm8 = vcmp.lt.s32.totalorder %v817_v50, %v825_v6  ;;  %v6463_v4 = vmov 0 }
  0x71   : > { %6459 = vst [vmem:[#allocation64_spill] sm:$0xff] %v6458_v39  ;;  %v6461_v20 = vsel %vm4791_vm4, 4294967295, %v6460_v20  ;;  %vm4795_vm14 = vmand %vm559_vm7, %vm624_vm9  ;;  %vm823_vm1 = vcmp.ge.s32.totalorder %v818_v22, %v820_v30  ;;  %vm828_vm12 = vcmp.lt.s32.totalorder %v818_v22, %v825_v6  ;;  %vm824_vm6 = vcmp.ge.s32.totalorder %v819_v14, %v820_v30  ;;  %845 = sbr.rel (%p3289_p10) target bundleno = 1242 (0x4da), region = 60 }
  0x72   : > { %6462 = vst [vmem:[#allocation65_spill] sm:$0xff] %v6461_v20  ;;  %v6464_v4 = vsel %vm4795_vm14, 4294967295, %v6463_v4  ;;  %vm829_vm5 = vcmp.lt.s32.totalorder %v819_v14, %v825_v6  ;;  %vm830_vm15 = vmand %vm821_vm2, %vm826_vm11  ;;  %v6159_v9 = vmov 0.0   ;;  %v4815_v14 = vld [vmem:[%s6065_s1 + $0x10] sm:$0x3f] (!%p3289_p10)  ;;  %vm924_vm7 = vcmp.lt.s32.totalorder (!%p3289_p10), %v4305_v1, 1 }
  0x73   : > { %6465 = vst [vmem:[#allocation66_spill] sm:$0xff] %v6464_v4  ;;  %vm831_vm13 = vmand %vm822_vm3, %vm827_vm8  ;;  %v4800_v58 = vsel %vm830_vm15, 1.0, %v6159_v9  ;;  %vm850_vm15 = vcmask (!%p3289_p10), 1045504   ;;  %v881_v30 = vmul.f32 (!%p3289_p10), %v4815_v14, %v4815_v14  ;;  %v4824_v6 = vld [vmem:[%s6065_s1] sm:$0x3f] (!%p3289_p10)  ;;  %vm911_vm3 = vcmask (!%p3289_p10), 1040384  }
  0x74   : > { %6466 = vst [vmem:[#allocation67_spill] sm:$0xff] %v4800_v58  ;;  %vm832_vm0 = vmand %vm823_vm1, %vm828_vm12  ;;  %v4803_v37 = vsel %vm831_vm13, 1.0, %v6159_v9  ;;  %v865_v22 = vsel (!%p3289_p10), %vm850_vm15, %v4815_v14, 0.0  ;;  %v851_v58 = vsel (!%p3289_p10), %vm850_vm15, %v4824_v6, 0.0  ;;  %v858_v33 = vsel (!%p3289_p10), %vm850_vm15, %v4843_v10, 0.0 }
  0x75   : > { %6467 = vst [vmem:[#allocation68_spill] sm:$0xff] %v4803_v37  ;;  %vm833_vm10 = vmand %vm824_vm6, %vm829_vm5  ;;  %v4806_v50 = vsel %vm832_vm0, 1.0, %v6159_v9  ;;  %v897_v20 = vsel (!%p3289_p10), %vm850_vm15, %v881_v30, 0.0  ;;  %v852_v39 = vrot.slane (!%p3289_p10), %v851_v58, 4  ;;  %v859_v31 = vrot.slane (!%p3289_p10), %v858_v33, 4 }
  0x76   : > { %6468 = vst [vmem:[#allocation69_spill] sm:$0xff] %v4806_v50  ;;  %v4809_v4 = vsel %vm833_vm10, 1.0, %v6159_v9  ;;  %v4829_v9 = vld [vmem:[%s6065_s1 + $0x18] sm:$0x3f] (!%p3289_p10)  ;;  %v866_v50 = vrot.slane (!%p3289_p10), %v865_v22, 4  ;;  %v898_v0 = vrot.slane (!%p3289_p10), %v897_v20, 4 }
  0x77   : > { %6469 = vst [vmem:[#allocation70_spill] sm:$0xff] %v4809_v4  ;;  %v879_v4 = vmul.f32 (!%p3289_p10), %v4824_v6, %v4824_v6  ;;  %v872_v37 = vsel (!%p3289_p10), %vm850_vm15, %v4829_v9, 0.0  ;;  %v882_v12 = vmul.f32 (!%p3289_p10), %v4829_v9, %v4829_v9  ;;  %v853_v2 = vadd.f32 (!%p3289_p10), %v852_v39, %v851_v58 }
  0x78   : > { %v873_v43 = vrot.slane %v872_v37, 4  ;;  %v867_v8 = vadd.f32 %v866_v50, %v865_v22  ;;  %v899_v60 = vadd.f32 %v898_v0, %v897_v20  ;;  %v880_v50 = vmul.f32 %v4843_v10, %v4843_v10 }
  0x79   : > { %v883_v35 = vsel %vm850_vm15, %v879_v4, 0.0  ;;  %v904_v7 = vsel %vm850_vm15, %v882_v12, 0.0  ;;  %v854_v29 = vrot.slane %v853_v2, 2  ;;  %v860_v61 = vadd.f32 %v859_v31, %v858_v33 }
  0x7a   : > { %v884_v18 = vrot.slane %v883_v35, 4  ;;  %v874_v30 = vadd.f32 %v873_v43, %v872_v37  ;;  %v868_v5 = vrot.slane %v867_v8, 2  ;;  %v905_v56 = vrot.slane %v904_v7, 4 }
  0x7b   : > { %v900_v4 = vrot.slane %v899_v60, 2  ;;  %v855_v52 = vadd.f32 %v854_v29, %v853_v2  ;;  %v890_v37 = vsel %vm850_vm15, %v880_v50, 0.0  ;;  %v861_v20 = vrot.slane %v860_v61, 2 }
  0x7c   : > { %v885_v42 = vadd.f32 %v884_v18, %v883_v35  ;;  %v875_v34 = vrot.slane %v874_v30, 2  ;;  %v869_v22 = vadd.f32 %v868_v5, %v867_v8  ;;  %v906_v63 = vadd.f32 %v905_v56, %v904_v7 }
  0x7d   : > { %v901_v43 = vadd.f32 %v900_v4, %v899_v60  ;;  %v856_v48 = vrot.slane %v855_v52, 1  ;;  %v891_v18 = vrot.slane %v890_v37, 4  ;;  %v862_v5 = vadd.f32 %v861_v20, %v860_v61 }
  0x7e   : > { %v886_v39 = vrot.slane %v885_v42, 2  ;;  %v876_v58 = vadd.f32 %v875_v34, %v874_v30  ;;  %v870_v12 = vrot.slane %v869_v22, 1  ;;  %v907_v0 = vrot.slane %v906_v63, 2 }
  0x7f   : > { %v902_v16 = vrot.slane %v901_v43, 1  ;;  %v857_v7 = vadd.f32 %v856_v48, %v855_v52  ;;  %v892_v29 = vadd.f32 %v891_v18, %v890_v37  ;;  %v863_v2 = vrot.slane %v862_v5, 1 }
  0x80   : > { %v887_v27 = vadd.f32 %v886_v39, %v885_v42  ;;  %v877_v35 = vrot.slane %v876_v58, 1  ;;  %v871_v25 = vadd.f32 %v870_v12, %v869_v22  ;;  %v908_v41 = vadd.f32 %v907_v0, %v906_v63 }
  0x81   : > { %v903_v33 = vadd.f32 %v902_v16, %v901_v43  ;;  %v893_v60 = vrot.slane %v892_v29, 2  ;;  %v4193_v42 = vmov 0   ;;  %v864_v16 = vadd.f32 %v863_v2, %v862_v5 }
  0x82   : > { %v888_v31 = vrot.slane %v887_v27, 1  ;;  %v878_v56 = vadd.f32 %v877_v35, %v876_v58  ;;  %v909_v8 = vrot.slane %v908_v41, 1  ;;  %1278 = vmatprep.mubr.bf16.mxu0 %v4193_v42  ;;  %1319 = vmatprep.mubr.bf16.mxu1 %v4193_v42  ;;  %vm929_vm8 = vcmp.ge.s32.totalorder %v4305_v1, 1 }
  0x83   : > { %v914_v30 = vsel %vm911_vm3, %v871_v25, %v903_v33  ;;  %v894_v63 = vadd.f32 %v893_v60, %v892_v29  ;;  %3930 = vset.pattern.permute.xlu0 %v4193_v42  ;;  %v4861_v52 = vsub.s32 0, %v4328_v3  ;;  %v930_v22 = vsel %vm929_vm8, 1, %v4193_v42 }
  0x84   : > { %v889_v34 = vadd.f32 %v888_v31, %v887_v27  ;;  %v910_v50 = vadd.f32 %v909_v8, %v908_v41  ;;  %920 = vrot.lane.b32.xlu1 %v914_v30, %s4194_s11  ;;  %vm957_vm12 = vcmp.ge.s32.totalorder %v4305_v1, 2  ;;  %vm952_vm13 = vcmp.lt.s32.totalorder %v4305_v1, 2 }
  0x85   : > { %v895_v48 = vrot.slane %v894_v63, 1  ;;  %v934_v4 = vrot.slane %v930_v22, %v4861_v52  ;;  %v958_v2 = vsel %vm957_vm12, 1, %v4193_v42  ;;  %vm985_vm11 = vcmp.ge.s32.totalorder %v4305_v1, 4 }
  0x86   : > { %v912_v61 = vsel %vm911_vm3, %v857_v7, %v889_v34  ;;  %v915_v27 = vsel %vm911_vm3, %v878_v56, %v910_v50  ;;  %v962_v60 = vrot.slane %v958_v2, %v4861_v52  ;;  %vm980_vm1 = vcmp.lt.s32.totalorder %v4305_v1, 4 }
  0x87   : > { %916 = vrot.lane.b32.xlu0 %v912_v61, %s4194_s11  ;;  %v896_v25 = vadd.f32 %v895_v48, %v894_v63  ;;  %vm4866_vm9 = vcmp.eq.s32.totalorder %v934_v4, 1  ;;  %vm1013_vm5 = vcmp.ge.s32.totalorder %v4305_v1, 8  ;;  %vm1008_vm0 = vcmp.lt.s32.totalorder %v4305_v1, 8 }
  0x88   : > { %922 = vrot.lane.b32.xlu1 %v915_v27, %s4194_s11  ;;  %vm4882_vm2 = vcmp.eq.s32.totalorder %v962_v60, 1  ;;  %vm1041_vm15 = vcmp.ge.s32.totalorder %v4305_v1, 16 }
  0x89   : > { %v913_v41 = vsel %vm911_vm3, %v864_v16, %v896_v25  ;;  %vm1036_vm3 = vcmp.lt.s32.totalorder %v4305_v1, 16 }
  0x8b   : > { %918 = vrot.lane.b32.xlu0 %v913_v41, %s4194_s11 }
  0xf6   : > { %v921_v39 = vpop.permute.xlu1 %920 }
  0xf9   : > { %v917_v58 = vpop.permute.xlu0 %916 }
  0xfa   : > { %v923_v12 = vpop.permute.xlu1 %922 }
  0xfb   : > { %v928_v43 = vsel %vm924_vm7, %v923_v12, %v917_v58  ;;  %v925_v18 = vsel %vm924_vm7, %v921_v39, %v923_v12 }
  0xfc   : > { %v936_v0 = vsel %vm4866_vm9, %v928_v43, 0.0  ;;  %v939_v56 = vsel %vm4866_vm9, %v925_v18, 0.0 }
  0xfd   : > { %v940_v20 = vadd.f32 %v936_v0, %v912_v61  ;;  %v919_v35 = vpop.permute.xlu0 %918  ;;  %v943_v34 = vadd.f32 %v939_v56, %v915_v27 }
  0xfe   : > { %v926_v5 = vsel %vm924_vm7, %v919_v35, %v921_v39  ;;  %v927_v7 = vsel %vm924_vm7, %v917_v58, %v919_v35  ;;  %v986_v35 = vsel %vm985_vm11, 1, %v4193_v42  ;;  %vm1069_vm7 = vcmp.ge.s32.totalorder %v4305_v1, 32 }
  0xff   : > { %v937_v31 = vsel %vm4866_vm9, %v927_v7, 0.0  ;;  %v938_v29 = vsel %vm4866_vm9, %v926_v5, 0.0  ;;  %944 = vrot.lane.b32.xlu0 %v940_v20, %s4195_s12  ;;  %v990_v18 = vrot.slane %v986_v35, %v4861_v52  ;;  %vm1064_vm9 = vcmp.lt.s32.totalorder %v4305_v1, 32 }
 0x100   : > { %v941_v33 = vadd.f32 %v937_v31, %v913_v41  ;;  %v942_v8 = vadd.f32 %v938_v29, %v914_v30 }
 0x101   : > { %vm4898_vm6 = vcmp.eq.s32.totalorder %v990_v18, 1 }
 0x102   : > { %946 = vrot.lane.b32.xlu1 %v941_v33, %s4195_s12 }
 0x103   : > { %948 = vrot.lane.b32.xlu0 %v942_v8, %s4195_s12 }
 0x106   : > { %950 = vrot.lane.b32.xlu1 %v943_v34, %s4195_s12 }
 0x171   : > { %v945_v50 = vpop.permute.xlu0 %944 }
 0x174   : > { %v947_v63 = vpop.permute.xlu1 %946 }
 0x175   : > { %v955_v16 = vsel %vm952_vm13, %v945_v50, %v947_v63  ;;  %v949_v27 = vpop.permute.xlu0 %948 }
 0x176   : > { %v965_v30 = vsel %vm4882_vm2, %v955_v16, 0.0  ;;  %v954_v4 = vsel %vm952_vm13, %v947_v63, %v949_v27 }
 0x177   : > { %v969_v48 = vadd.f32 %v965_v30, %v941_v33  ;;  %v966_v43 = vsel %vm4882_vm2, %v954_v4, 0.0 }
 0x178   : > { %v951_v25 = vpop.permute.xlu1 %950  ;;  %v970_v0 = vadd.f32 %v966_v43, %v942_v8 }
 0x179   : > { %v956_v41 = vsel %vm952_vm13, %v951_v25, %v945_v50  ;;  %v953_v22 = vsel %vm952_vm13, %v949_v27, %v951_v25  ;;  %974 = vrot.lane.b32.xlu1 %v969_v48, %s4196_s14  ;;  %vm1097_vm13 = vcmp.ge.s32.totalorder %v4305_v1, 64 }
 0x17a   : > { %v964_v39 = vsel %vm4882_vm2, %v956_v41, 0.0  ;;  %v967_v58 = vsel %vm4882_vm2, %v953_v22, 0.0  ;;  %vm1092_vm2 = vcmp.lt.s32.totalorder %v4305_v1, 64 }
 0x17b   : > { %v968_v37 = vadd.f32 %v964_v39, %v940_v20  ;;  %v971_v12 = vadd.f32 %v967_v58, %v943_v34 }
 0x17d   : > { %972 = vrot.lane.b32.xlu0 %v968_v37, %s4196_s14  ;;  %978 = vrot.lane.b32.xlu1 %v971_v12, %s4196_s14 }
 0x181   : > { %976 = vrot.lane.b32.xlu0 %v970_v0, %s4196_s14 }
 0x1eb   : > { %v975_v5 = vpop.permute.xlu1 %974 }
 0x1ef   : > { %v979_v20 = vpop.permute.xlu1 %978  ;;  %v973_v31 = vpop.permute.xlu0 %972 }
 0x1f0   : > { %v983_v29 = vsel %vm980_vm1, %v973_v31, %v975_v5  ;;  %v984_v33 = vsel %vm980_vm1, %v979_v20, %v973_v31 }
 0x1f1   : > { %v992_v56 = vsel %vm4898_vm6, %v984_v33, 0.0  ;;  %v993_v8 = vsel %vm4898_vm6, %v983_v29, 0.0 }
 0x1f2   : > { %v996_v34 = vadd.f32 %v992_v56, %v968_v37  ;;  %v997_v2 = vadd.f32 %v993_v8, %v969_v48  ;;  %v1014_v48 = vsel %vm1013_vm5, 1, %v4193_v42  ;;  %v1042_v56 = vsel %vm1041_vm15, 1, %v4193_v42 }
 0x1f3   : > { %v977_v60 = vpop.permute.xlu0 %976  ;;  %v1018_v25 = vrot.slane %v1014_v48, %v4861_v52  ;;  %v1046_v8 = vrot.slane %v1042_v56, %v4861_v52 }
 0x1f4   : > { %v981_v50 = vsel %vm980_vm1, %v977_v60, %v979_v20  ;;  %v982_v61 = vsel %vm980_vm1, %v975_v5, %v977_v60  ;;  %1000 = vrot.lane.b32.xlu0 %v996_v34, %s4197_s15  ;;  %1002 = vrot.lane.b32.xlu1 %v997_v2, %s4197_s15  ;;  %vm1233_vm1 = vcmask 1042432  }
 0x1f5   : > { %v994_v63 = vsel %vm4898_vm6, %v982_v61, 0.0  ;;  %v995_v16 = vsel %vm4898_vm6, %v981_v50, 0.0  ;;  %vm4914_vm10 = vcmp.eq.s32.totalorder %v1018_v25, 1  ;;  %vm4930_vm8 = vcmp.eq.s32.totalorder %v1046_v8, 1 }
 0x1f6   : > { %v998_v30 = vadd.f32 %v994_v63, %v970_v0  ;;  %v999_v27 = vadd.f32 %v995_v16, %v971_v12  ;;  %vm1229_vm6 = vcmask 48128  }
 0x1f8   : > { %1004 = vrot.lane.b32.xlu0 %v998_v30, %s4197_s15  ;;  %1006 = vrot.lane.b32.xlu1 %v999_v27, %s4197_s15 }
 0x266   : > { %v1003_v22 = vpop.permute.xlu1 %1002  ;;  %v1001_v4 = vpop.permute.xlu0 %1000 }
 0x267   : > { %v1011_v39 = vsel %vm1008_vm0, %v1001_v4, %v1003_v22 }
 0x268   : > { %v1021_v58 = vsel %vm4914_vm10, %v1011_v39, 0.0 }
 0x269   : > { %v1025_v37 = vadd.f32 %v1021_v58, %v997_v2 }
 0x26a   : > { %v1007_v12 = vpop.permute.xlu1 %1006  ;;  %v1005_v43 = vpop.permute.xlu0 %1004 }
 0x26b   : > { %v1012_v0 = vsel %vm1008_vm0, %v1007_v12, %v1001_v4  ;;  %v1009_v35 = vsel %vm1008_vm0, %v1005_v43, %v1007_v12  ;;  %v1010_v18 = vsel %vm1008_vm0, %v1003_v22, %v1005_v43  ;;  %1030 = vrot.lane.b32.xlu1 %v1025_v37, %s4198_s17 }
 0x26c   : > { %v1020_v5 = vsel %vm4914_vm10, %v1012_v0, 0.0  ;;  %v1023_v7 = vsel %vm4914_vm10, %v1009_v35, 0.0  ;;  %v1022_v29 = vsel %vm4914_vm10, %v1010_v18, 0.0 }
 0x26d   : > { %v1024_v20 = vadd.f32 %v1020_v5, %v996_v34  ;;  %v1027_v31 = vadd.f32 %v1023_v7, %v999_v27  ;;  %v1026_v33 = vadd.f32 %v1022_v29, %v998_v30 }
 0x26f   : > { %1028 = vrot.lane.b32.xlu0 %v1024_v20, %s4198_s17  ;;  %1034 = vrot.lane.b32.xlu1 %v1027_v31, %s4198_s17 }
 0x273   : > { %1032 = vrot.lane.b32.xlu0 %v1026_v33, %s4198_s17 }
 0x2dd   : > { %v1031_v2 = vpop.permute.xlu1 %1030 }
 0x2e1   : > { %v1035_v34 = vpop.permute.xlu1 %1034  ;;  %v1029_v50 = vpop.permute.xlu0 %1028 }
 0x2e2   : > { %v1039_v61 = vsel %vm1036_vm3, %v1029_v50, %v1031_v2  ;;  %v1040_v63 = vsel %vm1036_vm3, %v1035_v34, %v1029_v50 }
 0x2e3   : > { %v1048_v16 = vsel %vm4930_vm8, %v1040_v63, 0.0  ;;  %v1049_v30 = vsel %vm4930_vm8, %v1039_v61, 0.0 }
 0x2e4   : > { %v1052_v27 = vadd.f32 %v1048_v16, %v1024_v20  ;;  %v1053_v48 = vadd.f32 %v1049_v30, %v1025_v37  ;;  %v1070_v37 = vsel %vm1069_vm7, 1, %v4193_v42  ;;  %v1223_v16 = vld [vmem:[%s6067_s3] sm:$0xff]  ;;  %v6482_v30 = vcvt.s32.f32 %v4305_v1 }
 0x2e5   : > { %v1033_v25 = vpop.permute.xlu0 %1032  ;;  %v1074_v43 = vrot.slane %v1070_v37, %v4861_v52 }
 0x2e6   : > { %v1037_v41 = vsel %vm1036_vm3, %v1033_v25, %v1035_v34  ;;  %v1038_v22 = vsel %vm1036_vm3, %v1031_v2, %v1033_v25  ;;  %1056 = vrot.lane.b32.xlu0 %v1052_v27, %s4199_s22  ;;  %1058 = vrot.lane.b32.xlu1 %v1053_v48, %s4199_s22 }
 0x2e7   : > { %v1050_v4 = vsel %vm4930_vm8, %v1038_v22, 0.0  ;;  %v1051_v39 = vsel %vm4930_vm8, %v1037_v41, 0.0  ;;  %vm4946_vm12 = vcmp.eq.s32.totalorder %v1074_v43, 1 }
 0x2e8   : > { %v1054_v58 = vadd.f32 %v1050_v4, %v1026_v33  ;;  %v1055_v12 = vadd.f32 %v1051_v39, %v1027_v31 }
 0x2ea   : > { %1060 = vrot.lane.b32.xlu0 %v1054_v58, %s4199_s22  ;;  %1062 = vrot.lane.b32.xlu1 %v1055_v12, %s4199_s22 }
 0x358   : > { %v1059_v35 = vpop.permute.xlu1 %1058  ;;  %v1057_v18 = vpop.permute.xlu0 %1056 }
 0x359   : > { %v1067_v5 = vsel %vm1064_vm9, %v1057_v18, %v1059_v35 }
 0x35a   : > { %v1077_v7 = vsel %vm4946_vm12, %v1067_v5, 0.0 }
 0x35b   : > { %v1081_v20 = vadd.f32 %v1077_v7, %v1053_v48  ;;  %v1112_v48 = vadd.f32 1.0, %v6482_v30 }
 0x35c   : > { %v1063_v31 = vpop.permute.xlu1 %1062  ;;  %v1061_v29 = vpop.permute.xlu0 %1060 }
 0x35d   : > { %v1068_v33 = vsel %vm1064_vm9, %v1063_v31, %v1057_v18  ;;  %v1065_v56 = vsel %vm1064_vm9, %v1061_v29, %v1063_v31  ;;  %v1066_v8 = vsel %vm1064_vm9, %v1059_v35, %v1061_v29  ;;  %1086 = vrot.lane.b32.xlu1 %v1081_v20, %s4200_s23  ;;  %v1113_v25 = vmul.f32 6.0, %v1112_v48 }
 0x35e   : > { %v1076_v2 = vsel %vm4946_vm12, %v1068_v33, 0.0  ;;  %v1079_v60 = vsel %vm4946_vm12, %v1065_v56, 0.0  ;;  %v1078_v61 = vsel %vm4946_vm12, %v1066_v8, 0.0 }
 0x35f   : > { %v1080_v34 = vadd.f32 %v1076_v2, %v1052_v27  ;;  %v1083_v50 = vadd.f32 %v1079_v60, %v1055_v12  ;;  %v1082_v63 = vadd.f32 %v1078_v61, %v1054_v58  ;;  %v1098_v27 = vsel %vm1097_vm13, 1, %v4193_v42 }
 0x360   : > { %3931 = vrcp.f32 %v1113_v25  ;;  %v1102_v41 = vrot.slane %v1098_v27, %v4861_v52 }
 0x361   : > { %1084 = vrot.lane.b32.xlu0 %v1080_v34, %s4200_s23  ;;  %1090 = vrot.lane.b32.xlu1 %v1083_v50, %s4200_s23 }
 0x362   : > { %vm4967_vm11 = vcmp.eq.s32.totalorder %v1102_v41, 1 }
 0x365   : > { %1088 = vrot.lane.b32.xlu0 %v1082_v63, %s4200_s23 }
 0x369   : > { %1226 = vperm.xlu0 %3930, %v1223_v16  }
 0x36a   : > { %v3932_v43 = vpop.eup %3931 }
 0x36b   : > { %v1144_v25 = vrot.slane %v3932_v43, 7 }
 0x3cf   : > { %v1087_v22 = vpop.permute.xlu1 %1086 }
 0x3d3   : > { %v1091_v39 = vpop.permute.xlu1 %1090  ;;  %v1085_v58 = vpop.permute.xlu0 %1084 }
 0x3d4   : > { %v1095_v12 = vsel %vm1092_vm2, %v1085_v58, %v1087_v22  ;;  %v1096_v37 = vsel %vm1092_vm2, %v1091_v39, %v1085_v58 }
 0x3d5   : > { %v1104_v0 = vsel %vm4967_vm11, %v1096_v37, 0.0  ;;  %v1105_v42 = vsel %vm4967_vm11, %v1095_v12, 0.0 }
 0x3d6   : > { %v1108_v35 = vadd.f32 %v1104_v0, %v1080_v34  ;;  %v1109_v18 = vadd.f32 %v1105_v42, %v1081_v20 }
 0x3d7   : > { %v1089_v5 = vpop.permute.xlu0 %1088 }
 0x3d8   : > { %v1115_v7 = vmul.f32 %v3932_v43, %v1108_v35  ;;  %v1116_v31 = vmul.f32 %v3932_v43, %v1109_v18  ;;  %v1093_v29 = vsel %vm1092_vm2, %v1089_v5, %v1091_v39  ;;  %v1094_v33 = vsel %vm1092_vm2, %v1087_v22, %v1089_v5 }
 0x3d9   : > { %v1106_v56 = vsel %vm4967_vm11, %v1094_v33, 0.0  ;;  %v1107_v8 = vsel %vm4967_vm11, %v1093_v29, 0.0 }
 0x3da   : > { %v1119_v2 = vmul.f32 2.0, %v1115_v7  ;;  %v1120_v60 = vmul.f32 2.0, %v1116_v31  ;;  %v1110_v61 = vadd.f32 %v1106_v56, %v1082_v63  ;;  %v1111_v16 = vadd.f32 %v1107_v8, %v1083_v50 }
 0x3db   : > { %v1150_v58 = vmul.f32 %v1115_v7, %v1115_v7  ;;  %v1151_v39 = vmul.f32 %v1116_v31, %v1116_v31 }
 0x3dc   : > { %v1123_v30 = vmul.f32 %v1119_v2, %v1108_v35  ;;  %v1124_v48 = vmul.f32 %v1120_v60, %v1109_v18  ;;  %v1117_v34 = vmul.f32 %v3932_v43, %v1110_v61  ;;  %v1118_v20 = vmul.f32 %v3932_v43, %v1111_v16 }
 0x3dd   : > { %v1158_v33 = vrot.slane %v1150_v58, 7  ;;  %v1159_v63 = vrot.slane %v1151_v39, 7 }
 0x3de   : > { %v1131_v27 = vrot.slane %v1123_v30, 7  ;;  %v1132_v41 = vrot.slane %v1124_v48, 7  ;;  %v1121_v22 = vmul.f32 2.0, %v1117_v34  ;;  %v1122_v12 = vmul.f32 2.0, %v1118_v20 }
 0x3df   : > { %v1152_v8 = vmul.f32 %v1117_v34, %v1117_v34  ;;  %v1153_v2 = vmul.f32 %v1118_v20, %v1118_v20 }
 0x3e0   : > { %v1139_v37 = vsub.f32 %v1108_v35, %v1131_v27  ;;  %v1140_v0 = vsub.f32 %v1109_v18, %v1132_v41  ;;  %v1125_v42 = vmul.f32 %v1121_v22, %v1110_v61  ;;  %v1126_v4 = vmul.f32 %v1122_v12, %v1111_v16 }
 0x3e1   : > { %v1160_v35 = vrot.slane %v1152_v8, 7  ;;  %v1161_v18 = vrot.slane %v1153_v2, 7  ;;  %v1200_v22 = vsub.s32 1, %v4328_v3  ;;  %v1173_v12 = vrot.slane %v1115_v7, %v4861_v52 }
 0x3e2   : > { %v1146_v5 = vmul.f32 %v1144_v25, %v1139_v37  ;;  %v1147_v29 = vmul.f32 %v1144_v25, %v1140_v0  ;;  %v1133_v50 = vrot.slane %v1125_v42, 7  ;;  %v1134_v56 = vrot.slane %v1126_v4, 7 }
 0x3e3   : > { %v1185_v42 = vrot.slane %v1118_v20, %v4861_v52 }
 0x3e4   : > { %v1166_v60 = vadd.f32 %v1158_v33, %v1146_v5  ;;  %v1167_v43 = vadd.f32 %v1159_v63, %v1147_v29  ;;  %v1141_v30 = vsub.f32 %v1110_v61, %v1133_v50  ;;  %v1142_v48 = vsub.f32 %v1111_v16, %v1134_v56 }
 0x3e5   : > { %v1177_v61 = vrot.slane %v1116_v31, %v4861_v52  ;;  %v1189_v50 = vsub.f32 %v4829_v9, %v1185_v42  ;;  %v4201_v9 = vmov 0.0  }
 0x3e6   : > { %v1190_v1 = vadd.f32 1e-08, %v1166_v60  ;;  %v1191_v59 = vadd.f32 1e-08, %v1167_v43  ;;  %v1148_v57 = vmul.f32 %v1144_v25, %v1141_v30  ;;  %v1149_v44 = vmul.f32 %v1144_v25, %v1142_v48  ;;  %1332 = vst [vmem:[#allocation3] sm:$0xff] %v4201_v9  ;;  %1333 = vst [vmem:[#allocation3 + $0x8] sm:$0xff] %v4201_v9 }
 0x3e7   : > { %v1186_v25 = vsub.f32 %v4824_v6, %v1173_v12  ;;  %1334 = vst [vmem:[#allocation3 + $0x10] sm:$0xff] %v4201_v9  ;;  %1335 = vst [vmem:[#allocation3 + $0x18] sm:$0xff] %v4201_v9 }
 0x3e8   : > { %3933 = vrsqrt.f32 %v1190_v1  ;;  %v1168_v27 = vadd.f32 %v1160_v35, %v1148_v57  ;;  %v1169_v41 = vadd.f32 %v1161_v18, %v1149_v44  ;;  %v1187_v1 = vsub.f32 %v4843_v10, %v1177_v61  ;;  %v1227_v2 = vpop.permute.xlu0 %1226 }
 0x3e9   : > { %3935 = vrsqrt.f32 %v1191_v59  ;;  %v1181_v57 = vrot.slane %v1117_v34, %v4861_v52  ;;  %v1218_v52 = vld [vmem:[%s6066_s2] sm:$0xf] }
 0x3ea   : > { %v1192_v58 = vadd.f32 1e-08, %v1168_v27  ;;  %v1193_v39 = vadd.f32 1e-08, %v1169_v41 }
 0x3eb   : > { %v1188_v31 = vsub.f32 %v4815_v14, %v1181_v57 }
 0x3ec   : > { %3937 = vrsqrt.f32 %v1192_v58 }
 0x3ed   : > { %3939 = vrsqrt.f32 %v1193_v39 }
 0x3f2   : > { %v3934_v16 = vpop.eup %3933 }
 0x3f3   : > { %v3936_v37 = vpop.eup %3935  ;;  %v1201_v0 = vrot.slane %v3934_v16, %v1200_v22 }
 0x3f4   : > { %v1205_v59 = vrot.slane %v3936_v37, %v1200_v22 }
 0x3f5   : > { %v1214_v44 = vmul.f32 %v1201_v0, %v1186_v25 }
 0x3f6   : > { %v1215_v4 = vmul.f32 %v1205_v59, %v1187_v1  ;;  %v3938_v5 = vpop.eup %3937 }
 0x3f7   : > { %v1219_v29 = vpack.c.bf16 %v1214_v44, %v1214_v44  ;;  %v3940_v7 = vpop.eup %3939  ;;  %v1209_v63 = vrot.slane %v3938_v5, %v1200_v22 }
 0x3f8   : > { %v1220_v33 = vpack.c.bf16 %v1215_v4, %v1215_v4  ;;  %v1213_v10 = vrot.slane %v3940_v7, %v1200_v22 }
 0x3f9   : > { %v1235_v6 = vsel %vm1233_vm1, %v1219_v29, 0  ;;  %v1216_v34 = vmul.f32 %v1209_v63, %v1188_v31 }
 0x3fa   : > { %3290 = vmatprep.subr.msk.bf16.mxu0 %vm1233_vm1, %v1220_v33  ;;  %v1217_v56 = vmul.f32 %v1213_v10, %v1189_v50 }
 0x3fb   : > { %1247 = vmatpush1.bf16.msra.mxu0 %v1235_v6  ;;  %v1221_v20 = vpack.c.bf16 %v1216_v34, %v1216_v34 }
 0x3fc   : > { %v1222_v8 = vpack.c.bf16 %v1217_v56, %v1217_v56 }
 0x3fd   : > { %v1241_v14 = vsel %vm1233_vm1, %v1221_v20, 0 }
 0x3fe   : > { %3291 = vmatmul.mubr.msk.bf16.vlgmr.msra.gmra.mrb[0].mxu0 %vm1229_vm6, %v1218_v52  ;;  %3292 = vmatprep.subr.msk.bf16.mxu1 %vm1233_vm1, %v1222_v8 }
 0x3ff   : > { %1288 = vmatpush1.bf16.msra.mxu1 %v1241_v14 }
 0x402   : > { %3293 = vmatmul.mubr.msk.bf16.vlgmr.msra.gmra.mrb[0].mxu1 %vm1229_vm6, %v1218_v52 }
 0x4d1   : > { %v1280_v60 = vpop.f32.mrb[0].mxu0 }
 0x4d2   : > { %v1282_v43 = vpop.f32.mrb[1].mxu0  ;;  %v1281_v30 = vadd.f32 %v1280_v60, %v1227_v2 }
 0x4d3   : > { %v1284_v48 = vpop.f32.mrb[2].mxu0  ;;  %v1283_v35 = vadd.f32 %v1282_v43, %v1227_v2 }
 0x4d4   : > { %v1285_v18 = vpop.f32.mrb[3].mxu0  ;;  %1328 = vst [vmem:[#allocation2] sm:$0xff] %v1281_v30 }
 0x4d5   : > { %1329 = vst [vmem:[#allocation2 + $0x8] sm:$0xff] %v1283_v35  ;;  %v1321_v27 = vpop.f32.mrb[0].mxu1 }
 0x4d6   : > { %v1322_v41 = vadd.f32 %v1321_v27, %v1227_v2  ;;  %v1323_v58 = vpop.f32.mrb[1].mxu1 }
 0x4d7   : > { %v1324_v39 = vadd.f32 %v1323_v58, %v1227_v2  ;;  %v1325_v22 = vpop.f32.mrb[2].mxu1 }
 0x4d8   : > { %1330 = vst [vmem:[#allocation2 + $0x10] sm:$0xff] %v1322_v41  ;;  %v1326_v12 = vpop.f32.mrb[3].mxu1 }
 0x4d9   : > { %1331 = vst [vmem:[#allocation2 + $0x18] sm:$0xff] %v1324_v39 }
 0x4da PF: > { %vm6225_vm5 = vcmask 1043456   ;;  %v6250_v57 = vmov 0   ;;  %v5015_v42 = vld [vmem:[%s4316_s30] sm:$0xff]  ;;  %v4203_v4 = vmov 4   ;;  %vm6489_vm0 = vnez %v6326_v45  ;;  %v5033_v33 = vld [vmem:[%s4316_s30 + $0x8] sm:$0xff]  ;;  %v6515_v6 = vld [vmem:[#allocation29_spill] sm:$0xff] }
 0x4db   : > { %v4999_v37 = vld [vmem:[#allocation2] sm:$0xff]  ;;  %1412 = vmatprep.mubr.bf16.mxu0 %v6250_v57  ;;  %1455 = vmatprep.mubr.bf16.mxu1 %v6250_v57  ;;  %vm6490_vm10 = vnez %v6328_v47  ;;  %vm6227_vm3 = vcmask 64512   ;;  %vm6491_vm8 = vnez %v6418_v46  ;;  %vm6492_vm7 = vnez %v6420_v54  ;;  %v6519_v10 = vld [vmem:[#allocation57_spill] sm:$0xff]  ;;  %v6523_v56 = vld [vmem:[#allocation15_spill] sm:$0xff] }
 0x4dc   : > { %v4995_v61 = vld [vmem:[#allocation2 + $0x8] sm:$0xff]  ;;  %6487 = vst [vmem:[#allocation73_spill] sm:$0xff] %v4999_v37  ;;  %v1344_v1 = vpack.c.bf16 %v4999_v37, %v4999_v37  ;;  %3941 = vset.pattern.permute.xlu0 %v6250_v57  ;;  %3942 = vset.pattern.permute.xlu1 %v4203_v4  ;;  %v3947_v29 = vld [vmem:[%s4311_s27] sm:$0xff]   ;;  %vm3611_vm15 = vmpackc.low %vm6490_vm10, %vm6489_vm0  ;;  %vm6493_vm12 = vnez %v6280_v13  ;;  %vm6494_vm13 = vnez %v6282_v15  ;;  %v6252_v31 = vmov 1.0|1.0   ;;  %s1977_s27 = sld [smem:[#allocation5 + %s4117_s18]] }
 0x4dd   : > { %6485 = vst [vmem:[#allocation71_spill] sm:$0xff] %v4995_v61  ;;  %v1345_v25 = vpack.c.bf16 %v4995_v61, %v4995_v61  ;;  %1350 = vperm.xlu0 %3941, %v5015_v42   ;;  %vm6226_vm9 = vmpackc.low %vm6492_vm7, %vm6491_vm8  ;;  %1475 = vperm.xlu1 %3942, %v5015_v42   ;;  %vm6495_vm11 = vnez %v6372_v24  ;;  %vm6496_vm1 = vnez %v6374_v28  ;;  %vm6498_vm2 = vnez %v6333_v51  ;;  %v6513_v63 = vld [vmem:[#allocation42_spill] sm:$0xff]  ;;  %v6525_v52 = vld [vmem:[#allocation16_spill] sm:$0xff] }
 0x4de   : > { %v1369_v5 = vsel %vm6225_vm5, %v1344_v1, 0  ;;  %vm3645_vm6 = vmpackc.low %vm6496_vm1, %vm6495_vm11  ;;  %vm6499_vm10 = vnez %v6422_v62  ;;  %vm6500_vm8 = vnez %v6425_v11  ;;  %vm6506_vm1 = vnez %v6336_v53  ;;  %v6517_v50 = vld [vmem:[#allocation30_spill] sm:$0xff]  ;;  %v6527_v20 = vld [vmem:[#allocation43_spill] sm:$0xff] }
 0x4df   : > { %v5007_v59 = vld [vmem:[#allocation2 + $0x10] sm:$0xff]  ;;  %3295 = vmatprep.subr.msk.bf16.mxu0 %vm6225_vm5, %v1345_v25  ;;  %vm3647_vm7 = vmpackc.low %vm6500_vm8, %vm6499_vm10  ;;  %vm6507_vm10 = vnez %v6339_v55  ;;  %v6521_v34 = vld [vmem:[#allocation58_spill] sm:$0xff] }
 0x4e0   : > { %v4997_v16 = vld [vmem:[#allocation2 + $0x18] sm:$0xff]  ;;  %6488 = vst [vmem:[#allocation74_spill] sm:$0xff] %v5007_v59  ;;  %v1346_v44 = vpack.c.bf16 %v5007_v59, %v5007_v59  ;;  %1381 = vmatpush1.bf16.msra.mxu0 %v1369_v5  ;;  %vm6229_vm8 = vmpackc.low %vm6507_vm10, %vm6506_vm1  ;;  %vm6512_vm1 = vnez %v6382_v40  ;;  %vm6514_vm10 = vnez %v6513_v63  ;;  %v6529_v8 = vld [vmem:[#allocation44_spill] sm:$0xff] }
 0x4e1   : > { %6486 = vst [vmem:[#allocation72_spill] sm:$0xff] %v4997_v16  ;;  %v1347_v0 = vpack.c.bf16 %v4997_v16, %v4997_v16  ;;  %3612 = vmatprep.subr.msk.bf16.mxu0 %vm3611_vm15, %v6252_v31  ;;  %1355 = vperm.xlu0 %3941, %v5033_v33   ;;  %v6531_v14 = vld [vmem:[#allocation31_spill] sm:$0xff]  ;;  %v6533_v9 = vld [vmem:[#allocation32_spill] sm:$0xff]  ;;  %v6539_v43 = vld [vmem:[#allocation17_spill] sm:$0xff] }
 0x4e2   : > { %v1375_v7 = vsel %vm6225_vm5, %v1346_v44, 0  ;;  %1479 = vperm.xlu1 %3942, %v5033_v33   ;;  %v6535_v2 = vld [vmem:[#allocation59_spill] sm:$0xff]  ;;  %v6537_v60 = vld [vmem:[#allocation60_spill] sm:$0xff]  ;;  %v6541_v30 = vld [vmem:[#allocation18_spill] sm:$0xff]  ;;  %p1978_p11 = scmp.gt.s32.totalorder %s1977_s27, 0  ;;  %p3369_p12 = scmp.lt.s32.totalorder %s1977_s27, 1 }
 0x4e3   : > { %3297 = vmatprep.subr.msk.bf16.mxu1 %vm6225_vm5, %v1347_v0  ;;  %3296 = vmatmul.mubr.msk.bf16.vlgmr.msra.gmra.mrb[0].mxu0 %vm6227_vm3, %v3947_v29  ;;  %vm6497_vm5 = vnez %v6330_v49  ;;  %v6543_v48 = vld [vmem:[#allocation45_spill] sm:$0xff]  ;;  %v6545_v35 = vld [vmem:[#allocation46_spill] sm:$0xff]  ;;  %v6555_v39 = vld [vmem:[#allocation19_spill] sm:$0xff] }
 0x4e4   : > { %1424 = vmatpush1.bf16.msra.mxu1 %v1375_v7  ;;  %vm3615_vm0 = vmpackc.low %vm6498_vm2, %vm6497_vm5  ;;  %vm6504_vm5 = vnez %v6376_v32  ;;  %vm6505_vm2 = vnez %v6379_v36  ;;  %v6547_v18 = vld [vmem:[#allocation33_spill] sm:$0xff]  ;;  %v6549_v27 = vld [vmem:[#allocation34_spill] sm:$0xff]  ;;  %s1979_s30 = scalar_select %p1978_p11, %s1977_s27, 0 }
 0x4e5   : > { %3644 = vmatprep.subr.msk.bf16.mxu1 %vm6226_vm9, %v6252_v31  ;;  %vm6501_vm9 = vmpackc.low %vm6494_vm13, %vm6493_vm12  ;;  %vm6503_vm12 = vnez %v6287_v19  ;;  %v6551_v41 = vld [vmem:[#allocation61_spill] sm:$0xff]  ;;  %v6553_v58 = vld [vmem:[#allocation62_spill] sm:$0xff] }
 0x4e6   : > { %3614 = vmatpush3.bf16.msk.msra.mxu0 %vm6501_vm9, %v6252_v31  ;;  %vm6502_vm9 = vnez %v6284_v17  ;;  %vm6228_vm11 = vmpackc.low %vm6505_vm2, %vm6504_vm5  ;;  %vm6510_vm5 = vnez %v6290_v21  ;;  %vm6511_vm2 = vnez %v6293_v23  ;;  %v6557_v22 = vld [vmem:[#allocation20_spill] sm:$0xff]  ;;  %v6559_v12 = vld [vmem:[#allocation47_spill] sm:$0xff]  ;;  %s6786_s30 = smov (!%p3369_p12, %s1979_s30), 1 }
 0x4e7   : > { %3298 = vmatmul.mubr.msk.bf16.vlgmr.msra.gmra.mrb[0].mxu1 %vm6227_vm3, %v3947_v29  ;;  %3616 = vmatprep.subr.msk.bf16.mxu0 %vm3615_vm0, %v6252_v31  ;;  %vm3617_vm13 = vmpackc.low %vm6503_vm12, %vm6502_vm9  ;;  %vm6508_vm9 = vnez %v6428_v26  ;;  %vm6509_vm12 = vnez %v6431_v38  ;;  %v6561_v25 = vld [vmem:[#allocation48_spill] sm:$0xff]  ;;  %v6563_v0 = vld [vmem:[#allocation35_spill] sm:$0xff]  ;;  %p1982_p13 = scmp.ne.s32.totalorder %s6786_s30, 0  ;;  %p3374_p0 = scmp.eq.s32.totalorder %s6786_s30, 0 }
 0x4e8   : > { %3646 = vmatpush3.bf16.msk.msra.mxu1 %vm3645_vm6, %v6252_v31  ;;  %vm6230_vm3 = vmpackc.low %vm6509_vm12, %vm6508_vm9  ;;  %vm6516_vm9 = vnez %v6515_v6  ;;  %vm6518_vm12 = vnez %v6517_v50  ;;  %v6565_v1 = vld [vmem:[#allocation36_spill] sm:$0xff]  ;;  %v6567_v44 = vld [vmem:[#allocation63_spill] sm:$0xff]  ;;  %s4210_s29 = smov (!%p3374_p0), 2   ;;  %s4211_s11 = smov (!%p3374_p0), 126  }
 0x4e9   : > { %3648 = vmatprep.subr.msk.bf16.mxu1 %vm3647_vm7, %v6252_v31  ;;  %v6569_v4 = vld [vmem:[#allocation64_spill] sm:$0xff]  ;;  %v6571_v5 = vld [vmem:[#allocation21_spill] sm:$0xff]  ;;  %v6573_v29 = vld [vmem:[#allocation22_spill] sm:$0xff] }
 0x4ea   : > { %3618 = vmatpush3.bf16.msk.msra.mxu0 %vm3617_vm13, %v6252_v31  ;;  %v6575_v7 = vld [vmem:[#allocation49_spill] sm:$0xff]  ;;  %v6577_v63 = vld [vmem:[#allocation50_spill] sm:$0xff] }
 0x4eb   : > { %3620 = vmatprep.subr.msk.bf16.mxu0 %vm6229_vm8, %v6252_v31  ;;  %vm6232_vm8 = vmpackc.low %vm6514_vm10, %vm6512_vm1  ;;  %vm6524_vm1 = vnez %v6523_v56  ;;  %vm6526_vm10 = vnez %v6525_v52  ;;  %v6579_v6 = vld [vmem:[#allocation37_spill] sm:$0xff]  ;;  %v6581_v50 = vld [vmem:[#allocation38_spill] sm:$0xff] }
 0x4ec   : > { %3650 = vmatpush3.bf16.msk.msra.mxu1 %vm6228_vm11, %v6252_v31  ;;  %vm6231_vm11 = vmpackc.low %vm6511_vm2, %vm6510_vm5  ;;  %vm6520_vm5 = vnez %v6519_v10  ;;  %vm6522_vm2 = vnez %v6521_v34  ;;  %v6585_v56 = vld [vmem:[#allocation23_spill] sm:$0xff]  ;;  %v6587_v52 = vld [vmem:[#allocation24_spill] sm:$0xff] }
 0x4ed   : > { %3652 = vmatprep.subr.msk.bf16.mxu1 %vm6230_vm3, %v6252_v31  ;;  %vm6233_vm3 = vmpackc.low %vm6518_vm12, %vm6516_vm9  ;;  %vm6528_vm9 = vnez %v6527_v20  ;;  %vm6530_vm12 = vnez %v6529_v8  ;;  %v6589_v20 = vld [vmem:[#allocation51_spill] sm:$0xff]  ;;  %v6591_v8 = vld [vmem:[#allocation52_spill] sm:$0xff] }
 0x4ee   : > { %3622 = vmatpush3.bf16.msk.msra.mxu0 %vm6231_vm11, %v6252_v31  ;;  %vm6234_vm11 = vmpackc.low %vm6522_vm2, %vm6520_vm5  ;;  %vm6532_vm5 = vnez %v6531_v14  ;;  %vm6534_vm2 = vnez %v6533_v9  ;;  %v6593_v14 = vld [vmem:[#allocation68_spill] sm:$0xff]  ;;  %v6595_v9 = vld [vmem:[#allocation70_spill] sm:$0xff] }
 0x4ef   : > { %3624 = vmatprep.subr.msk.bf16.mxu0 %vm6233_vm3, %v6252_v31  ;;  %vm6236_vm3 = vmpackc.low %vm6530_vm12, %vm6528_vm9  ;;  %vm6540_vm9 = vnez %v6539_v43  ;;  %vm6542_vm12 = vnez %v6541_v30 }
 0x4f0   : > { %3654 = vmatpush3.bf16.msk.msra.mxu1 %vm6232_vm8, %v6252_v31  ;;  %vm6235_vm8 = vmpackc.low %vm6526_vm10, %vm6524_vm1  ;;  %vm6536_vm1 = vnez %v6535_v2  ;;  %vm6538_vm10 = vnez %v6537_v60 }
 0x4f1   : > { %3656 = vmatprep.subr.msk.bf16.mxu1 %vm6234_vm11, %v6252_v31  ;;  %vm6237_vm11 = vmpackc.low %vm6534_vm2, %vm6532_vm5  ;;  %vm6544_vm5 = vnez %v6543_v48  ;;  %vm6546_vm2 = vnez %v6545_v35 }
 0x4f2   : > { %3626 = vmatpush3.bf16.msk.msra.mxu0 %vm6235_vm8, %v6252_v31  ;;  %vm6238_vm8 = vmpackc.low %vm6538_vm10, %vm6536_vm1  ;;  %vm6548_vm1 = vnez %v6547_v18  ;;  %vm6550_vm10 = vnez %v6549_v27 }
 0x4f3   : > { %3628 = vmatprep.subr.msk.bf16.mxu0 %vm6237_vm11, %v6252_v31  ;;  %vm6240_vm11 = vmpackc.low %vm6546_vm2, %vm6544_vm5  ;;  %vm6556_vm5 = vnez %v6555_v39  ;;  %vm6558_vm2 = vnez %v6557_v22 }
 0x4f4   : > { %3658 = vmatpush3.bf16.msk.msra.mxu1 %vm6236_vm3, %v6252_v31  ;;  %vm6239_vm3 = vmpackc.low %vm6542_vm12, %vm6540_vm9  ;;  %vm6552_vm9 = vnez %v6551_v41  ;;  %vm6554_vm12 = vnez %v6553_v58 }
 0x4f5   : > { %3660 = vmatprep.subr.msk.bf16.mxu1 %vm6238_vm8, %v6252_v31  ;;  %vm6241_vm8 = vmpackc.low %vm6550_vm10, %vm6548_vm1  ;;  %vm6560_vm1 = vnez %v6559_v12  ;;  %vm6562_vm10 = vnez %v6561_v25 }
 0x4f6   : > { %3630 = vmatpush3.bf16.msk.msra.mxu0 %vm6239_vm3, %v6252_v31  ;;  %vm6242_vm3 = vmpackc.low %vm6554_vm12, %vm6552_vm9  ;;  %vm6564_vm9 = vnez %v6563_v0  ;;  %vm6566_vm12 = vnez %v6565_v1 }
 0x4f7   : > { %3632 = vmatprep.subr.msk.bf16.mxu0 %vm6241_vm8, %v6252_v31  ;;  %vm6244_vm8 = vmpackc.low %vm6562_vm10, %vm6560_vm1  ;;  %vm6572_vm1 = vnez %v6571_v5  ;;  %vm6574_vm10 = vnez %v6573_v29 }
 0x4f8   : > { %3662 = vmatpush3.bf16.msk.msra.mxu1 %vm6240_vm11, %v6252_v31  ;;  %vm6243_vm11 = vmpackc.low %vm6558_vm2, %vm6556_vm5  ;;  %vm6568_vm5 = vnez %v6567_v44  ;;  %vm6570_vm2 = vnez %v6569_v4 }
 0x4f9   : > { %3664 = vmatprep.subr.msk.bf16.mxu1 %vm6242_vm3, %v6252_v31  ;;  %vm6245_vm3 = vmpackc.low %vm6566_vm12, %vm6564_vm9  ;;  %vm6576_vm9 = vnez %v6575_v7  ;;  %vm6578_vm12 = vnez %v6577_v63 }
 0x4fa   : > { %3634 = vmatpush3.bf16.msk.msra.mxu0 %vm6243_vm11, %v6252_v31  ;;  %vm6246_vm11 = vmpackc.low %vm6570_vm2, %vm6568_vm5  ;;  %vm6580_vm5 = vnez %v6579_v6  ;;  %vm6582_vm2 = vnez %v6581_v50 }
 0x4fb   : > { %3636 = vmatprep.subr.msk.bf16.mxu0 %vm6245_vm3, %v6252_v31  ;;  %vm6249_vm3 = vmpackc.low %vm6578_vm12, %vm6576_vm9  ;;  %vm6588_vm9 = vnez %v6587_v52 }
 0x4fc   : > { %3666 = vmatpush3.bf16.msk.msra.mxu1 %vm6244_vm8, %v6252_v31  ;;  %vm3637_vm8 = vmpackc.low %vm6574_vm10, %vm6572_vm1  ;;  %vm6586_vm10 = vnez %v6585_v56 }
 0x4fd   : > { %3668 = vmatprep.subr.msk.bf16.mxu1 %vm6246_vm11, %v6252_v31  ;;  %vm6247_vm11 = vmpackc.low %vm6582_vm2, %vm6580_vm5  ;;  %vm6590_vm5 = vnez %v6589_v20  ;;  %vm6592_vm2 = vnez %v6591_v8 }
 0x4fe   : > { %3638 = vmatpush3.bf16.msk.msra.mxu0 %vm3637_vm8, %v6252_v31  ;;  %vm6248_vm1 = vmpackc.low %vm4795_vm14, %vm4791_vm4 }
 0x4ff   : > { %3640 = vmatprep.subr.msk.bf16.mxu0 %vm6247_vm11, %v6252_v31  ;;  %vm3641_vm12 = vmpackc.low %vm6588_vm9, %vm6586_vm10 }
 0x500   : > { %3670 = vmatpush3.bf16.msk.msra.mxu1 %vm6249_vm3, %v6252_v31  ;;  %vm6277_vm11 = vmpackc.low %vm6592_vm2, %vm6590_vm5 }
 0x501   : > { %3672 = vmatprep.subr.msk.bf16.mxu1 %vm6248_vm1, %v6252_v31  ;;  %vm6594_vm1 = vcmask 1043456  }
 0x502   : > { %3642 = vmatpush3.bf16.msk.msra.mxu0 %vm3641_vm12, %v6252_v31  ;;  %vm6596_vm3 = vmmov %vm6594_vm1 }
 0x503   : > { %3363 = vmatprep.subr.msk.mxu0 %vm6594_vm1, %v6593_v14 }
 0x504   : > { %3674 = vmatpush3.bf16.msk.msra.mxu1 %vm6277_vm11, %v6252_v31 }
 0x505   : > { %3366 = vmatprep.subr.msk.mxu1 %vm6596_vm3, %v6595_v9 }
 0x55c   : > { %v1351_v2 = vpop.permute.xlu0 %1350  ;;  %v1476_v60 = vpop.permute.xlu1 %1475 }
 0x560   : > { %v1356_v43 = vpop.permute.xlu0 %1355 }
 0x561   : > { %v1480_v63 = vpop.permute.xlu1 %1479 }
 0x5b6   : > { %v1414_v30 = vpop.f32.mrb[0].mxu0 }
 0x5b7   : > { %v1415_v48 = vadd.f32 %v1414_v30, %v1351_v2  ;;  %v1416_v18 = vpop.f32.mrb[1].mxu0 }
 0x5b8   : > { %v1417_v41 = vadd.f32 %v1416_v18, %v1351_v2  ;;  %v1418_v39 = vpop.f32.mrb[2].mxu0 }
 0x5b9   : > { %vm1466_vm10 = vcmp.ge.f32.partialorder %v1415_v48, 0.0  ;;  %v1482_v22 = vmul.f32 %v1476_v60, %v1415_v48  ;;  %v1419_v25 = vadd.f32 %v1418_v39, %v1356_v43  ;;  %v1420_v1 = vpop.f32.mrb[3].mxu0 }
 0x5ba   : > { %v1457_v35 = vpop.f32.mrb[0].mxu1  ;;  %vm1467_vm3 = vcmp.ge.f32.partialorder %v1417_v41, 0.0  ;;  %v1483_v4 = vmul.f32 %v1476_v60, %v1417_v41  ;;  %v1421_v9 = vadd.f32 %v1420_v1, %v1356_v43 }
 0x5bb   : > { %v1458_v27 = vadd.f32 %v1457_v35, %v1351_v2  ;;  %v1459_v58 = vpop.f32.mrb[1].mxu1  ;;  %v5355_v29 = vsel %vm1466_vm10, %v1415_v48, %v1482_v22  ;;  %vm1470_vm5 = vcmp.ge.f32.partialorder %v1419_v25, 0.0  ;;  %v1486_v10 = vmul.f32 %v1480_v63, %v1419_v25 }
 0x5bc   : > { %v1460_v12 = vadd.f32 %v1459_v58, %v1351_v2  ;;  %v1461_v0 = vpop.f32.mrb[2].mxu1  ;;  %v5359_v50 = vsel %vm1467_vm3, %v1417_v41, %v1483_v4  ;;  %v1526_v34 = vmul.f32 %v5355_v29, %v5355_v29  ;;  %vm1471_vm10 = vcmp.ge.f32.partialorder %v1421_v9, 0.0 }
 0x5bd   : > { %vm1468_vm1 = vcmp.ge.f32.partialorder %v1458_v27, 0.0  ;;  %v1484_v44 = vmul.f32 %v1476_v60, %v1458_v27  ;;  %v1463_v5 = vpop.f32.mrb[3].mxu1  ;;  %v1527_v52 = vmul.f32 %v5359_v50, %v5359_v50  ;;  %v1462_v20 = vadd.f32 %v1461_v0, %v1356_v43 }
 0x5be   : > { %vm1469_vm9 = vcmp.ge.f32.partialorder %v1460_v12, 0.0  ;;  %v1485_v7 = vmul.f32 %v1476_v60, %v1460_v12  ;;  %v5369_v14 = vsel %vm1470_vm5, %v1419_v25, %v1486_v10  ;;  %v1464_v2 = vadd.f32 %v1463_v5, %v1356_v43 }
 0x5bf   : > { %v5357_v6 = vsel %vm1468_vm1, %v1458_v27, %v1484_v44  ;;  %v1498_v60 = vadd.f32 %v5369_v14, %v5355_v29  ;;  %v1530_v30 = vmul.f32 %v5369_v14, %v5369_v14  ;;  %vm1472_vm2 = vcmp.ge.f32.partialorder %v1462_v20, 0.0 }
 0x5c0   : > { %v1528_v56 = vmul.f32 %v5357_v6, %v5357_v6  ;;  %v5367_v8 = vsel %vm1469_vm9, %v1460_v12, %v1485_v7  ;;  %v1488_v48 = vmul.f32 %v1480_v63, %v1462_v20  ;;  %v1487_v35 = vmul.f32 %v1480_v63, %v1421_v9 }
 0x5c1   : > { %vm1473_vm1 = vcmp.ge.f32.partialorder %v1464_v2, 0.0  ;;  %v1489_v18 = vmul.f32 %v1480_v63, %v1464_v2  ;;  %v1529_v27 = vmul.f32 %v5367_v8, %v5367_v8  ;;  %v1499_v41 = vrot.slane %v1498_v60, 4 }
 0x5c2   : > { %v1534_v58 = vadd.f32 %v1530_v30, %v1526_v34  ;;  %v5377_v39 = vsel %vm1472_vm2, %v1462_v20, %v1488_v48  ;;  %v5383_v12 = vsel %vm1471_vm10, %v1421_v9, %v1487_v35  ;;  %vm6276_vm3 = vcmask 1040384  }
 0x5c3   : > { %v1512_v43 = vadd.f32 %v5377_v39, %v5357_v6  ;;  %v1532_v22 = vmul.f32 %v5377_v39, %v5377_v39  ;;  %v5385_v25 = vsel %vm1473_vm1, %v1464_v2, %v1489_v18  ;;  %v1500_v0 = vadd.f32 %v1499_v41, %v1498_v60 }
 0x5c4   : > { %v1535_v1 = vrot.slane %v1534_v58, 4  ;;  %v1505_v44 = vadd.f32 %v5383_v12, %v5359_v50  ;;  %v1531_v4 = vmul.f32 %v5383_v12, %v5383_v12  ;;  %v1519_v63 = vadd.f32 %v5385_v25, %v5367_v8 }
 0x5c5   : > { %v1513_v5 = vrot.slane %v1512_v43, 4  ;;  %v1548_v7 = vadd.f32 %v1532_v22, %v1528_v56  ;;  %v1533_v10 = vmul.f32 %v5385_v25, %v5385_v25  ;;  %v1501_v34 = vrot.slane %v1500_v0, 2 }
 0x5c6   : > { %v1536_v20 = vadd.f32 %v1535_v1, %v1534_v58  ;;  %v1506_v9 = vrot.slane %v1505_v44, 4  ;;  %v1541_v2 = vadd.f32 %v1531_v4, %v1527_v52  ;;  %v1520_v48 = vrot.slane %v1519_v63, 4 }
 0x5c7   : > { %v1514_v60 = vadd.f32 %v1513_v5, %v1512_v43  ;;  %v1549_v30 = vrot.slane %v1548_v7, 4  ;;  %v1555_v35 = vadd.f32 %v1533_v10, %v1529_v27  ;;  %v1502_v23 = vadd.f32 %v1501_v34, %v1500_v0 }
 0x5c8   : > { %v1507_v18 = vadd.f32 %v1506_v9, %v1505_v44  ;;  %v1542_v41 = vrot.slane %v1541_v2, 4  ;;  %v1537_v57 = vrot.slane %v1536_v20, 2  ;;  %v1521_v56 = vadd.f32 %v1520_v48, %v1519_v63 }
 0x5c9   : > { %v1515_v31 = vrot.slane %v1514_v60, 2  ;;  %v1550_v16 = vadd.f32 %v1549_v30, %v1548_v7  ;;  %v1556_v22 = vrot.slane %v1555_v35, 4  ;;  %v1503_v63 = vrot.slane %v1502_v23, 1 }
 0x5ca   : > { %v1508_v59 = vrot.slane %v1507_v18, 2  ;;  %v1543_v61 = vadd.f32 %v1542_v41, %v1541_v2  ;;  %v1538_v37 = vadd.f32 %v1537_v57, %v1536_v20  ;;  %v1522_v40 = vrot.slane %v1521_v56, 2  ;;  %v6599_v41 = vld [vmem:[#allocation69_spill] sm:$0xff] }
 0x5cb   : > { %v1557_v21 = vadd.f32 %v1556_v22, %v1555_v35  ;;  %v1551_v58 = vrot.slane %v1550_v16, 2  ;;  %v1516_v43 = vadd.f32 %v1515_v31, %v1514_v60  ;;  %vm6598_vm9 = vcmask 1043456  }
 0x5cc   : > { %v1509_v1 = vadd.f32 %v1508_v59, %v1507_v18  ;;  %v1544_v52 = vrot.slane %v1543_v61, 2  ;;  %v1523_v4 = vadd.f32 %v1522_v40, %v1521_v56  ;;  %v1539_v27 = vrot.slane %v1538_v37, 1  ;;  %vm6600_vm5 = vmmov %vm6598_vm9 }
 0x5cd   : > { %v1558_v5 = vrot.slane %v1557_v21, 2  ;;  %v1552_v44 = vadd.f32 %v1551_v58, %v1550_v16  ;;  %v1517_v2 = vrot.slane %v1516_v43, 1  ;;  %v1504_v40 = vadd.f32 %v1503_v63, %v1502_v23 }
 0x5ce   : > { %v1510_v10 = vrot.slane %v1509_v1, 1  ;;  %v1545_v9 = vadd.f32 %v1544_v52, %v1543_v61  ;;  %v1524_v26 = vrot.slane %v1523_v4, 1  ;;  %v1540_v20 = vadd.f32 %v1539_v27, %v1538_v37  ;;  %v6597_v37 = vld [vmem:[#allocation67_spill] sm:$0xff] }
 0x5cf   : > { %v1559_v7 = vadd.f32 %v1558_v5, %v1557_v21  ;;  %v1553_v30 = vrot.slane %v1552_v44, 1  ;;  %v1518_v16 = vadd.f32 %v1517_v2, %v1516_v43  ;;  %v6601_v23 = vmov 0.0  }
 0x5d0   : > { %v1546_v48 = vrot.slane %v1545_v9, 1  ;;  %v1511_v0 = vadd.f32 %v1510_v10, %v1509_v1  ;;  %v1525_v35 = vadd.f32 %v1524_v26, %v1523_v4  ;;  %v1563_v21 = vsel %vm6276_vm3, %v1504_v40, %v1540_v20 }
 0x5d1   : > { %v1560_v57 = vrot.slane %v1559_v7, 1  ;;  %v1554_v59 = vadd.f32 %v1553_v30, %v1552_v44  ;;  %v4205_v26 = vmov 2   ;;  %v4206_v56 = vmov 3  }
 0x5d2   : > { %v1547_v34 = vadd.f32 %v1546_v48, %v1545_v9  ;;  %3944 = vset.pattern.permute.xlu1 %v4205_v26  ;;  %3943 = vset.pattern.permute.xlu0 %v4205_v26  ;;  %vm6275_vm2 = vcmask 31744  }
 0x5d3   : > { %v1561_v31 = vadd.f32 %v1560_v57, %v1559_v7  ;;  %v1565_v18 = vsel %vm6276_vm3, %v1518_v16, %v1554_v59  ;;  %1950 = vperm.xlu1 %3944, %v5033_v33   ;;  %1946 = vperm.xlu0 %3943, %v5015_v42  }
 0x5d4   : > { %v1564_v60 = vsel %vm6276_vm3, %v1511_v0, %v1547_v34 }
 0x5d5   : > { %1631 = vmatprep.mubr.f32.mxu0 %v1564_v60  ;;  %v1566_v61 = vsel %vm6276_vm3, %v1525_v35, %v1561_v31 }
 0x5d6   : > { %1701 = vmatprep.mubr.f32.mxu1 %v1566_v61  ;;  %1632 = vmatmul.mubr.f32.vlgmr.msra.gmra.mrb[4].mxu0 %v1563_v21 }
 0x5d7   : > { %1702 = vmatmul.mubr.f32.vlgmr.msra.gmra.mrb[4].mxu1 %v1565_v18  ;;  %3364 = vmatpush1.msk.msra.mxu0 %vm6598_vm9, %v6597_v37 }
 0x5d8   : > { %3367 = vmatpush1.msk.msra.mxu1 %vm6600_vm5, %v6599_v41  ;;  %1787 = vmatprep.mubr.f32.mxu0 %v6601_v23 }
 0x5d9   : > { %1858 = vmatprep.mubr.f32.mxu1 %v6601_v23  ;;  %3945 = vset.pattern.permute.xlu1 %v4206_v56  ;;  %v5416_v23 = vsub.s32 0, %v4328_v3 }
 0x5da   : > { %3946 = vset.pattern.permute.xlu0 %v4206_v56  ;;  %1962 = vperm.xlu1 %3945, %v5015_v42  }
 0x5db   : > { %1966 = vperm.xlu0 %3946, %v5033_v33  }
 0x6a9   : > { %v3503_v22 = vpop.f32.mrb[4].mxu0 }
 0x6aa   : > { %v3538_v58 = vpop.f32.mrb[4].mxu1  ;;  %v3504_v1 = vpop.f32.mrb[5].mxu0 }
 0x6ab   : > { %v3505_v52 = vadd.f32 %v3504_v1, %v3503_v22  ;;  %v3539_v43 = vpop.f32.mrb[5].mxu1  ;;  %v5421_v22 = vsub.s32 1, %v4328_v3  ;;  %v1951_v1 = vpop.permute.xlu1 %1950 }
 0x6ac   : > { %v3540_v4 = vadd.f32 %v3539_v43, %v3538_v58 }
 0x6ad   : > { %6602 = vst [vmem:[#allocation75_spill] sm:$0xff] %v5421_v22 }
 0x6ae   : > { %v1704_v5 = vadd.f32 %v3540_v4, %v3505_v52  ;;  %v1947_v52 = vpop.permute.xlu0 %1946 }
 0x6b0   : > { %3365 = vmatmul.mubr.msk.f32.vlgmr.msra.gmra.mrb[6].mxu0 %vm6275_vm2, %v1704_v5  ;;  %3368 = vmatmul.mubr.msk.f32.vlgmr.msra.gmra.mrb[6].mxu1 %vm6275_vm2, %v1704_v5 }
 0x783   : > { %v1789_v27 = vpop.f32.mrb[6].mxu0  ;;  %v1860_v44 = vpop.f32.mrb[6].mxu1 }
 0x784   : > { %v1865_v10 = vmul.f32 0.00048828125, %v1789_v27  ;;  %v1867_v9 = vmul.f32 0.00048828125, %v1860_v44  ;;  %v1791_v7 = vpop.f32.mrb[7].mxu0  ;;  %v1862_v63 = vpop.f32.mrb[7].mxu1 }
 0x785   : > { %v1866_v30 = vmul.f32 0.00048828125, %v1791_v7  ;;  %v1868_v48 = vmul.f32 0.00048828125, %v1862_v63 }
 0x786   : > { %v1869_v2 = vmul.f32 %v1865_v10, %v1865_v10  ;;  %v1871_v57 = vmul.f32 %v1867_v9, %v1867_v9  ;;  %v1900_v26 = vrot.slane %v1865_v10, %v5416_v23  ;;  %v1908_v56 = vrot.slane %v1867_v9, %v5416_v23 }
 0x787   : > { %v1870_v20 = vmul.f32 %v1866_v30, %v1866_v30  ;;  %v1872_v0 = vmul.f32 %v1868_v48, %v1868_v48  ;;  %v1904_v58 = vrot.slane %v1866_v30, %v5416_v23  ;;  %v1912_v43 = vrot.slane %v1868_v48, %v5416_v23 }
 0x788   : > { %v1877_v34 = vrot.slane %v1869_v2, 7  ;;  %v1879_v59 = vrot.slane %v1871_v57, 7  ;;  %v1913_v27 = vsub.f32 %v5355_v29, %v1900_v26  ;;  %v1917_v44 = vsub.f32 %v5369_v14, %v1900_v26 }
 0x789   : > { %v1878_v35 = vrot.slane %v1870_v20, 7  ;;  %v1880_v60 = vrot.slane %v1872_v0, 7  ;;  %v1915_v7 = vsub.f32 %v5357_v6, %v1908_v56  ;;  %v1919_v3 = vsub.f32 %v5377_v39, %v1908_v56  ;;  %v1963_v0 = vpop.permute.xlu1 %1962 }
 0x78a   : > { %v1885_v31 = vsub.f32 %v1865_v10, %v1877_v34  ;;  %v1887_v40 = vsub.f32 %v1867_v9, %v1879_v59  ;;  %v1914_v63 = vsub.f32 %v5359_v50, %v1904_v58  ;;  %v1916_v57 = vsub.f32 %v5367_v8, %v1912_v43 }
 0x78b   : > { %v1886_v16 = vsub.f32 %v1866_v30, %v1878_v35  ;;  %v1888_v18 = vsub.f32 %v1868_v48, %v1880_v60  ;;  %v1918_v30 = vsub.f32 %v5383_v12, %v1904_v58  ;;  %v1920_v6 = vsub.f32 %v5385_v25, %v1912_v43  ;;  %v1967_v35 = vpop.permute.xlu0 %1966 }
 0x78c   : > { %v1889_v61 = vadd.f32 1e-08, %v1885_v31  ;;  %v1891_v21 = vadd.f32 1e-08, %v1887_v40 }
 0x78d   : > { %v1890_v37 = vadd.f32 1e-08, %v1886_v16  ;;  %v1892_v41 = vadd.f32 1e-08, %v1888_v18 }
 0x78e   : > { %3948 = vrsqrt.f32 %v1889_v61 }
 0x78f   : > { %3950 = vrsqrt.f32 %v1891_v21 }
 0x790   : > { %3952 = vrsqrt.f32 %v1890_v37 }
 0x791   : > { %3954 = vrsqrt.f32 %v1892_v41 }
 0x798   : > { %v3949_v4 = vpop.eup %3948 }
 0x799   : > { %v3951_v5 = vpop.eup %3950  ;;  %v1924_v10 = vrot.slane %v3949_v4, %v5421_v22 }
 0x79a   : > { %v3953_v9 = vpop.eup %3952  ;;  %v1932_v2 = vrot.slane %v3951_v5, %v5421_v22 }
 0x79b   : > { %v3955_v48 = vpop.eup %3954  ;;  %v1928_v29 = vrot.slane %v3953_v9, %v5421_v22  ;;  %v1937_v20 = vmul.f32 %v1924_v10, %v1913_v27  ;;  %v1941_v14 = vmul.f32 %v1924_v10, %v1917_v44  ;;  %v5454_v44 = vmov 0  }
 0x79c   : > { %v1936_v34 = vrot.slane %v3955_v48, %v5421_v22  ;;  %v1939_v59 = vmul.f32 %v1932_v2, %v1915_v7  ;;  %v1943_v39 = vmul.f32 %v1932_v2, %v1919_v3  ;;  %v5456_v7 = vmov 0  }
 0x79d   : > { %v1938_v50 = vmul.f32 %v1928_v29, %v1914_v63  ;;  %v1953_v31 = vmul.f32 %v1947_v52, %v1937_v20  ;;  %v1942_v12 = vmul.f32 %v1928_v29, %v1918_v30  ;;  %v1957_v40 = vmul.f32 %v1951_v1, %v1941_v14  ;;  %1985 = sbr.rel (%p3374_p0) target bundleno = 2133 (0x855), region = 64 }
 0x79e   : > { %v1940_v60 = vmul.f32 %v1936_v34, %v1916_v57  ;;  %v1955_v16 = vmul.f32 %v1947_v52, %v1939_v59  ;;  %v1944_v61 = vmul.f32 %v1936_v34, %v1920_v6  ;;  %v1959_v8 = vmul.f32 %v1951_v1, %v1943_v39  ;;  %v6603_v39 = vld [vmem:[#allocation10_spill] sm:$0xff] (!%p3374_p0) }
 0x79f   : > { %v1954_v21 = vmul.f32 %v1947_v52, %v1938_v50  ;;  %v5437_v18 = vadd.f32 %v1963_v0, %v1953_v31  ;;  %v1958_v37 = vmul.f32 %v1951_v1, %v1942_v12  ;;  %v5439_v41 = vadd.f32 %v1967_v35, %v1957_v40 }
 0x7a0   : > { %v1956_v25 = vmul.f32 %v1947_v52, %v1940_v60  ;;  %v5441_v26 = vadd.f32 %v1963_v0, %v1955_v16  ;;  %v1960_v56 = vmul.f32 %v1951_v1, %v1944_v61  ;;  %v5443_v58 = vadd.f32 %v1967_v35, %v1959_v8 }
 0x7a1   : > { %v5445_v43 = vadd.f32 %v1963_v0, %v1954_v21  ;;  %v5447_v4 = vadd.f32 %v1967_v35, %v1958_v37  ;;  %v5458_v52 = vmov 0   ;;  %v5460_v10 = vmov 0  }
 0x7a2   : > { %v5449_v5 = vadd.f32 %v1963_v0, %v1956_v25  ;;  %v5451_v27 = vadd.f32 %v1967_v35, %v1960_v56  ;;  %v5462_v1 = vmov 0   ;;  %v5464_v9 = vmov 0  }
 0x7a3   : > { %v5466_v3 = vmov 0   ;;  %v5468_v63 = vmov 0   ;;  %v4207_v30 = vmov (!%p3374_p0), 7   ;;  %v4208_v2 = vmov (!%p3374_p0), 6  }
 0x7a4   : > { %3957 = vset.pattern.permute.xlu1 %v4207_v30  ;;  %3956 = vset.pattern.permute.xlu0 %v4208_v2  ;;  %v4209_v48 = vmov 8   ;;  %v1986_v35 = vadd.s32 4294967294, %v6603_v39  ;;  %v2077_v60 = vadd.s32 2, %v6603_v39  ;;  %v4212_v16 = vmov 0.0  }
 0x7a5   : > { %2054 = vperm.xlu1 %3957, %v5015_v42   ;;  %2030 = vperm.xlu0 %3956, %v5015_v42   ;;  %vm2008_vm1 = vcmp.lt.s32.totalorder %v6603_v39, 2  ;;  %vm2099_vm5 = vcmp.lt.s32.totalorder %v6603_v39, 126 }
 0x7a6   : > { %vm1987_vm10 = vcmp.ge.s32.totalorder %v1986_v35, 0  ;;  %vm2079_vm9 = vcmp.lt.s32.totalorder %v2077_v60, 128 }
 0x7a7   : > { %v3375_v61 = vsel %vm1987_vm10, 1.0, %v4212_v16  ;;  %v3376_v52 = vsel %vm2079_vm9, 1.0, %v4212_v16 }
 0x7a8   : > { %v2020_v37 = vrot.slane %v3375_v61, %v5416_v23 }
 0x7a9   : > { %2058 = vperm.xlu1 %3957, %v5033_v33   ;;  %2034 = vperm.xlu0 %3956, %v5033_v33  }
 0x7ad   : > { %3959 = vset.pattern.permute.xlu1 %v4209_v48  ;;  %3958 = vset.pattern.permute.xlu0 %v4209_v48 }
 0x7ae   : > { %2125 = vperm.xlu1 %3959, %v5033_v33   ;;  %2121 = vperm.xlu0 %3958, %v5015_v42  }
 0x7b2   : > { %1994 = vrot.lane.b32.xlu0 %v5439_v41, %s4210_s29  ;;  %1992 = vrot.lane.b32.xlu1 %v5437_v18, %s4210_s29 }
 0x7b6   : > { %1998 = vrot.lane.b32.xlu0 %v5447_v4, %s4210_s29  ;;  %1996 = vrot.lane.b32.xlu1 %v5445_v43, %s4210_s29 }
 0x7ba   : > { %2002 = vrot.lane.b32.xlu0 %v5443_v58, %s4210_s29  ;;  %2000 = vrot.lane.b32.xlu1 %v5441_v26, %s4210_s29 }
 0x7be   : > { %2006 = vrot.lane.b32.xlu0 %v5451_v27, %s4210_s29  ;;  %2004 = vrot.lane.b32.xlu1 %v5449_v5, %s4210_s29 }
 0x7c2   : > { %2085 = vrot.lane.b32.xlu0 %v5439_v41, %s4211_s11  ;;  %2083 = vrot.lane.b32.xlu1 %v5437_v18, %s4211_s11 }
 0x7c6   : > { %2089 = vrot.lane.b32.xlu0 %v5447_v4, %s4211_s11  ;;  %2087 = vrot.lane.b32.xlu1 %v5445_v43, %s4211_s11 }
 0x7ca   : > { %2093 = vrot.lane.b32.xlu0 %v5443_v58, %s4211_s11  ;;  %2091 = vrot.lane.b32.xlu1 %v5441_v26, %s4211_s11 }
 0x7ce   : > { %2097 = vrot.lane.b32.xlu0 %v5451_v27, %s4211_s11  ;;  %2095 = vrot.lane.b32.xlu1 %v5449_v5, %s4211_s11 }
 0x824   : > { %v2055_v57 = vpop.permute.xlu1 %2054  ;;  %v5492_v29 = vpop.permute.xlu0 %2030 }
 0x825   : > { %v2061_v48 = vmul.f32 %v2055_v57, %v5437_v18  ;;  %v2062_v35 = vmul.f32 %v2055_v57, %v5445_v43  ;;  %v2064_v60 = vmul.f32 %v2055_v57, %v5449_v5 }
 0x828   : > { %v2059_v20 = vpop.permute.xlu1 %2058  ;;  %v5494_v14 = vpop.permute.xlu0 %2034 }
 0x829   : > { %v2066_v16 = vmul.f32 %v2059_v20, %v5447_v4 }
 0x82d   : > { %v5496_v6 = vpop.permute.xlu1 %2125  ;;  %v5498_v0 = vpop.permute.xlu0 %2121 }
 0x831   : > { %v1995_v34 = vpop.permute.xlu0 %1994  ;;  %v1993_v59 = vpop.permute.xlu1 %1992 }
 0x835   : > { %v1999_v50 = vpop.permute.xlu0 %1998  ;;  %v1997_v31 = vpop.permute.xlu1 %1996 }
 0x836   : > { %v2014_v44 = vsel %vm2008_vm1, %v1995_v34, %v1999_v50  ;;  %v2013_v7 = vsel %vm2008_vm1, %v1993_v59, %v1997_v31 }
 0x837   : > { %v2026_v30 = vmul.f32 %v2020_v37, %v2014_v44  ;;  %v2022_v2 = vmul.f32 %v2020_v37, %v2013_v7 }
 0x839   : > { %v2003_v12 = vpop.permute.xlu0 %2002  ;;  %v2001_v40 = vpop.permute.xlu1 %2000 }
 0x83a   : > { %v2012_v10 = vsel %vm2008_vm1, %v1999_v50, %v2003_v12  ;;  %v2065_v50 = vmul.f32 %v2059_v20, %v5439_v41 }
 0x83b   : > { %v2027_v61 = vmul.f32 %v2020_v37, %v2012_v10 }
 0x83d   : > { %v2007_v8 = vpop.permute.xlu0 %2006  ;;  %v2005_v21 = vpop.permute.xlu1 %2004 }
 0x83e   : > { %v2016_v25 = vsel %vm2008_vm1, %v2007_v8, %v1995_v34  ;;  %v2015_v56 = vsel %vm2008_vm1, %v2005_v21, %v1993_v59  ;;  %v2063_v34 = vmul.f32 %v2055_v57, %v5441_v26  ;;  %v2111_v59 = vrot.slane %v3376_v52, %v5416_v23 }
 0x83f   : > { %v2025_v1 = vmul.f32 %v2020_v37, %v2016_v25  ;;  %v2021_v9 = vmul.f32 %v2020_v37, %v2015_v56  ;;  %v2011_v25 = vsel %vm2008_vm1, %v1997_v31, %v2001_v40  ;;  %v2010_v56 = vsel %vm2008_vm1, %v2003_v12, %v2007_v8 }
 0x840   : > { %v2042_v52 = vmul.f32 %v5494_v14, %v2026_v30  ;;  %v2038_v57 = vmul.f32 %v5492_v29, %v2022_v2  ;;  %v2067_v31 = vmul.f32 %v2059_v20, %v5443_v58  ;;  %v2068_v12 = vmul.f32 %v2059_v20, %v5451_v27 }
 0x841   : > { %v2086_v3 = vpop.permute.xlu0 %2085  ;;  %v2084_v63 = vpop.permute.xlu1 %2083  ;;  %v2041_v44 = vmul.f32 %v5494_v14, %v2025_v1  ;;  %v2037_v7 = vmul.f32 %v5492_v29, %v2021_v9  ;;  %v2043_v9 = vmul.f32 %v5494_v14, %v2027_v61  ;;  %v2023_v55 = vmul.f32 %v2020_v37, %v2011_v25 }
 0x842   : > { %v2028_v32 = vmul.f32 %v2020_v37, %v2010_v56  ;;  %v2009_v30 = vsel %vm2008_vm1, %v2001_v40, %v2005_v21  ;;  %v2074_v49 = vadd.f32 %v2066_v16, %v2042_v52  ;;  %v2070_v51 = vadd.f32 %v2062_v35, %v2038_v57 }
 0x843   : > { %v2073_v2 = vadd.f32 %v2065_v50, %v2041_v44  ;;  %v2069_v36 = vadd.f32 %v2061_v48, %v2037_v7  ;;  %v2075_v21 = vadd.f32 %v2067_v31, %v2043_v9  ;;  %v2039_v48 = vmul.f32 %v5492_v29, %v2023_v55 }
 0x844   : > { %v2044_v50 = vmul.f32 %v5494_v14, %v2028_v32  ;;  %v2024_v56 = vmul.f32 %v2020_v37, %v2009_v30 }
 0x845   : > { %v2090_v22 = vpop.permute.xlu0 %2089  ;;  %v2088_v38 = vpop.permute.xlu1 %2087 }
 0x846   : > { %v2105_v53 = vsel %vm2099_vm5, %v2086_v3, %v2090_v22  ;;  %v2104_v10 = vsel %vm2099_vm5, %v2084_v63, %v2088_v38  ;;  %v2076_v55 = vadd.f32 %v2068_v12, %v2044_v50  ;;  %v2040_v32 = vmul.f32 %v5492_v29, %v2024_v56 }
 0x847   : > { %v2116_v8 = vmul.f32 %v2111_v59, %v2105_v53  ;;  %v2112_v1 = vmul.f32 %v2111_v59, %v2104_v10 }
 0x849   : > { %v2132_v17 = vmul.f32 %v5496_v6, %v2116_v8  ;;  %v2128_v19 = vmul.f32 %v5498_v0, %v2112_v1  ;;  %v2094_v62 = vpop.permute.xlu0 %2093  ;;  %v2092_v11 = vpop.permute.xlu1 %2091 }
 0x84a   : > { %v2103_v53 = vsel %vm2099_vm5, %v2090_v22, %v2094_v62  ;;  %v2102_v20 = vsel %vm2099_vm5, %v2088_v38, %v2092_v11 }
 0x84b   : > { %v2140_v10 = vadd.f32 %v2132_v17, %v2073_v2   ;;  %v2136_v61 = vadd.f32 %v2128_v19, %v2069_v36   ;;  %v2117_v25 = vmul.f32 %v2111_v59, %v2103_v53  ;;  %v2113_v40 = vmul.f32 %v2111_v59, %v2102_v20 }
 0x84d   : > { %v2133_v44 = vmul.f32 %v5496_v6, %v2117_v25  ;;  %v2129_v35 = vmul.f32 %v5498_v0, %v2113_v40  ;;  %v2098_v16 = vpop.permute.xlu0 %2097  ;;  %v2096_v7 = vpop.permute.xlu1 %2095 }
 0x84e   : > { %v2101_v22 = vsel %vm2099_vm5, %v2094_v62, %v2098_v16  ;;  %v2107_v17 = vsel %vm2099_vm5, %v2098_v16, %v2086_v3  ;;  %v2100_v38 = vsel %vm2099_vm5, %v2092_v11, %v2096_v7  ;;  %v2106_v14 = vsel %vm2099_vm5, %v2096_v7, %v2084_v63 }
 0x84f   : > { %v2141_v52 = vadd.f32 %v2133_v44, %v2074_v49   ;;  %v2137_v3 = vadd.f32 %v2129_v35, %v2070_v51   ;;  %v2118_v19 = vmul.f32 %v2111_v59, %v2101_v22  ;;  %v2119_v36 = vmul.f32 %v2111_v59, %v2107_v17 }
 0x850   : > { %v2114_v57 = vmul.f32 %v2111_v59, %v2100_v38  ;;  %v2115_v31 = vmul.f32 %v2111_v59, %v2106_v14  ;;  %v2071_v49 = vadd.f32 %v2063_v34, %v2039_v48  ;;  %v2072_v51 = vadd.f32 %v2064_v60, %v2040_v32 }
 0x851   : > { %v2134_v37 = vmul.f32 %v5496_v6, %v2118_v19  ;;  %v2135_v62 = vmul.f32 %v5496_v6, %v2119_v36  ;;  %v6604_v63 = vmov %v2136_v61 }
 0x852   : > { %v2130_v12 = vmul.f32 %v5498_v0, %v2114_v57  ;;  %v2131_v29 = vmul.f32 %v5498_v0, %v2115_v31 }
 0x853   : > { %v2142_v7 = vadd.f32 %v2134_v37, %v2075_v21   ;;  %v2143_v44 = vadd.f32 %v2135_v62, %v2076_v55  }
 0x854   : > { %v2138_v9 = vadd.f32 %v2130_v12, %v2071_v49   ;;  %v2139_v1 = vadd.f32 %v2131_v29, %v2072_v51  }
 0x855 PF: > { %2154 = sbr.rel (%p1982_p13) target bundleno = 2312 (0x908), region = 68  ;;  %v4213_v11 = vmov (!%p1982_p13), 7   ;;  %v4214_v6 = vmov (!%p1982_p13), 6   ;;  %v4215_v0 = vmov (!%p1982_p13), 8   ;;  %s4216_s12 = smov (!%p1982_p13), 1   ;;  %v6605_v8 = vld [vmem:[#allocation10_spill] sm:$0xff] (!%p1982_p13)  ;;  %v4157_v63 = vphi %v5468_v63, %v6604_v63   ;;  %v4153_v3 = vphi %v5466_v3, %v2137_v3   ;;  %v4149_v9 = vphi %v5464_v9, %v2138_v9   ;;  %v4145_v1 = vphi %v5462_v1, %v2139_v1   ;;  %v4141_v10 = vphi %v5460_v10, %v2140_v10   ;;  %v4137_v52 = vphi %v5458_v52, %v2141_v52   ;;  %v4133_v7 = vphi %v5456_v7, %v2142_v7   ;;  %v4129_v44 = vphi %v5454_v44, %v2143_v44  }
 0x856   : > { %3961 = vset.pattern.permute.xlu1 (!%p1982_p13), %v4213_v11  ;;  %3960 = vset.pattern.permute.xlu0 (!%p1982_p13), %v4214_v6  ;;  %s4217_s14 = smov (!%p1982_p13), 127   ;;  %v2155_v1 = vadd.s32 (!%p1982_p13), 4294967295, %v6605_v8  ;;  %v2246_v20 = vadd.s32 (!%p1982_p13), 1, %v6605_v8  ;;  %v4218_v61 = vmov (!%p1982_p13), 0.0   ;;  %vm2177_vm1 = vcmp.lt.s32.totalorder (!%p1982_p13), %v6605_v8, 1 }
 0x857   : > { %2223 = vperm.xlu1 (!%p1982_p13), %3961, %v5015_v42   ;;  %2199 = vperm.xlu0 (!%p1982_p13), %3960, %v5015_v42   ;;  %vm2268_vm5 = vcmp.lt.s32.totalorder (!%p1982_p13), %v6605_v8, 127 }
 0x858   : > { %vm2156_vm10 = vcmp.ge.s32.totalorder (!%p1982_p13), %v2155_v1, 0  ;;  %vm2248_vm9 = vcmp.lt.s32.totalorder (!%p1982_p13), %v2246_v20, 128 }
 0x859   : > { %v3377_v25 = vsel (!%p1982_p13), %vm2156_vm10, 1.0, %v4218_v61  ;;  %v3378_v16 = vsel (!%p1982_p13), %vm2248_vm9, 1.0, %v4218_v61 }
 0x85a   : > { %v2189_v48 = vrot.slane (!%p1982_p13), %v3377_v25, %v5416_v23  ;;  %v2280_v62 = vrot.slane (!%p1982_p13), %v3378_v16, %v5416_v23 }
 0x85b   : > { %2227 = vperm.xlu1 (!%p1982_p13), %3961, %v5033_v33   ;;  %2203 = vperm.xlu0 (!%p1982_p13), %3960, %v5033_v33  }
 0x85f   : > { %3963 = vset.pattern.permute.xlu1 %v4215_v0  ;;  %3962 = vset.pattern.permute.xlu0 %v4215_v0 }
 0x860   : > { %2294 = vperm.xlu1 %3963, %v5033_v33   ;;  %2290 = vperm.xlu0 %3962, %v5015_v42  }
 0x864   : > { %2163 = vrot.lane.b32.xlu0 %v5439_v41, %s4216_s12  ;;  %2161 = vrot.lane.b32.xlu1 %v5437_v18, %s4216_s12 }
 0x868   : > { %2167 = vrot.lane.b32.xlu0 %v5447_v4, %s4216_s12  ;;  %2165 = vrot.lane.b32.xlu1 %v5445_v43, %s4216_s12 }
 0x86c   : > { %2171 = vrot.lane.b32.xlu0 %v5443_v58, %s4216_s12  ;;  %2169 = vrot.lane.b32.xlu1 %v5441_v26, %s4216_s12 }
 0x870   : > { %2175 = vrot.lane.b32.xlu0 %v5451_v27, %s4216_s12  ;;  %2173 = vrot.lane.b32.xlu1 %v5449_v5, %s4216_s12 }
 0x874   : > { %2254 = vrot.lane.b32.xlu0 %v5439_v41, %s4217_s14  ;;  %2252 = vrot.lane.b32.xlu1 %v5437_v18, %s4217_s14 }
 0x878   : > { %2258 = vrot.lane.b32.xlu0 %v5447_v4, %s4217_s14  ;;  %2256 = vrot.lane.b32.xlu1 %v5445_v43, %s4217_s14 }
 0x87c   : > { %2262 = vrot.lane.b32.xlu0 %v5443_v58, %s4217_s14  ;;  %2260 = vrot.lane.b32.xlu1 %v5441_v26, %s4217_s14 }
 0x880   : > { %2266 = vrot.lane.b32.xlu0 %v5451_v27, %s4217_s14  ;;  %2264 = vrot.lane.b32.xlu1 %v5449_v5, %s4217_s14 }
 0x8d6   : > { %v2224_v39 = vpop.permute.xlu1 %2223  ;;  %v5626_v3 = vpop.permute.xlu0 %2199 }
 0x8d7   : > { %v2230_v38 = vmul.f32 %v2224_v39, %v5437_v18  ;;  %v2231_v14 = vmul.f32 %v2224_v39, %v5445_v43  ;;  %v2232_v37 = vmul.f32 %v2224_v39, %v5441_v26  ;;  %v2233_v57 = vmul.f32 %v2224_v39, %v5449_v5 }
 0x8da   : > { %v2228_v63 = vpop.permute.xlu1 %2227  ;;  %v5628_v34 = vpop.permute.xlu0 %2203 }
 0x8db   : > { %v2234_v31 = vmul.f32 %v2228_v63, %v5439_v41  ;;  %v2235_v49 = vmul.f32 %v2228_v63, %v5447_v4  ;;  %v2236_v0 = vmul.f32 %v2228_v63, %v5443_v58  ;;  %v2237_v39 = vmul.f32 %v2228_v63, %v5451_v27 }
 0x8df   : > { %v5630_v59 = vpop.permute.xlu1 %2294  ;;  %v5632_v60 = vpop.permute.xlu0 %2290 }
 0x8e3   : > { %v2164_v52 = vpop.permute.xlu0 %2163  ;;  %v2162_v10 = vpop.permute.xlu1 %2161 }
 0x8e7   : > { %v2168_v9 = vpop.permute.xlu0 %2167  ;;  %v2166_v30 = vpop.permute.xlu1 %2165 }
 0x8e8   : > { %v2183_v44 = vsel %vm2177_vm1, %v2164_v52, %v2168_v9  ;;  %v2182_v35 = vsel %vm2177_vm1, %v2162_v10, %v2166_v30 }
 0x8e9   : > { %v2195_v55 = vmul.f32 %v2189_v48, %v2183_v44  ;;  %v2191_v32 = vmul.f32 %v2189_v48, %v2182_v35 }
 0x8eb   : > { %v2172_v2 = vpop.permute.xlu0 %2171  ;;  %v2170_v53 = vpop.permute.xlu1 %2169  ;;  %v2211_v6 = vmul.f32 %v5628_v34, %v2195_v55  ;;  %v2207_v5 = vmul.f32 %v5626_v3, %v2191_v32 }
 0x8ec   : > { %v2181_v7 = vsel %vm2177_vm1, %v2168_v9, %v2172_v2  ;;  %v2180_v12 = vsel %vm2177_vm1, %v2166_v30, %v2170_v53 }
 0x8ed   : > { %v2196_v51 = vmul.f32 %v2189_v48, %v2181_v7  ;;  %v2192_v9 = vmul.f32 %v2189_v48, %v2180_v12  ;;  %v2243_v58 = vadd.f32 %v2235_v49, %v2211_v6  ;;  %v2239_v44 = vadd.f32 %v2231_v14, %v2207_v5 }
 0x8ef   : > { %v2176_v40 = vpop.permute.xlu0 %2175  ;;  %v2174_v21 = vpop.permute.xlu1 %2173  ;;  %v2212_v1 = vmul.f32 %v5628_v34, %v2196_v51  ;;  %v2208_v7 = vmul.f32 %v5626_v3, %v2192_v9 }
 0x8f0   : > { %v2185_v50 = vsel %vm2177_vm1, %v2176_v40, %v2164_v52  ;;  %v2184_v56 = vsel %vm2177_vm1, %v2174_v21, %v2162_v10  ;;  %v2179_v29 = vsel %vm2177_vm1, %v2172_v2, %v2176_v40  ;;  %v2178_v2 = vsel %vm2177_vm1, %v2170_v53, %v2174_v21 }
 0x8f1   : > { %v2194_v22 = vmul.f32 %v2189_v48, %v2185_v50  ;;  %v2190_v17 = vmul.f32 %v2189_v48, %v2184_v56  ;;  %v2197_v30 = vmul.f32 %v2189_v48, %v2179_v29  ;;  %v2244_v21 = vadd.f32 %v2236_v0, %v2212_v1 }
 0x8f3   : > { %v2255_v19 = vpop.permute.xlu0 %2254  ;;  %v2253_v36 = vpop.permute.xlu1 %2252  ;;  %v2210_v18 = vmul.f32 %v5628_v34, %v2194_v22  ;;  %v2206_v43 = vmul.f32 %v5626_v3, %v2190_v17  ;;  %v2213_v22 = vmul.f32 %v5628_v34, %v2197_v30  ;;  %v2193_v17 = vmul.f32 %v2189_v48, %v2178_v2 }
 0x8f5   : > { %v2242_v20 = vadd.f32 %v2234_v31, %v2210_v18  ;;  %v2238_v61 = vadd.f32 %v2230_v38, %v2206_v43  ;;  %v2245_v18 = vadd.f32 %v2237_v39, %v2213_v22  ;;  %v2209_v34 = vmul.f32 %v5626_v3, %v2193_v17 }
 0x8f7   : > { %v2259_v26 = vpop.permute.xlu0 %2258  ;;  %v2257_v11 = vpop.permute.xlu1 %2256 }
 0x8f8   : > { %v2274_v41 = vsel %vm2268_vm5, %v2255_v19, %v2259_v26  ;;  %v2273_v4 = vsel %vm2268_vm5, %v2253_v36, %v2257_v11 }
 0x8f9   : > { %v2285_v52 = vmul.f32 %v2280_v62, %v2274_v41  ;;  %v2281_v10 = vmul.f32 %v2280_v62, %v2273_v4  ;;  %v2240_v41 = vadd.f32 %v2232_v37, %v2208_v7  ;;  %v2241_v4 = vadd.f32 %v2233_v57, %v2209_v34 }
 0x8fb   : > { %v2301_v25 = vmul.f32 %v5630_v59, %v2285_v52  ;;  %v2297_v40 = vmul.f32 %v5632_v60, %v2281_v10  ;;  %v2263_v50 = vpop.permute.xlu0 %2262  ;;  %v2261_v56 = vpop.permute.xlu1 %2260 }
 0x8fc   : > { %v2272_v27 = vsel %vm2268_vm5, %v2259_v26, %v2263_v50  ;;  %v2271_v63 = vsel %vm2268_vm5, %v2257_v11, %v2261_v56 }
 0x8fd   : > { %v2309_v10 = vadd.f32 %v2301_v25, %v2242_v20   ;;  %v2305_v35 = vadd.f32 %v2297_v40, %v2238_v61   ;;  %v2286_v16 = vmul.f32 %v2280_v62, %v2272_v27  ;;  %v2282_v53 = vmul.f32 %v2280_v62, %v2271_v63 }
 0x8ff   : > { %v2302_v55 = vmul.f32 %v5630_v59, %v2286_v16  ;;  %v2298_v32 = vmul.f32 %v5632_v60, %v2282_v53  ;;  %v2267_v38 = vpop.permute.xlu0 %2266  ;;  %v2265_v14 = vpop.permute.xlu1 %2264  ;;  %v6608_v63 = vmov %v2305_v35 }
 0x900   : > { %v2270_v31 = vsel %vm2268_vm5, %v2263_v50, %v2267_v38  ;;  %v2276_v49 = vsel %vm2268_vm5, %v2267_v38, %v2255_v19  ;;  %v2269_v48 = vsel %vm2268_vm5, %v2261_v56, %v2265_v14  ;;  %v2275_v43 = vsel %vm2268_vm5, %v2265_v14, %v2253_v36 }
 0x901   : > { %v2310_v52 = vadd.f32 %v2302_v55, %v2243_v58   ;;  %v2306_v51 = vadd.f32 %v2298_v32, %v2239_v44   ;;  %v2287_v12 = vmul.f32 %v2280_v62, %v2270_v31  ;;  %v2288_v29 = vmul.f32 %v2280_v62, %v2276_v49 }
 0x902   : > { %v2283_v6 = vmul.f32 %v2280_v62, %v2269_v48  ;;  %v2284_v5 = vmul.f32 %v2280_v62, %v2275_v43 }
 0x903   : > { %v2303_v26 = vmul.f32 %v5630_v59, %v2287_v12  ;;  %v2304_v11 = vmul.f32 %v5630_v59, %v2288_v29 }
 0x904   : > { %v2299_v0 = vmul.f32 %v5632_v60, %v2283_v6  ;;  %v2300_v3 = vmul.f32 %v5632_v60, %v2284_v5 }
 0x905   : > { %v2311_v19 = vadd.f32 %v2303_v26, %v2244_v21   ;;  %v2312_v44 = vadd.f32 %v2304_v11, %v2245_v18  }
 0x906   : > { %v2307_v9 = vadd.f32 %v2299_v0, %v2240_v41   ;;  %v2308_v1 = vadd.f32 %v2300_v3, %v2241_v4   ;;  %v6607_v3 = vmov %v2306_v51 }
 0x907   : > { %v6606_v7 = vmov %v2311_v19 }
 0x908 PF: > { %v6609_v59 = vmov 1.0|1.0   ;;  %vm6612_vm9 = vnez %v6420_v54  ;;  %vm6613_vm5 = vnez %v6418_v46  ;;  %v4219_v60 = vmov 5   ;;  %v6632_v46 = vld [vmem:[#allocation40_spill] sm:$0xff]  ;;  %v6634_v54 = vld [vmem:[#allocation39_spill] sm:$0xff]  ;;  %v6648_v57 = vld [vmem:[#allocation14_spill] sm:$0xff]  ;;  %v4189_v63 = vphi %v4157_v63, %v6608_v63   ;;  %v4185_v3 = vphi %v4153_v3, %v6607_v3   ;;  %v4181_v9 = vphi %v4149_v9, %v2307_v9   ;;  %v4177_v1 = vphi %v4145_v1, %v2308_v1   ;;  %v4173_v10 = vphi %v4141_v10, %v2309_v10   ;;  %v4169_v52 = vphi %v4137_v52, %v2310_v52   ;;  %v4165_v7 = vphi %v4133_v7, %v6606_v7   ;;  %v4161_v44 = vphi %v4129_v44, %v2312_v44  }
 0x909   : > { %3676 = vmatprep.subr.msk.bf16.mxu0 %vm3611_vm15, %v6609_v59  ;;  %vm6614_vm2 = vmpackc.low %vm6612_vm9, %vm6613_vm5  ;;  %3965 = vset.pattern.permute.xlu1 %v4219_v60  ;;  %v4220_v8 = vmov 1   ;;  %vm6615_vm3 = vnez %v6282_v15  ;;  %vm6616_vm15 = vnez %v6280_v13  ;;  %v6639_v36 = vld [vmem:[#allocation27_spill] sm:$0xff]  ;;  %v6647_v62 = vmov 0   ;;  %v6650_v39 = vld [vmem:[#allocation13_spill] sm:$0xff]  ;;  %p3452_p1 = scmp.ne.s32.totalorder %s4117_s18, 3 }
 0x90a   : > { %3708 = vmatprep.subr.msk.bf16.mxu1 %vm6614_vm2, %v6609_v59  ;;  %3964 = vset.pattern.permute.xlu0 %v4220_v8  ;;  %vm6617_vm10 = vmpackc.low %vm6615_vm3, %vm6616_vm15  ;;  %vm6640_vm11 = vnez %v6639_v36  ;;  %v6644_v37 = vld [vmem:[#allocation55_spill] sm:$0xff]  ;;  %vm6649_vm3 = vnez %v6648_v57  ;;  %v6653_v30 = vld [vmem:[#allocation42_spill] sm:$0xff] }
 0x90b   : > { %2346 = vperm.xlu1 %3965, %v5015_v42   ;;  %2322 = vperm.xlu0 %3964, %v5015_v42   ;;  %v6637_v42 = vld [vmem:[#allocation28_spill] sm:$0xff]  ;;  %vm6645_vm5 = vnez %v6644_v37  ;;  %v6655_v2 = vld [vmem:[#allocation41_spill] sm:$0xff]  ;;  %v6658_v20 = vld [vmem:[#allocation30_spill] sm:$0xff] }
 0x90c   : > { %3678 = vmatpush3.bf16.msk.msra.mxu0 %vm6617_vm10, %v6609_v59  ;;  %3710 = vmatpush3.bf16.msk.msra.mxu1 %vm3645_vm6, %v6609_v59  ;;  %vm6635_vm10 = vnez %v6634_v54  ;;  %vm6651_vm6 = vnez %v6650_v39  ;;  %v6660_v61 = vld [vmem:[#allocation29_spill] sm:$0xff]  ;;  %v6663_v25 = vld [vmem:[#allocation58_spill] sm:$0xff]  ;;  %v6668_v50 = vld [vmem:[#allocation16_spill] sm:$0xff] }
 0x90d   : > { %3680 = vmatprep.subr.msk.bf16.mxu0 %vm3615_vm0, %v6609_v59  ;;  %3712 = vmatprep.subr.msk.bf16.mxu1 %vm3647_vm7, %v6609_v59  ;;  %vm6633_vm0 = vnez %v6632_v46  ;;  %vm6638_vm7 = vnez %v6637_v42  ;;  %vm6652_vm15 = vmpackc.low %vm6649_vm3, %vm6651_vm6  ;;  %v6665_v40 = vld [vmem:[#allocation57_spill] sm:$0xff]  ;;  %vm6669_vm3 = vnez %v6668_v50  ;;  %v6670_v56 = vld [vmem:[#allocation15_spill] sm:$0xff] }
 0x90e   : > { %vm6636_vm1 = vmpackc.low %vm6633_vm0, %vm6635_vm10  ;;  %vm6654_vm0 = vnez %v6653_v30  ;;  %vm6656_vm10 = vnez %v6655_v2  ;;  %vm6671_vm6 = vnez %v6670_v56  ;;  %v6673_v58 = vld [vmem:[#allocation44_spill] sm:$0xff]  ;;  %v6675_v27 = vld [vmem:[#allocation43_spill] sm:$0xff] }
 0x90f   : > { %2350 = vperm.xlu1 %3965, %v5033_v33   ;;  %2326 = vperm.xlu0 %3964, %v5033_v33   ;;  %vm6641_vm2 = vmpackc.low %vm6638_vm7, %vm6640_vm11  ;;  %v6642_v33 = vld [vmem:[#allocation56_spill] sm:$0xff]  ;;  %vm6659_vm7 = vnez %v6658_v20  ;;  %vm6661_vm11 = vnez %v6660_v61  ;;  %v6680_v16 = vld [vmem:[#allocation31_spill] sm:$0xff] }
 0x910   : > { %3682 = vmatpush3.bf16.msk.msra.mxu0 %vm3617_vm13, %v6609_v59  ;;  %3714 = vmatpush3.bf16.msk.msra.mxu1 %vm6636_vm1, %v6609_v59  ;;  %vm6643_vm9 = vnez %v6642_v33  ;;  %vm6657_vm1 = vmpackc.low %vm6654_vm0, %vm6656_vm10  ;;  %vm6674_vm0 = vnez %v6673_v58  ;;  %vm6676_vm10 = vnez %v6675_v27  ;;  %v6678_v35 = vld [vmem:[#allocation32_spill] sm:$0xff]  ;;  %v6685_v21 = vld [vmem:[#allocation59_spill] sm:$0xff] }
 0x911   : > { %3684 = vmatprep.subr.msk.bf16.mxu0 %vm6641_vm2, %v6609_v59  ;;  %vm6646_vm13 = vmpackc.low %vm6643_vm9, %vm6645_vm5  ;;  %vm6664_vm9 = vnez %v6663_v25  ;;  %vm6666_vm5 = vnez %v6665_v40  ;;  %v6683_v53 = vld [vmem:[#allocation60_spill] sm:$0xff]  ;;  %v6688_v22 = vld [vmem:[#allocation18_spill] sm:$0xff] }
 0x912   : > { %3716 = vmatprep.subr.msk.bf16.mxu1 %vm6646_vm13, %v6609_v59  ;;  %vm6662_vm2 = vmpackc.low %vm6659_vm7, %vm6661_vm11  ;;  %vm6679_vm7 = vnez %v6678_v35  ;;  %vm6681_vm11 = vnez %v6680_v16  ;;  %v6690_v17 = vld [vmem:[#allocation17_spill] sm:$0xff]  ;;  %v6693_v55 = vld [vmem:[#allocation46_spill] sm:$0xff] }
 0x913   : > { %3966 = vset.pattern.permute.xlu0 %v6647_v62  ;;  %3967 = vset.pattern.permute.xlu1 %v6647_v62  ;;  %vm6667_vm13 = vmpackc.low %vm6664_vm9, %vm6666_vm5  ;;  %vm6684_vm9 = vnez %v6683_v53  ;;  %vm6686_vm5 = vnez %v6685_v21  ;;  %v6695_v32 = vld [vmem:[#allocation45_spill] sm:$0xff]  ;;  %v6698_v38 = vld [vmem:[#allocation34_spill] sm:$0xff] }
 0x914   : > { %3686 = vmatpush3.bf16.msk.msra.mxu0 %vm6652_vm15, %v6609_v59  ;;  %3718 = vmatpush3.bf16.msk.msra.mxu1 %vm6657_vm1, %v6609_v59  ;;  %vm6672_vm15 = vmpackc.low %vm6669_vm3, %vm6671_vm6  ;;  %vm6689_vm3 = vnez %v6688_v22  ;;  %vm6691_vm6 = vnez %v6690_v17  ;;  %v6700_v14 = vld [vmem:[#allocation33_spill] sm:$0xff]  ;;  %v6703_v31 = vld [vmem:[#allocation62_spill] sm:$0xff] }
 0x915   : > { %3688 = vmatprep.subr.msk.bf16.mxu0 %vm6662_vm2, %v6609_v59  ;;  %3720 = vmatprep.subr.msk.bf16.mxu1 %vm6667_vm13, %v6609_v59  ;;  %vm6677_vm1 = vmpackc.low %vm6674_vm0, %vm6676_vm10  ;;  %vm6694_vm0 = vnez %v6693_v55  ;;  %vm6696_vm10 = vnez %v6695_v32  ;;  %v6705_v49 = vld [vmem:[#allocation61_spill] sm:$0xff]  ;;  %v6708_v51 = vld [vmem:[#allocation20_spill] sm:$0xff] }
 0x916   : > { %vm6682_vm2 = vmpackc.low %vm6679_vm7, %vm6681_vm11  ;;  %vm6699_vm7 = vnez %v6698_v38  ;;  %vm6701_vm11 = vnez %v6700_v14  ;;  %v6710_v12 = vld [vmem:[#allocation19_spill] sm:$0xff]  ;;  %v6713_v29 = vld [vmem:[#allocation48_spill] sm:$0xff] }
 0x917   : > { %vm6687_vm13 = vmpackc.low %vm6684_vm9, %vm6686_vm5  ;;  %vm6704_vm9 = vnez %v6703_v31  ;;  %vm6706_vm5 = vnez %v6705_v49  ;;  %v6715_v18 = vld [vmem:[#allocation47_spill] sm:$0xff]  ;;  %v6718_v34 = vld [vmem:[#allocation36_spill] sm:$0xff] }
 0x918   : > { %3690 = vmatpush3.bf16.msk.msra.mxu0 %vm6672_vm15, %v6609_v59  ;;  %3722 = vmatpush3.bf16.msk.msra.mxu1 %vm6677_vm1, %v6609_v59  ;;  %vm6692_vm15 = vmpackc.low %vm6689_vm3, %vm6691_vm6  ;;  %vm6709_vm3 = vnez %v6708_v51  ;;  %vm6711_vm6 = vnez %v6710_v12  ;;  %v6720_v48 = vld [vmem:[#allocation35_spill] sm:$0xff]  ;;  %v6723_v43 = vld [vmem:[#allocation64_spill] sm:$0xff] }
 0x919   : > { %3692 = vmatprep.subr.msk.bf16.mxu0 %vm6682_vm2, %v6609_v59  ;;  %3724 = vmatprep.subr.msk.bf16.mxu1 %vm6687_vm13, %v6609_v59  ;;  %vm6697_vm1 = vmpackc.low %vm6694_vm0, %vm6696_vm10  ;;  %vm6714_vm0 = vnez %v6713_v29  ;;  %vm6716_vm10 = vnez %v6715_v18  ;;  %v6725_v26 = vld [vmem:[#allocation63_spill] sm:$0xff]  ;;  %v6732_v5 = vld [vmem:[#allocation50_spill] sm:$0xff] }
 0x91a   : > { %vm6702_vm2 = vmpackc.low %vm6699_vm7, %vm6701_vm11  ;;  %vm6719_vm7 = vnez %v6718_v34  ;;  %vm6721_vm11 = vnez %v6720_v48  ;;  %v6734_v19 = vld [vmem:[#allocation49_spill] sm:$0xff]  ;;  %v6737_v41 = vld [vmem:[#allocation38_spill] sm:$0xff] }
 0x91b   : > { %vm6707_vm13 = vmpackc.low %vm6704_vm9, %vm6706_vm5  ;;  %vm6724_vm9 = vnez %v6723_v43  ;;  %vm6726_vm5 = vnez %v6725_v26  ;;  %v6739_v4 = vld [vmem:[#allocation37_spill] sm:$0xff]  ;;  %v6749_v47 = vld [vmem:[#allocation52_spill] sm:$0xff] }
 0x91c   : > { %3694 = vmatpush3.bf16.msk.msra.mxu0 %vm6692_vm15, %v6609_v59  ;;  %3726 = vmatpush3.bf16.msk.msra.mxu1 %vm6697_vm1, %v6609_v59  ;;  %vm6712_vm15 = vmpackc.low %vm6709_vm3, %vm6711_vm6  ;;  %v6751_v15 = vld [vmem:[#allocation51_spill] sm:$0xff]  ;;  %v6754_v13 = vld [vmem:[#allocation68_spill] sm:$0xff]  ;;  %vm6755_vm6 = vcmask 1043456  }
 0x91d   : > { %3696 = vmatprep.subr.msk.bf16.mxu0 %vm6702_vm2, %v6609_v59  ;;  %3728 = vmatprep.subr.msk.bf16.mxu1 %vm6707_vm13, %v6609_v59  ;;  %vm6717_vm1 = vmpackc.low %vm6714_vm0, %vm6716_vm10  ;;  %vm6735_vm0 = vnez %v6734_v19  ;;  %v6756_v24 = vld [vmem:[#allocation70_spill] sm:$0xff] }
 0x91e   : > { %vm6722_vm2 = vmpackc.low %vm6719_vm7, %vm6721_vm11  ;;  %vm6740_vm7 = vnez %v6739_v4 }
 0x91f   : > { %vm6727_vm13 = vmpackc.low %vm6724_vm9, %vm6726_vm5  ;;  %vm6750_vm5 = vnez %v6749_v47 }
 0x920   : > { %3698 = vmatpush3.bf16.msk.msra.mxu0 %vm6712_vm15, %v6609_v59  ;;  %3730 = vmatpush3.bf16.msk.msra.mxu1 %vm6717_vm1, %v6609_v59  ;;  %vm6733_vm15 = vnez %v6732_v5  ;;  %vm6738_vm1 = vnez %v6737_v41 }
 0x921   : > { %3700 = vmatprep.subr.msk.bf16.mxu0 %vm6722_vm2, %v6609_v59  ;;  %3732 = vmatprep.subr.msk.bf16.mxu1 %vm6727_vm13, %v6609_v59  ;;  %vm6736_vm10 = vmpackc.low %vm6733_vm15, %vm6735_vm0  ;;  %vm6752_vm13 = vnez %v6751_v15 }
 0x922   : > { %vm6741_vm11 = vmpackc.low %vm6738_vm1, %vm6740_vm7 }
 0x923   : > { %vm6753_vm3 = vmpackc.low %vm6750_vm5, %vm6752_vm13 }
 0x924   : > { %3702 = vmatpush3.bf16.msk.msra.mxu0 %vm3637_vm8, %v6609_v59  ;;  %3734 = vmatpush3.bf16.msk.msra.mxu1 %vm6736_vm10, %v6609_v59  ;;  %vm6744_vm8 = vmpackc.low %vm4795_vm14, %vm4791_vm4 }
 0x925   : > { %3704 = vmatprep.subr.msk.bf16.mxu0 %vm6741_vm11, %v6609_v59  ;;  %3736 = vmatprep.subr.msk.bf16.mxu1 %vm6744_vm8, %v6609_v59  ;;  %vm6757_vm4 = vmmov %vm6755_vm6  ;;  %vm6758_vm8 = vcmask 1040384  }
 0x926   : > { %vm6759_vm2 = vmmov %vm6758_vm8 }
 0x927   : > { %vm6760_vm9 = vmmov %vm6759_vm2 }
 0x928   : > { %3706 = vmatpush3.bf16.msk.msra.mxu0 %vm3641_vm12, %v6609_v59  ;;  %3738 = vmatpush3.bf16.msk.msra.mxu1 %vm6753_vm3, %v6609_v59  ;;  %vm6761_vm5 = vmmov %vm6759_vm2 }
 0x929   : > { %3443 = vmatprep.subr.msk.mxu0 %vm6755_vm6, %v6754_v13  ;;  %3446 = vmatprep.subr.msk.mxu1 %vm6757_vm4, %v6756_v24  ;;  %vm6763_vm13 = vmmov %vm6757_vm4  ;;  %vm6767_vm6 = vcmask 31744  }
 0x92a   : > { %vm6765_vm3 = vmmov %vm6757_vm4 }
 0x92b   : > { %vm6768_vm4 = vmmov %vm6767_vm6 }
 0x98a   : > { %v2323_v28 = vpop.permute.xlu0 %2322  ;;  %v2347_v46 = vpop.permute.xlu1 %2346 }
 0x98b   : > { %v2329_v54 = vadd.f32 %v4189_v63, %v2323_v28  ;;  %v2330_v42 = vadd.f32 %v4185_v3, %v2323_v28  ;;  %v2331_v36 = vadd.f32 %v4181_v9, %v2323_v28  ;;  %v2332_v33 = vadd.f32 %v4177_v1, %v2323_v28 }
 0x98d   : > { %vm2337_vm14 = vcmp.ge.f32.partialorder %v2329_v54, 0.0  ;;  %vm2338_vm12 = vcmp.ge.f32.partialorder %v2330_v42, 0.0  ;;  %vm2339_vm15 = vcmp.ge.f32.partialorder %v2331_v36, 0.0  ;;  %vm2340_vm0 = vcmp.ge.f32.partialorder %v2332_v33, 0.0 }
 0x98e   : > { %v2353_v37 = vmul.f32 %v2347_v46, %v2329_v54  ;;  %v2354_v57 = vmul.f32 %v2347_v46, %v2330_v42  ;;  %v2355_v39 = vmul.f32 %v2347_v46, %v2331_v36  ;;  %v2356_v59 = vmul.f32 %v2347_v46, %v2332_v33  ;;  %v2327_v30 = vpop.permute.xlu0 %2326  ;;  %v2351_v40 = vpop.permute.xlu1 %2350 }
 0x98f   : > { %v2333_v2 = vadd.f32 %v4173_v10, %v2327_v30  ;;  %v2334_v20 = vadd.f32 %v4169_v52, %v2327_v30  ;;  %v2335_v61 = vadd.f32 %v4165_v7, %v2327_v30  ;;  %v2336_v63 = vadd.f32 %v4161_v44, %v2327_v30 }
 0x990   : > { %v5934_v3 = vsel %vm2337_vm14, %v2329_v54, %v2353_v37  ;;  %v5936_v1 = vsel %vm2339_vm15, %v2331_v36, %v2355_v39  ;;  %v5938_v9 = vsel %vm2338_vm12, %v2330_v42, %v2354_v57  ;;  %v5940_v25 = vsel %vm2340_vm0, %v2332_v33, %v2356_v59 }
 0x991   : > { %vm2341_vm10 = vcmp.ge.f32.partialorder %v2333_v2, 0.0  ;;  %vm2342_vm1 = vcmp.ge.f32.partialorder %v2334_v20, 0.0  ;;  %vm2343_vm7 = vcmp.ge.f32.partialorder %v2335_v61, 0.0  ;;  %vm2344_vm11 = vcmp.ge.f32.partialorder %v2336_v63, 0.0 }
 0x992   : > { %v2357_v10 = vmul.f32 %v2351_v40, %v2333_v2  ;;  %v2358_v50 = vmul.f32 %v2351_v40, %v2334_v20  ;;  %v2359_v52 = vmul.f32 %v2351_v40, %v2335_v61  ;;  %v2360_v56 = vmul.f32 %v2351_v40, %v2336_v63 }
 0x993   : > { %v2398_v44 = vmul.f32 %v5938_v9, %v5938_v9  ;;  %v2400_v7 = vmul.f32 %v5940_v25, %v5940_v25  ;;  %v2397_v58 = vmul.f32 %v5934_v3, %v5934_v3  ;;  %v2399_v27 = vmul.f32 %v5936_v1, %v5936_v1 }
 0x994   : > { %v5950_v35 = vsel %vm2341_vm10, %v2333_v2, %v2357_v10  ;;  %v5952_v16 = vsel %vm2343_vm7, %v2335_v61, %v2359_v52  ;;  %v5954_v53 = vsel %vm2342_vm1, %v2334_v20, %v2358_v50  ;;  %v5956_v21 = vsel %vm2344_vm11, %v2336_v63, %v2360_v56 }
 0x995   : > { %v2376_v22 = vadd.f32 %v5954_v53, %v5938_v9  ;;  %v2402_v17 = vmul.f32 %v5954_v53, %v5954_v53  ;;  %v2390_v55 = vadd.f32 %v5956_v21, %v5940_v25  ;;  %v2404_v32 = vmul.f32 %v5956_v21, %v5956_v21 }
 0x996   : > { %v2369_v38 = vadd.f32 %v5950_v35, %v5934_v3  ;;  %v2401_v14 = vmul.f32 %v5950_v35, %v5950_v35  ;;  %v2383_v31 = vadd.f32 %v5952_v16, %v5936_v1  ;;  %v2403_v49 = vmul.f32 %v5952_v16, %v5952_v16 }
 0x997   : > { %v2377_v51 = vrot.slane %v2376_v22, 4  ;;  %v2412_v12 = vadd.f32 %v2402_v17, %v2398_v44  ;;  %v2391_v29 = vrot.slane %v2390_v55, 4  ;;  %v2426_v18 = vadd.f32 %v2404_v32, %v2400_v7 }
 0x998   : > { %v2370_v34 = vrot.slane %v2369_v38, 4  ;;  %v2405_v48 = vadd.f32 %v2401_v14, %v2397_v58  ;;  %v2384_v43 = vrot.slane %v2383_v31, 4  ;;  %v2419_v26 = vadd.f32 %v2403_v49, %v2399_v27 }
 0x999   : > { %v2378_v11 = vadd.f32 %v2377_v51, %v2376_v22  ;;  %v2413_v6 = vrot.slane %v2412_v12, 4  ;;  %v2392_v5 = vadd.f32 %v2391_v29, %v2390_v55  ;;  %v2427_v19 = vrot.slane %v2426_v18, 4  ;;  %v6762_v29 = vld [vmem:[#allocation67_spill] sm:$0xff] }
 0x99a   : > { %v2371_v41 = vadd.f32 %v2370_v34, %v2369_v38  ;;  %v2406_v4 = vrot.slane %v2405_v48, 4  ;;  %v2385_v0 = vadd.f32 %v2384_v43, %v2383_v31  ;;  %v2420_v60 = vrot.slane %v2419_v26, 4 }
 0x99b   : > { %v2379_v8 = vrot.slane %v2378_v11, 2  ;;  %v2414_v45 = vadd.f32 %v2413_v6, %v2412_v12  ;;  %v2393_v47 = vrot.slane %v2392_v5, 2  ;;  %v2428_v15 = vadd.f32 %v2427_v19, %v2426_v18  ;;  %v6764_v18 = vld [vmem:[#allocation69_spill] sm:$0xff] }
 0x99c   : > { %v2372_v13 = vrot.slane %v2371_v41, 2  ;;  %v2407_v24 = vadd.f32 %v2406_v4, %v2405_v48  ;;  %v2386_v28 = vrot.slane %v2385_v0, 2  ;;  %v2421_v46 = vadd.f32 %v2420_v60, %v2419_v26  ;;  %v2809_v4 = vld [vmem:[%s4326_s16 + $0x8] sm:$0xff] }
 0x99d   : > { %v2380_v54 = vadd.f32 %v2379_v8, %v2378_v11  ;;  %v2415_v42 = vrot.slane %v2414_v45, 2  ;;  %v2394_v36 = vadd.f32 %v2393_v47, %v2392_v5  ;;  %v2429_v33 = vrot.slane %v2428_v15, 2  ;;  %2817 = vperm.xlu1 %3967, %v2809_v4  }
 0x99e   : > { %v2373_v37 = vadd.f32 %v2372_v13, %v2371_v41  ;;  %v2408_v57 = vrot.slane %v2407_v24, 2  ;;  %v2387_v39 = vadd.f32 %v2386_v28, %v2385_v0  ;;  %v2422_v59 = vrot.slane %v2421_v46, 2  ;;  %v2808_v41 = vld [vmem:[%s4326_s16] sm:$0xff] }
 0x99f   : > { %v2381_v30 = vrot.slane %v2380_v54, 1  ;;  %v2416_v2 = vadd.f32 %v2415_v42, %v2414_v45  ;;  %v2395_v20 = vrot.slane %v2394_v36, 1  ;;  %v2430_v61 = vadd.f32 %v2429_v33, %v2428_v15  ;;  %2812 = vperm.xlu0 %3966, %v2808_v41  }
 0x9a0   : > { %v2374_v63 = vrot.slane %v2373_v37, 1  ;;  %v2409_v40 = vadd.f32 %v2408_v57, %v2407_v24  ;;  %v2388_v10 = vrot.slane %v2387_v39, 1  ;;  %v2423_v50 = vadd.f32 %v2422_v59, %v2421_v46 }
 0x9a1   : > { %v2417_v52 = vrot.slane %v2416_v2, 1  ;;  %v2431_v56 = vrot.slane %v2430_v61, 1  ;;  %v2382_v58 = vadd.f32 %v2381_v30, %v2380_v54  ;;  %v2396_v22 = vadd.f32 %v2395_v20, %v2394_v36 }
 0x9a2   : > { %v2410_v44 = vrot.slane %v2409_v40, 1  ;;  %v2424_v7 = vrot.slane %v2423_v50, 1  ;;  %v2375_v55 = vadd.f32 %v2374_v63, %v2373_v37  ;;  %v2389_v38 = vadd.f32 %v2388_v10, %v2387_v39 }
 0x9a3   : > { %v2418_v27 = vadd.f32 %v2417_v52, %v2416_v2  ;;  %v2432_v17 = vadd.f32 %v2431_v56, %v2430_v61  ;;  %v6766_v34 = vmov 0.0   ;;  %vm2825_vm14 = vcmask 130048  }
 0x9a4   : > { %v2411_v32 = vadd.f32 %v2410_v44, %v2409_v40  ;;  %v2425_v14 = vadd.f32 %v2424_v7, %v2423_v50  ;;  %vm6774_vm1 = vcmask (!%p3452_p1), 1043456  }
 0x9a5   : > { %v2434_v31 = vsel %vm6758_vm8, %v2382_v58, %v2418_v27  ;;  %v2436_v49 = vsel %vm6759_vm2, %v2396_v22, %v2432_v17  ;;  %v6769_v58 = vld [vmem:[#allocation75_spill] sm:$0xff]  ;;  %vm6775_vm7 = vmmov (!%p3452_p1), %vm6774_vm1  ;;  %vm6778_vm2 = vcmask (!%p3452_p1), 64512  }
 0x9a6   : > { %2501 = vmatprep.mubr.f32.mxu0 %v2434_v31  ;;  %2571 = vmatprep.mubr.f32.mxu1 %v2436_v49  ;;  %v2433_v51 = vsel %vm6760_vm9, %v2375_v55, %v2411_v32  ;;  %v2435_v12 = vsel %vm6761_vm5, %v2389_v38, %v2425_v14  ;;  %vm6776_vm11 = vmmov (!%p3452_p1), %vm6774_vm1 }
 0x9a7   : > { %2502 = vmatmul.mubr.f32.vlgmr.msra.gmra.mrb[8].mxu0 %v2433_v51  ;;  %2572 = vmatmul.mubr.f32.vlgmr.msra.gmra.mrb[8].mxu1 %v2435_v12  ;;  %vm6777_vm8 = vmmov (!%p3452_p1), %vm6774_vm1 }
 0x9a8   : > { %3444 = vmatpush1.msk.msra.mxu0 %vm6763_vm13, %v6762_v29  ;;  %3447 = vmatpush1.msk.msra.mxu1 %vm6765_vm3, %v6764_v18  ;;  %vm6779_vm9 = vmmov (!%p3452_p1), %vm6778_vm2 }
 0x9a9   : > { %2644 = vmatprep.mubr.f32.mxu0 %v6766_v34  ;;  %2715 = vmatprep.mubr.f32.mxu1 %v6766_v34 }
 0xa7a   : > { %v3573_v48 = vpop.f32.mrb[8].mxu0  ;;  %v3608_v43 = vpop.f32.mrb[8].mxu1 }
 0xa7b   : > { %v3574_v26 = vpop.f32.mrb[9].mxu0  ;;  %v3609_v11 = vpop.f32.mrb[9].mxu1 }
 0xa7c   : > { %v3575_v6 = vadd.f32 %v3574_v26, %v3573_v48  ;;  %v3610_v5 = vadd.f32 %v3609_v11, %v3608_v43  ;;  %v3968_v11 = vld [vmem:[%s4321_s13] sm:$0xff]  }
 0xa7e   : > { %v2574_v19 = vadd.f32 %v3610_v5, %v3575_v6  ;;  %v2818_v5 = vpop.permute.xlu1 %2817 }
 0xa80   : > { %3445 = vmatmul.mubr.msk.f32.vlgmr.msra.gmra.mrb[10].mxu0 %vm6767_vm6, %v2574_v19  ;;  %3448 = vmatmul.mubr.msk.f32.vlgmr.msra.gmra.mrb[10].mxu1 %vm6768_vm4, %v2574_v19 }
 0xa81   : > { %2861 = vmatprep.mubr.bf16.mxu0 %v6647_v62  ;;  %2904 = vmatprep.mubr.bf16.mxu1 %v6647_v62 }
 0xb53   : > { %v2646_v0 = vpop.f32.mrb[10].mxu0  ;;  %v2717_v60 = vpop.f32.mrb[10].mxu1 }
 0xb54   : > { %v2722_v8 = vmul.f32 0.00048828125, %v2646_v0  ;;  %v2724_v45 = vmul.f32 0.00048828125, %v2717_v60  ;;  %v2648_v47 = vpop.f32.mrb[11].mxu0  ;;  %v2719_v15 = vpop.f32.mrb[11].mxu1 }
 0xb55   : > { %v2723_v13 = vmul.f32 0.00048828125, %v2648_v47  ;;  %v2725_v24 = vmul.f32 0.00048828125, %v2719_v15  ;;  %v2923_v47 = vld [vmem:[#allocation3] sm:$0xff] }
 0xb56   : > { %v2726_v28 = vmul.f32 %v2722_v8, %v2722_v8  ;;  %v2728_v46 = vmul.f32 %v2724_v45, %v2724_v45  ;;  %v2757_v40 = vrot.slane %v2722_v8, %v5416_v23  ;;  %v2765_v10 = vrot.slane %v2724_v45, %v5416_v23 }
 0xb57   : > { %v2727_v54 = vmul.f32 %v2723_v13, %v2723_v13  ;;  %v2729_v42 = vmul.f32 %v2725_v24, %v2725_v24  ;;  %v2761_v50 = vrot.slane %v2723_v13, %v5416_v23  ;;  %v2769_v52 = vrot.slane %v2725_v24, %v5416_v23 }
 0xb58   : > { %v2734_v36 = vrot.slane %v2726_v28, 7  ;;  %v2736_v33 = vrot.slane %v2728_v46, 7  ;;  %v2770_v7 = vsub.f32 %v5934_v3, %v2757_v40  ;;  %v2774_v17 = vsub.f32 %v5950_v35, %v2757_v40 }
 0xb59   : > { %v2735_v37 = vrot.slane %v2727_v54, 7  ;;  %v2737_v39 = vrot.slane %v2729_v42, 7  ;;  %v2772_v55 = vsub.f32 %v5936_v1, %v2765_v10  ;;  %v2776_v32 = vsub.f32 %v5952_v16, %v2765_v10  ;;  %v2925_v54 = vld [vmem:[#allocation3 + $0x10] sm:$0xff] }
 0xb5a   : > { %v2742_v62 = vsub.f32 %v2722_v8, %v2734_v36  ;;  %v2744_v57 = vsub.f32 %v2724_v45, %v2736_v33  ;;  %v2771_v31 = vsub.f32 %v5938_v9, %v2761_v50  ;;  %v2775_v23 = vsub.f32 %v5954_v53, %v2761_v50  ;;  %v2924_v36 = vld [vmem:[#allocation3 + $0x8] sm:$0xff] }
 0xb5b   : > { %v2743_v59 = vsub.f32 %v2723_v13, %v2735_v37  ;;  %v2745_v20 = vsub.f32 %v2725_v24, %v2737_v39  ;;  %v2773_v49 = vsub.f32 %v5940_v25, %v2769_v52  ;;  %v2777_v35 = vsub.f32 %v5956_v21, %v2769_v52  ;;  %v2813_v21 = vpop.permute.xlu0 %2812  ;;  %v6770_v13 = vld [vmem:[#allocation73_spill] sm:$0xff]  ;;  %v6771_v33 = vld [vmem:[#allocation71_spill] sm:$0xff] }
 0xb5c   : > { %v2746_v30 = vadd.f32 1e-08, %v2742_v62  ;;  %v2748_v2 = vadd.f32 1e-08, %v2744_v57  ;;  %v6772_v62 = vld [vmem:[#allocation74_spill] sm:$0xff] }
 0xb5d   : > { %v2747_v61 = vadd.f32 1e-08, %v2743_v59  ;;  %v2749_v63 = vadd.f32 1e-08, %v2745_v20  ;;  %v6773_v20 = vld [vmem:[#allocation72_spill] sm:$0xff] }
 0xb5e   : > { %3969 = vrsqrt.f32 %v2746_v30 }
 0xb5f   : > { %3971 = vrsqrt.f32 %v2748_v2  ;;  %v2926_v2 = vld [vmem:[#allocation3 + $0x18] sm:$0xff] }
 0xb60   : > { %3973 = vrsqrt.f32 %v2747_v61 }
 0xb61   : > { %3975 = vrsqrt.f32 %v2749_v63 }
 0xb68   : > { %v3970_v56 = vpop.eup %3969 }
 0xb69   : > { %v3972_v44 = vpop.eup %3971  ;;  %v2781_v27 = vrot.slane %v3970_v56, %v6769_v58  ;;  %v2939_v56 = vld [vmem:[%s6067_s3] sm:$0xff] (!%p3452_p1) }
 0xb6a   : > { %v3974_v22 = vpop.eup %3973  ;;  %v2789_v38 = vrot.slane %v3972_v44, %v6769_v58  ;;  %v4221_v44 = vmov (!%p3452_p1), 1  }
 0xb6b   : > { %v3976_v14 = vpop.eup %3975  ;;  %v2785_v3 = vrot.slane %v3974_v22, %v6769_v58  ;;  %v2794_v51 = vmul.f32 %v2781_v27, %v2770_v7  ;;  %v2798_v12 = vmul.f32 %v2781_v27, %v2774_v17  ;;  %3977 = vset.pattern.permute.xlu0 (!%p3452_p1), %v4221_v44  ;;  %v4222_v7 = vmov (!%p3452_p1), 0  }
 0xb6c   : > { %v2793_v1 = vrot.slane %v3976_v14, %v6769_v58  ;;  %v2796_v29 = vmul.f32 %v2789_v38, %v2772_v55  ;;  %v2800_v16 = vmul.f32 %v2789_v38, %v2776_v32  ;;  %2950 = vperm.xlu0 (!%p3452_p1), %3977, %v2939_v56   ;;  %v2966_v58 = vld [vmem:[%s6073_s9] sm:$0x3f] (!%p3452_p1) }
 0xb6d   : > { %v2795_v18 = vmul.f32 %v2785_v3, %v2771_v31  ;;  %v2799_v34 = vmul.f32 %v2785_v3, %v2775_v23  ;;  %v2804_v53 = vpack.c.bf16 %v2798_v12, %v2794_v51 }
 0xb6e   : > { %v2797_v48 = vmul.f32 %v2793_v1, %v2773_v49  ;;  %v2801_v43 = vmul.f32 %v2793_v1, %v2777_v35  ;;  %v2806_v25 = vpack.c.bf16 %v2800_v16, %v2796_v29 }
 0xb6f   : > { %v2805_v9 = vpack.c.bf16 %v2799_v34, %v2795_v18 }
 0xb70   : > { %v2807_v26 = vpack.c.bf16 %v2801_v43, %v2797_v48  ;;  %3978 = vset.pattern.permute.xlu0 (!%p3452_p1), %v4222_v7  ;;  %v2961_v48 = vld [vmem:[%s6072_s8] sm:$0x7] (!%p3452_p1) }
 0xb71   : > { %2829 = vmatprep.subr.bf16.mxu0 %v2805_v9  ;;  %2969 = vperm.xlu0 (!%p3452_p1), %3978, %v2966_v58  }
 0xb72   : > { %2872 = vmatprep.subr.bf16.mxu1 %v2807_v26  ;;  %2830 = vmatpush1.bf16.msra.mxu0 %v2804_v53 }
 0xb73   : > { %2873 = vmatpush1.bf16.msra.mxu1 %v2806_v25 }
 0xb75   : > { %3450 = vmatmul.mubr.msk.bf16.vlgmr.msra.gmra.mrb[12].mxu0 %vm2825_vm14, %v3968_v11 }
 0xb76   : > { %3451 = vmatmul.mubr.msk.bf16.vlgmr.msra.gmra.mrb[12].mxu1 %vm2825_vm14, %v3968_v11  ;;  %3019 = vmatprep.mubr.bf16.mxu0 (!%p3452_p1), %v4222_v7 }
 0xb77   : > { %3060 = vmatprep.mubr.bf16.mxu1 (!%p3452_p1), %v4222_v7 }
 0xbeb   : > { %v2951_v32 = vpop.permute.xlu0 (!%p3452_p1), %2950 }
 0xbf0   : > { %v2970_v43 = vpop.permute.xlu0 (!%p3452_p1), %2969 }
 0xc48   : > { %v2863_v6 = vpop.f32.mrb[12].mxu0 }
 0xc49   : > { %v2906_v19 = vpop.f32.mrb[12].mxu1  ;;  %v2865_v41 = vpop.f32.mrb[13].mxu0  ;;  %v2864_v4 = vadd.f32 %v2863_v6, %v2813_v21 }
 0xc4a   : > { %v2908_v0 = vpop.f32.mrb[13].mxu1  ;;  %v2866_v60 = vadd.f32 %v2865_v41, %v2813_v21  ;;  %v2907_v8 = vadd.f32 %v2906_v19, %v2813_v21  ;;  %v2867_v45 = vpop.f32.mrb[14].mxu0 }
 0xc4b   : > { %v2909_v15 = vadd.f32 %v2908_v0, %v2813_v21  ;;  %v2915_v24 = vadd.f32 %v2864_v4, %v6770_v13  ;;  %v2868_v28 = vadd.f32 %v2867_v45, %v2818_v5  ;;  %v2910_v46 = vpop.f32.mrb[14].mxu1  ;;  %v2869_v42 = vpop.f32.mrb[15].mxu0  ;;  %2938 = sbr.rel (%p3452_p1) target bundleno = 3413 (0xd55), region = 72 }
 0xc4c   : > { %v2916_v37 = vadd.f32 %v2866_v60, %v6771_v33  ;;  %v2917_v57 = vadd.f32 %v2907_v8, %v6772_v62  ;;  %v2911_v39 = vadd.f32 %v2910_v46, %v2818_v5  ;;  %v2870_v59 = vadd.f32 %v2869_v42, %v2818_v5  ;;  %v2912_v30 = vpop.f32.mrb[15].mxu1 }
 0xc4d   : > { %v2918_v61 = vadd.f32 %v2909_v15, %v6773_v20  ;;  %2919 = vst [vmem:[#allocation2] sm:$0xff] %v2915_v24  ;;  %v2927_v63 = vadd.f32 %v2923_v47, %v2868_v28  ;;  %v2913_v40 = vadd.f32 %v2912_v30, %v2818_v5 }
 0xc4e   : > { %2920 = vst [vmem:[#allocation2 + $0x8] sm:$0xff] %v2916_v37  ;;  %2921 = vst [vmem:[#allocation2 + $0x10] sm:$0xff] %v2917_v57  ;;  %v2929_v10 = vadd.f32 %v2925_v54, %v2911_v39  ;;  %v2928_v50 = vadd.f32 %v2924_v36, %v2870_v59 }
 0xc4f   : > { %2922 = vst [vmem:[#allocation2 + $0x18] sm:$0xff] %v2918_v61  ;;  %2931 = vst [vmem:[#allocation3] sm:$0xff] %v2927_v63  ;;  %v2930_v52 = vadd.f32 %v2926_v2, %v2913_v40 }
 0xc50   : > { %2933 = vst [vmem:[#allocation3 + $0x10] sm:$0xff] %v2929_v10  ;;  %2932 = vst [vmem:[#allocation3 + $0x8] sm:$0xff] %v2928_v50 }
 0xc51   : > { %2934 = vst [vmem:[#allocation3 + $0x18] sm:$0xff] %v2930_v52 }
 0xc56   : > { %v2940_v17 = vld [vmem:[#allocation3] sm:$0xff] }
 0xc57   : > { %v2941_v27 = vld [vmem:[#allocation3 + $0x8] sm:$0xff]  ;;  %v2942_v55 = vld [vmem:[#allocation3 + $0x10] sm:$0xff]  ;;  %vm2944_vm0 = vcmp.ge.f32.partialorder %v2940_v17, 0.0  ;;  %v2953_v31 = vmul.f32 %v2951_v32, %v2940_v17 }
 0xc58   : > { %v2943_v22 = vld [vmem:[#allocation3 + $0x18] sm:$0xff]  ;;  %vm2945_vm12 = vcmp.ge.f32.partialorder %v2941_v27, 0.0  ;;  %vm2946_vm10 = vcmp.ge.f32.partialorder %v2942_v55, 0.0  ;;  %v2954_v38 = vmul.f32 %v2951_v32, %v2941_v27  ;;  %v2955_v23 = vmul.f32 %v2951_v32, %v2942_v55 }
 0xc59   : > { %vm2947_vm15 = vcmp.ge.f32.partialorder %v2943_v22, 0.0  ;;  %v2956_v14 = vmul.f32 %v2951_v32, %v2943_v22  ;;  %v2957_v51 = vsel %vm2944_vm0, %v2940_v17, %v2953_v31 }
 0xc5a   : > { %v2958_v49 = vsel %vm2945_vm12, %v2941_v27, %v2954_v38  ;;  %v2959_v12 = vsel %vm2946_vm10, %v2942_v55, %v2955_v23  ;;  %v2962_v29 = vpack.c.bf16 %v2957_v51, %v2957_v51 }
 0xc5b   : > { %v2960_v3 = vsel %vm2947_vm15, %v2943_v22, %v2956_v14  ;;  %v2963_v35 = vpack.c.bf16 %v2958_v49, %v2958_v49  ;;  %v2964_v16 = vpack.c.bf16 %v2959_v12, %v2959_v12 }
 0xc5c   : > { %v2965_v1 = vpack.c.bf16 %v2960_v3, %v2960_v3  ;;  %v2976_v18 = vsel %vm6776_vm11, %v2962_v29, 0 }
 0xc5d   : > { %3453 = vmatprep.subr.msk.bf16.mxu0 %vm6774_vm1, %v2963_v35  ;;  %v2982_v34 = vsel %vm6777_vm8, %v2964_v16, 0 }
 0xc5e   : > { %3455 = vmatprep.subr.msk.bf16.mxu1 %vm6775_vm7, %v2965_v1  ;;  %2988 = vmatpush1.bf16.msra.mxu0 %v2976_v18 }
 0xc5f   : > { %3029 = vmatpush1.bf16.msra.mxu1 %v2982_v34 }
 0xc61   : > { %3454 = vmatmul.mubr.msk.bf16.vlgmr.msra.gmra.mrb[0].mxu0 %vm6778_vm2, %v2961_v48 }
 0xc62   : > { %3456 = vmatmul.mubr.msk.bf16.vlgmr.msra.gmra.mrb[0].mxu1 %vm6779_vm9, %v2961_v48 }
 0xd34   : > { %v3021_v9 = vpop.f32.mrb[0].mxu0 }
 0xd35   : > { %v3062_v26 = vpop.f32.mrb[0].mxu1  ;;  %v3022_v53 = vadd.f32 %v3021_v9, %v2970_v43  ;;  %v3023_v11 = vpop.f32.mrb[1].mxu0 }
 0xd36   : > { %v3063_v25 = vadd.f32 %v3062_v26, %v2970_v43  ;;  %v3064_v21 = vpop.f32.mrb[1].mxu1  ;;  %v3024_v6 = vadd.f32 %v3023_v11, %v2970_v43  ;;  %v3025_v19 = vpop.f32.mrb[2].mxu0 }
 0xd37   : > { %v3065_v5 = vadd.f32 %v3064_v21, %v2970_v43  ;;  %v3066_v41 = vpop.f32.mrb[2].mxu1  ;;  %v3457_v4 = vmul.f32 -1.442695, %v3022_v53  ;;  %v3026_v60 = vpop.f32.mrb[3].mxu0 }
 0xd38   : > { %v3459_v0 = vmul.f32 -1.442695, %v3063_v25  ;;  %v3067_v8 = vpop.f32.mrb[3].mxu1  ;;  %v3458_v45 = vmul.f32 -1.442695, %v3024_v6 }
 0xd39   : > { %v3460_v47 = vmul.f32 -1.442695, %v3065_v5  ;;  %3979 = vpow2.f32 %v3457_v4 }
 0xd3a   : > { %3981 = vpow2.f32 %v3459_v0 }
 0xd3b   : > { %3983 = vpow2.f32 %v3458_v45 }
 0xd3c   : > { %3985 = vpow2.f32 %v3460_v47 }
 0xd43   : > { %v3980_v15 = vpop.eup %3979 }
 0xd44   : > { %v3982_v13 = vpop.eup %3981  ;;  %v3081_v24 = vadd.f32 1.0, %v3980_v15 }
 0xd45   : > { %v3984_v28 = vpop.eup %3983  ;;  %v3083_v46 = vadd.f32 1.0, %v3982_v13 }
 0xd46   : > { %v3986_v54 = vpop.eup %3985  ;;  %3987 = vrcp.f32 %v3081_v24  ;;  %v3082_v42 = vadd.f32 1.0, %v3984_v28 }
 0xd47   : > { %3989 = vrcp.f32 %v3083_v46  ;;  %v3084_v36 = vadd.f32 1.0, %v3986_v54 }
 0xd48   : > { %3991 = vrcp.f32 %v3082_v42 }
 0xd49   : > { %3993 = vrcp.f32 %v3084_v36 }
 0xd50   : > { %v3988_v33 = vpop.eup %3987 }
 0xd51   : > { %v3990_v37 = vpop.eup %3989  ;;  %3093 = vst [vmem:[#allocation6] sm:$0x3f] %v3988_v33 }
 0xd52   : > { %v3992_v62 = vpop.eup %3991  ;;  %3095 = vst [vmem:[#allocation6 + $0x10] sm:$0x3f] %v3990_v37 }
 0xd53   : > { %v3994_v57 = vpop.eup %3993  ;;  %3094 = vst [vmem:[#allocation6 + $0x8] sm:$0x3f] %v3992_v62 }
 0xd54   : > { %3096 = vst [vmem:[#allocation6 + $0x18] sm:$0x3f] %v3994_v57 }
 0xd55 PF: > { %p6029_p2 = scmp.eq.s32.totalorder %s3208_s0, 3  ;;  %s4223_s24 = smov [#allocation6]  }
 0xd56   : > { %s3107_s25 = sshll.u32 %s4223_s24, 4  ;;  %s3108_s25 = int_to_ptr.vmem [resolvable:$true] %s3107_s25 }
 0xd57   : > { %s4007_s26 = scalar_lea.vmem %s3108_s25, 512  ;;  %p4014_p6 = scmp.lt.s32.totalorder %s3108_s25, %s3108_s25 }
 0xd58   : > { %p4008_p3 = scmp.ne.s32.totalorder %s3108_s25, %s4007_s26  ;;  %p4015_p7 = scmp.lt.s32.totalorder %s4007_s26, %s4007_s26 }
 0xd5a   : > { %p4009_p4 = pnand %p4008_p3, %p6029_p2  ;;  %p4016_p8 = por %p4015_p7, %p4014_p6 }
 0xd5c   : > { %p4010_p5 = pneg %p4009_p4 }
 0xd5e   : > { %p4017_p9 = pnand %p4016_p8, %p4010_p5 }
 0xd60   : > { %4020 = shalt.err (!%p4017_p9)
}
 0xd61   : > { %s4021_s0 = scalar_lea.hbm %s6074_s10, 512 }
 0xd62   : > { %p4022_p10 = scmp.ne.s32.totalorder %s6074_s10, %s4021_s0  ;;  %p4027_p13 = scmp.lt.u32.totalorder %s4021_s0, %s6074_s10 }
 0xd64   : > { %p4023_p11 = pnand %p4022_p10, %p6029_p2 }
 0xd66   : > { %p4024_p12 = pneg %p4023_p11 }
 0xd68   : > { %p4029_p0 = pnand %p4027_p13, %p4024_p12 }
 0xd6a   : > { %4032 = shalt.err (!%p4029_p0)
}
 0xd6b   : > { %3740 = dma.vmem_to_hbm [thread:$0]  (%p6029_p2), %s3108_s25, 512, %s6074_s10, [#allocation7]  }
 0xd6c   : > { %4112 = dma.done.wait (%p6029_p2), [#allocation7], 512  }
 0xd6d   : > { %4114 = vsyncadd (%p6029_p2), [#allocation7], 4294966784 }
 0xd6e PF: > { %s27_s20 = sadd.s32 1, %s4125_s20   ;;  %s6781_s18 = smov %s4121_s19 }
 0xd6f   : > { %p24_p1 = scmp.ge.s32.totalorder %s27_s20, 6   ;;  %s6782_s19 = smov %s6784_s21 }
 0xd71   :  { %26 = sbr.rel (!%p24_p1) target bundleno = 17 (0x11), region = 112 }
 0xd78   :  { %3120 = vsyncpa [#allocation7], 1 }
 0xd79   :  { %3122 = vsyncpa [#allocation7 + $0x1], 1 }

</bundles_post_ra>
